<compile_context>
chip_gen: v6e
topology: v6e:2x2x1
jax: 0.10.0
libtpu: 0.0.40
codegen_flags: <defaults>
</compile_context>

<pallas_src>
import math
from functools import partial

import numpy as np
import jax
import jax.numpy as jnp
from jax.experimental import pallas as pl
from jax.experimental.pallas import tpu as pltpu

HIDDEN = 32        # hidden_dim
KERNEL = 3         # kernel_size
LAYERS = 2         # U-Net depth (self.layers)
BLOCK_LAYERS = 2   # convs per ConvBlock (dilations 1, 2)
DROPOUT = 0.1

LANE = 128
HALO = 4           # zero halo per batch segment; must be >= max dilation*(K-1)//2


def _round_up(x, m):
    return (x + m - 1) // m * m


def _seg_len(L):
    # per-batch padded segment length: halo + interior + right pad, 128-multiple
    return _round_up(L + 2 * HALO, LANE)


# --------------------------- flat-layout helpers ----------------------------

def _flatten(x_int, Lp):
    """(C, B, L) interior -> (C, B*Lp) flat with zero halos."""
    C, B, L = x_int.shape
    x = jnp.pad(x_int, ((0, 0), (0, 0), (HALO, Lp - L - HALO)))
    return x.reshape(C, B * Lp)


def _unflatten(x_flat, B, L):
    """(C, B*Lp) flat -> (C, B, L) interior."""
    C, N = x_flat.shape
    Lp = N // B
    return x_flat.reshape(C, B, Lp)[:, :, HALO:HALO + L]


def _interior_mask(B, L, Lp):
    """(1, B*Lp) f32 mask: 1 on interior samples, 0 on halos (compile-time const)."""
    m = np.zeros((Lp,), np.float32)
    m[HALO:HALO + L] = 1.0
    return jnp.asarray(np.tile(m, B).reshape(1, B * Lp))


# ----------------------------- in-kernel helpers ----------------------------

def _shift(a, off):
    """v with v[:, t] = a[:, t + off]; zero-filled at the flat-array ends."""
    if off == 0:
        return a
    C, N = a.shape
    z = jnp.zeros((C, abs(off)), a.dtype)
    if off > 0:
        return jnp.concatenate([a[:, off:], z], axis=1)
    return jnp.concatenate([z, a[:, :off]], axis=1)


# ------------------------------ Pallas kernels ------------------------------

def _prev_conv_kernel(mask_ref, x_ref, w_ref, b_ref, o_ref):
    # Conv1d(1, H, 1): outer-product broadcast (VPU), halos re-zeroed via mask.
    x = x_ref[...]                                  # (1, N) f32
    y = w_ref[...] * x + b_ref[...]                 # (H, 1)*(1, N) -> (H, N)
    o_ref[...] = (y * mask_ref[...]).astype(o_ref.dtype)


def prev_conv(x_flat, w, b, mask):
    H = w.shape[0]
    N = x_flat.shape[1]
    wcol = w[:, :, 0].astype(jnp.float32)           # (H, 1)
    bcol = b.astype(jnp.float32).reshape(H, 1)
    return pl.pallas_call(
        _prev_conv_kernel,
        out_shape=jax.ShapeDtypeStruct((H, N), jnp.float32),
        grid=(1,),
        in_specs=[
            pl.BlockSpec(mask.shape, lambda i: (0, 0)),
            pl.BlockSpec(x_flat.shape, lambda i: (0, 0)),
            pl.BlockSpec(wcol.shape, lambda i: (0, 0)),
            pl.BlockSpec(bcol.shape, lambda i: (0, 0)),
        ],
        out_specs=pl.BlockSpec((H, N), lambda i: (0, 0)),
        compiler_params=pltpu.CompilerParams(dimension_semantics=("arbitrary",)),
    )(mask, x_flat, wcol, bcol)


def _make_fused_block_kernel(K, dilations, n_in, residual, post):
    """Fused ConvBlock kernel, optionally with a ConvTranspose / out-1x1 tail.

    Ref order: mask, x_0..x_{n_in-1}, (w, b) per dilated conv layer,
               (w_post, b_post) if post is not None, out.
    """
    n_layers = len(dilations)

    def kernel(*refs):
        it = iter(refs)
        mask = next(it)[...]                                    # (1, N) f32
        x_refs = [next(it) for _ in range(n_in)]                # (C_i, N) f32
        layer_wb = [(next(it), next(it)) for _ in range(n_layers)]
        post_wb = (next(it), next(it)) if post is not None else None
        o_ref = next(it)

        def tap_stack(parts, d):
            # build (K * sum(C_i), N) stacked taps: tap-major, input order within
            pad = d * (K - 1) // 2
            cols = []
            for k in range(K):
                off = k * d - pad
                for p in parts:
                    cols.append(_shift(p, off))
            return jnp.concatenate(cols, axis=0) if len(cols) > 1 else cols[0]

        # first-layer inputs: fused channel concat (tanh applied per input)
        first_acts = [jnp.tanh(r[...]).astype(jnp.bfloat16) for r in x_refs]

        h = None
        for li, d in enumerate(dilations):
            w_ref, b_ref = layer_wb[li]
            parts = first_acts if li == 0 else [jnp.tanh(h).astype(jnp.bfloat16)]
            xs = tap_stack(parts, d)                            # (K*C_in, N) bf16
            y = jnp.dot(w_ref[...], xs, preferred_element_type=jnp.float32)
            h = (y + b_ref[...]) * mask                         # restore zero halos

        if residual:
            h = h + x_refs[0][...]

        if post is None:
            o_ref[...] = h.astype(o_ref.dtype)
        else:
            pw, pb = post_wb
            t = jnp.tanh(h).astype(jnp.bfloat16)
            y = jnp.dot(pw[...], t, preferred_element_type=jnp.float32) + pb[...]
            if post == "out1x1":
                y = jnp.tanh(y)
            o_ref[...] = y.astype(o_ref.dtype)

    return kernel


def _pack_conv_w(w):
    # (C_out, C_in, K) -> (C_out, K*C_in) bf16, tap-major (matches tap_stack order)
    C_out, C_in, K = w.shape
    return jnp.transpose(w, (0, 2, 1)).reshape(C_out, K * C_in).astype(jnp.bfloat16)


def _pack_convT(wt, bt):
    # ConvTranspose1d(k=2,s=2): stack both taps along C_out -> one (2*C_out, C_in) matmul
    C_in, C_out, K = wt.shape
    w_stk = jnp.concatenate([wt[:, :, k].T for k in range(K)], axis=0).astype(jnp.bfloat16)
    b_stk = jnp.tile(bt.astype(jnp.float32), (K,)).reshape(K * C_out, 1)
    return w_stk, b_stk


def fused_conv_block(xs_flat, block_params, *, mask, post=None, post_params=None, K=KERNEL):
    """One pallas_call for a ConvBlock (+ optional ConvTranspose / out-1x1 tail).

    xs_flat: list of (C_i, N) f32 flat activations (channel-concatenated order).
    """
    N = xs_flat[0].shape[1]
    C_ins = [int(x.shape[0]) for x in xs_flat]
    n_layers = len(block_params)
    C_out = block_params[0][0].shape[0]
    dilations = tuple(2 ** i for i in range(n_layers))
    assert max(d * (K - 1) // 2 for d in dilations) <= HALO
    residual = (len(xs_flat) == 1 and C_ins[0] == C_out)   # temp.size() == x.size()

    args = [mask] + list(xs_flat)
    in_specs = [pl.BlockSpec(mask.shape, lambda i: (0, 0))]
    in_specs += [pl.BlockSpec((c, N), lambda i: (0, 0)) for c in C_ins]

    for (w, b) in block_params:
        wp = _pack_conv_w(w)
        bp = b.astype(jnp.float32).reshape(-1, 1)
        args += [wp, bp]
        in_specs += [pl.BlockSpec(wp.shape, lambda i: (0, 0)),
                     pl.BlockSpec(bp.shape, lambda i: (0, 0))]

    if post == "convT":
        wt, bt = post_params
        wp, bp = _pack_convT(wt, bt)
        out_rows = wp.shape[0]
        args += [wp, bp]
        in_specs += [pl.BlockSpec(wp.shape, lambda i: (0, 0)),
                     pl.BlockSpec(bp.shape, lambda i: (0, 0))]
    elif post == "out1x1":
        wo, bo = post_params
        wp = wo[:, :, 0].astype(jnp.bfloat16)               # (1, H)
        bp = bo.astype(jnp.float32).reshape(-1, 1)
        out_rows = wp.shape[0]
        args += [wp, bp]
        in_specs += [pl.BlockSpec(wp.shape, lambda i: (0, 0)),
                     pl.BlockSpec(bp.shape, lambda i: (0, 0))]
    else:
        out_rows = C_out

    kernel = _make_fused_block_kernel(K, dilations, len(xs_flat), residual, post)
    return pl.pallas_call(
        kernel,
        out_shape=jax.ShapeDtypeStruct((out_rows, N), jnp.float32),
        grid=(1,),
        in_specs=in_specs,
        out_specs=pl.BlockSpec((out_rows, N), lambda i: (0, 0)),
        compiler_params=pltpu.CompilerParams(dimension_semantics=("arbitrary",)),
    )(*args)


# ------------------------------- XLA glue -----------------------------------

def maxpool1d_int(x, k, stride=2):
    # nn.MaxPool1d(k, stride=2, padding=k//2) on interior (C, B, L); -inf padding
    C, B, L = x.shape
    pad = k // 2
    xp = jnp.pad(x, ((0, 0), (0, 0), (pad, pad)), constant_values=-jnp.inf)
    L_out = (L + 2 * pad - k) // stride + 1
    taps = [xp[:, :, i:i + stride * (L_out - 1) + 1:stride] for i in range(k)]
    return jnp.max(jnp.stack(taps, axis=0), axis=0)


def _interleave_upsample(yT_flat, B, L_in):
    # (2C, B*Lp) stacked even/odd taps -> (C, B, 2*L_in) interior
    twoC, N = yT_flat.shape
    C = twoC // 2
    Lp = N // B
    y = yT_flat.reshape(2, C, B, Lp)[:, :, :, HALO:HALO + L_in]   # (2, C, B, L)
    return jnp.transpose(y, (1, 2, 3, 0)).reshape(C, B, 2 * L_in)


def linear_interp_int(x, out_size):
    # F.interpolate(mode='linear', align_corners=False) on interior (C, B, L)
    C, B, L = x.shape
    if L == out_size:
        return x        # exact-2x U-Net path: identity, no gather
    # TODO(synk): general path uses an XLA gather (TPU-slow); only hit for odd lengths.
    scale = L / out_size
    src = (jnp.arange(out_size, dtype=jnp.float32) + 0.5) * scale - 0.5
    src = jnp.clip(src, 0.0, float(L - 1))
    lo = jnp.floor(src).astype(jnp.int32)
    hi = jnp.minimum(lo + 1, L - 1)
    frac = src - lo.astype(jnp.float32)
    return x[..., lo] * (1.0 - frac) + x[..., hi] * frac


# ------------------------------ parameters ----------------------------------

def _init_conv(key, c_out, c_in, k):
    k1, k2 = jax.random.split(key)
    bound = 1.0 / math.sqrt(c_in * k)
    w = jax.random.uniform(k1, (c_out, c_in, k), jnp.float32, -bound, bound)
    b = jax.random.uniform(k2, (c_out,), jnp.float32, -bound, bound)
    return w, b


def _init_conv_block(key, c_in, c_out, k, n_layers):
    params = []
    for idx in range(n_layers):
        key, sub = jax.random.split(key)
        in_c = c_in if idx == 0 else c_out
        params.append(_init_conv(sub, c_out, in_c, k))
    return params


def init_wave_unet(key, hidden, k, layers, block_layers):
    keys = jax.random.split(key, 4 + layers)
    params = {}
    params["prev"] = _init_conv(keys[0], hidden, 1, 1)
    # nn.ModuleList([ConvBlock(...)] * layers) shares ONE module -> one param set
    params["down_block"] = _init_conv_block(keys[1], hidden, hidden, k, block_layers)
    ups = []
    for idx in range(layers):
        sub0, sub1 = jax.random.split(keys[2 + idx])
        in_c = hidden if idx == 0 else hidden * 2
        cb = _init_conv_block(sub0, in_c, hidden, k, block_layers)
        k1, k2 = jax.random.split(sub1)
        bound = 1.0 / math.sqrt(hidden * 2)
        wt = jax.random.uniform(k1, (hidden, hidden, 2), jnp.float32, -bound, bound)
        bt = jax.random.uniform(k2, (hidden,), jnp.float32, -bound, bound)
        ups.append((cb, (wt, bt)))
    params["up"] = ups
    params["out_block"] = _init_conv_block(keys[2 + layers], hidden * 2, hidden, k, block_layers)
    params["out_conv"] = _init_conv(keys[3 + layers], 1, hidden, 1)
    return params


# -------------------------------- forward -----------------------------------

def wave_unet_forward(params, wav, *, layers=LAYERS, k=KERNEL):
    B, T = wav.shape
    L = T
    Lp = _seg_len(L)
    mask = _interior_mask(B, L, Lp)

    x = _flatten(wav[None, :, :], Lp)                         # (1, N)
    w, b = params["prev"]
    x = prev_conv(x, w, b, mask)                              # (H, N)

    down_cache = []
    for _ in range(layers):
        x = fused_conv_block([x], params["down_block"], mask=mask)   # shared weights
        x_int = _unflatten(x, B, L)
        down_cache.append(x_int)
        pooled = maxpool1d_int(x_int, k, stride=2)
        L = pooled.shape[-1]
        Lp = _seg_len(L)
        mask = _interior_mask(B, L, Lp)
        x = _flatten(pooled, Lp)

    inputs = [x]
    for idx in range(layers):
        cb, (wt, bt) = params["up"][idx]
        yT = fused_conv_block(inputs, cb, mask=mask, post="convT", post_params=(wt, bt))
        up_int = _interleave_upsample(yT, B, L)               # (H, B, 2L)
        L = 2 * L
        Lp = _seg_len(L)
        mask = _interior_mask(B, L, Lp)
        skip_int = linear_interp_int(down_cache[layers - (idx + 1)], L)
        inputs = [_flatten(up_int, Lp), _flatten(skip_int, Lp)]   # concat fused in-kernel

    wo, bo = params["out_conv"]
    y = fused_conv_block(inputs, params["out_block"], mask=mask,
                         post="out1x1", post_params=(wo, bo))     # (1, N)
    y = _unflatten(y, B, L)[0]                                    # (B, L)

    size_diff = T - y.shape[-1]
    if size_diff > 0:
        y = jnp.pad(y, ((0, 0), (size_diff // 2, size_diff // 2)), mode="reflect")
    elif size_diff < 0:
        y = y[:, :T]
    return y


if __name__ == "__main__":
    key = jax.random.PRNGKey(0)
    pkey, dkey = jax.random.split(key)
    params = init_wave_unet(pkey, HIDDEN, KERNEL, LAYERS, BLOCK_LAYERS)
    wav = jax.random.normal(dkey, (2, 64), jnp.float32)       # (batch=2, samples=64)

    fwd = jax.jit(partial(wave_unet_forward, layers=LAYERS, k=KERNEL))
    out = fwd(params, wav)
    jax.block_until_ready(out)
    assert out.shape == (2, 64), out.shape
    assert jnp.all(jnp.isfinite(out))
    print("KERNEL_OK")
</pallas_src>

<mosaic_0001>
module attributes {stable_mosaic.version = 11 : i64} {
  func.func @kernel(%arg0: i32, %arg1: memref<1x256xf32, #tpu.memory_space<vmem>>, %arg2: memref<32x256xf32, #tpu.memory_space<vmem>>, %arg3: memref<32x96xbf16, #tpu.memory_space<vmem>>, %arg4: memref<32x1xf32, #tpu.memory_space<vmem>>, %arg5: memref<32x96xbf16, #tpu.memory_space<vmem>>, %arg6: memref<32x1xf32, #tpu.memory_space<vmem>>, %arg7: memref<32x256xf32, #tpu.memory_space<vmem>>) attributes {dimension_semantics = [#tpu.dimension_semantics<arbitrary>], iteration_bounds = array<i64: 1>, scalar_prefetch = 0 : i64, scratch_operands = 0 : i64, tpu.core_type = #tpu.core_type<tc>, window_params = [{pipeline_mode = #tpu.pipeline_mode<synchronous>, transform_indices = @transform_0, window_bounds = array<i64: 1, 256>}, {pipeline_mode = #tpu.pipeline_mode<synchronous>, transform_indices = @transform_1, window_bounds = array<i64: 32, 256>}, {pipeline_mode = #tpu.pipeline_mode<synchronous>, transform_indices = @transform_2, window_bounds = array<i64: 32, 96>}, {pipeline_mode = #tpu.pipeline_mode<synchronous>, transform_indices = @transform_3, window_bounds = array<i64: 32, 1>}, {pipeline_mode = #tpu.pipeline_mode<synchronous>, transform_indices = @transform_4, window_bounds = array<i64: 32, 96>}, {pipeline_mode = #tpu.pipeline_mode<synchronous>, transform_indices = @transform_5, window_bounds = array<i64: 32, 1>}, {pipeline_mode = #tpu.pipeline_mode<synchronous>, transform_indices = @transform_6, window_bounds = array<i64: 32, 256>}]} {
    %c0 = arith.constant 0 : index
    %c0_0 = arith.constant 0 : index
    %0 = vector.load %arg1[%c0, %c0_0] : memref<1x256xf32, #tpu.memory_space<vmem>>, vector<1x256xf32>
    %c0_1 = arith.constant 0 : index
    %c0_2 = arith.constant 0 : index
    %1 = vector.load %arg2[%c0_1, %c0_2] : memref<32x256xf32, #tpu.memory_space<vmem>>, vector<32x256xf32>
    %2 = math.tanh %1 : vector<32x256xf32>
    %3 = arith.truncf %2 : vector<32x256xf32> to vector<32x256xbf16>
    %cst = arith.constant 0.000000e+00 : bf16
    %4 = vector.broadcast %cst : bf16 to vector<32x1xbf16>
    %5 = vector.extract_strided_slice %3 {offsets = [0, 0], sizes = [32, 255], strides = [1, 1]} : vector<32x256xbf16> to vector<32x255xbf16>
    %6 = tpu.concatenate %4, %5 in 1 : vector<32x1xbf16>, vector<32x255xbf16> -> vector<32x256xbf16>
    %cst_3 = arith.constant 0.000000e+00 : bf16
    %7 = vector.broadcast %cst_3 : bf16 to vector<32x1xbf16>
    %8 = vector.extract_strided_slice %3 {offsets = [0, 1], sizes = [32, 255], strides = [1, 1]} : vector<32x256xbf16> to vector<32x255xbf16>
    %9 = tpu.concatenate %8, %7 in 1 : vector<32x255xbf16>, vector<32x1xbf16> -> vector<32x256xbf16>
    %10 = tpu.concatenate %6, %3, %9 in 0 : vector<32x256xbf16>, vector<32x256xbf16>, vector<32x256xbf16> -> vector<96x256xbf16>
    %c0_4 = arith.constant 0 : index
    %c0_5 = arith.constant 0 : index
    %11 = vector.load %arg3[%c0_4, %c0_5] : memref<32x96xbf16, #tpu.memory_space<vmem>>, vector<32x96xbf16>
    %cst_6 = arith.constant dense<0.000000e+00> : vector<32x256xf32>
    %12 = tpu.matmul %11, %10, %cst_6 {dimension_numbers = #tpu.dot_dimension_numbers<[1], [0], [0], [1], [0, 0, 1, 1], [], []>} : vector<32x96xbf16>, vector<96x256xbf16>, vector<32x256xf32> -> vector<32x256xf32>
    %c0_7 = arith.constant 0 : index
    %c0_8 = arith.constant 0 : index
    %13 = vector.load %arg4[%c0_7, %c0_8] : memref<32x1xf32, #tpu.memory_space<vmem>>, vector<32x1xf32>
    %14 = vector.broadcast %13 : vector<32x1xf32> to vector<32x256xf32>
    %15 = arith.addf %12, %14 : vector<32x256xf32>
    %16 = vector.broadcast %0 : vector<1x256xf32> to vector<32x256xf32>
    %17 = arith.mulf %15, %16 : vector<32x256xf32>
    %18 = math.tanh %17 : vector<32x256xf32>
    %19 = arith.truncf %18 : vector<32x256xf32> to vector<32x256xbf16>
    %cst_9 = arith.constant 0.000000e+00 : bf16
    %20 = vector.broadcast %cst_9 : bf16 to vector<32x2xbf16>
    %21 = vector.extract_strided_slice %19 {offsets = [0, 0], sizes = [32, 254], strides = [1, 1]} : vector<32x256xbf16> to vector<32x254xbf16>
    %22 = tpu.concatenate %20, %21 in 1 : vector<32x2xbf16>, vector<32x254xbf16> -> vector<32x256xbf16>
    %cst_10 = arith.constant 0.000000e+00 : bf16
    %23 = vector.broadcast %cst_10 : bf16 to vector<32x2xbf16>
    %24 = vector.extract_strided_slice %19 {offsets = [0, 2], sizes = [32, 254], strides = [1, 1]} : vector<32x256xbf16> to vector<32x254xbf16>
    %25 = tpu.concatenate %24, %23 in 1 : vector<32x254xbf16>, vector<32x2xbf16> -> vector<32x256xbf16>
    %26 = tpu.concatenate %22, %19, %25 in 0 : vector<32x256xbf16>, vector<32x256xbf16>, vector<32x256xbf16> -> vector<96x256xbf16>
    %c0_11 = arith.constant 0 : index
    %c0_12 = arith.constant 0 : index
    %27 = vector.load %arg5[%c0_11, %c0_12] : memref<32x96xbf16, #tpu.memory_space<vmem>>, vector<32x96xbf16>
    %cst_13 = arith.constant dense<0.000000e+00> : vector<32x256xf32>
    %28 = tpu.matmul %27, %26, %cst_13 {dimension_numbers = #tpu.dot_dimension_numbers<[1], [0], [0], [1], [0, 0, 1, 1], [], []>} : vector<32x96xbf16>, vector<96x256xbf16>, vector<32x256xf32> -> vector<32x256xf32>
    %c0_14 = arith.constant 0 : index
    %c0_15 = arith.constant 0 : index
    %29 = vector.load %arg6[%c0_14, %c0_15] : memref<32x1xf32, #tpu.memory_space<vmem>>, vector<32x1xf32>
    %30 = vector.broadcast %29 : vector<32x1xf32> to vector<32x256xf32>
    %31 = arith.addf %28, %30 : vector<32x256xf32>
    %32 = vector.broadcast %0 : vector<1x256xf32> to vector<32x256xf32>
    %33 = arith.mulf %31, %32 : vector<32x256xf32>
    %c0_16 = arith.constant 0 : index
    %c0_17 = arith.constant 0 : index
    %34 = vector.load %arg2[%c0_16, %c0_17] : memref<32x256xf32, #tpu.memory_space<vmem>>, vector<32x256xf32>
    %35 = arith.addf %33, %34 : vector<32x256xf32>
    %c0_18 = arith.constant 0 : index
    %c0_19 = arith.constant 0 : index
    %36 = vector.load %arg7[%c0_18, %c0_19] : memref<32x256xf32, #tpu.memory_space<vmem>>, vector<32x256xf32>
    tpu.vector_store %arg7[%c0_18, %c0_19], %35 {strides = array<i32>} : memref<32x256xf32, #tpu.memory_space<vmem>>, vector<32x256xf32>,
    return
  }
  func.func @transform_0(%arg0: i32) -> (i32, i32) {
    %c0_i32 = arith.constant 0 : i32
    %c0_i32_0 = arith.constant 0 : i32
    %c0_i32_1 = arith.constant 0 : i32
    return %c0_i32, %c0_i32_0 : i32, i32
  }
  func.func @transform_1(%arg0: i32) -> (i32, i32) {
    %c0_i32 = arith.constant 0 : i32
    %c0_i32_0 = arith.constant 0 : i32
    %c0_i32_1 = arith.constant 0 : i32
    return %c0_i32, %c0_i32_0 : i32, i32
  }
  func.func @transform_2(%arg0: i32) -> (i32, i32) {
    %c0_i32 = arith.constant 0 : i32
    %c0_i32_0 = arith.constant 0 : i32
    %c0_i32_1 = arith.constant 0 : i32
    return %c0_i32, %c0_i32_0 : i32, i32
  }
  func.func @transform_3(%arg0: i32) -> (i32, i32) {
    %c0_i32 = arith.constant 0 : i32
    %c0_i32_0 = arith.constant 0 : i32
    %c0_i32_1 = arith.constant 0 : i32
    return %c0_i32, %c0_i32_0 : i32, i32
  }
  func.func @transform_4(%arg0: i32) -> (i32, i32) {
    %c0_i32 = arith.constant 0 : i32
    %c0_i32_0 = arith.constant 0 : i32
    %c0_i32_1 = arith.constant 0 : i32
    return %c0_i32, %c0_i32_0 : i32, i32
  }
  func.func @transform_5(%arg0: i32) -> (i32, i32) {
    %c0_i32 = arith.constant 0 : i32
    %c0_i32_0 = arith.constant 0 : i32
    %c0_i32_1 = arith.constant 0 : i32
    return %c0_i32, %c0_i32_0 : i32, i32
  }
  func.func @transform_6(%arg0: i32) -> (i32, i32) {
    %c0_i32 = arith.constant 0 : i32
    %c0_i32_0 = arith.constant 0 : i32
    %c0_i32_1 = arith.constant 0 : i32
    return %c0_i32, %c0_i32_0 : i32, i32
  }
}

module attributes {stable_mosaic.version = 11 : i64} {
  func.func @_prev_conv_kernel(%arg0: i32, %arg1: memref<1x256xf32, #tpu.memory_space<vmem>>, %arg2: memref<1x256xf32, #tpu.memory_space<vmem>>, %arg3: memref<32x1xf32, #tpu.memory_space<vmem>>, %arg4: memref<32x1xf32, #tpu.memory_space<vmem>>, %arg5: memref<32x256xf32, #tpu.memory_space<vmem>>) attributes {dimension_semantics = [#tpu.dimension_semantics<arbitrary>], iteration_bounds = array<i64: 1>, scalar_prefetch = 0 : i64, scratch_operands = 0 : i64, tpu.core_type = #tpu.core_type<tc>, window_params = [{pipeline_mode = #tpu.pipeline_mode<synchronous>, transform_indices = @transform_0, window_bounds = array<i64: 1, 256>}, {pipeline_mode = #tpu.pipeline_mode<synchronous>, transform_indices = @transform_1, window_bounds = array<i64: 1, 256>}, {pipeline_mode = #tpu.pipeline_mode<synchronous>, transform_indices = @transform_2, window_bounds = array<i64: 32, 1>}, {pipeline_mode = #tpu.pipeline_mode<synchronous>, transform_indices = @transform_3, window_bounds = array<i64: 32, 1>}, {pipeline_mode = #tpu.pipeline_mode<synchronous>, transform_indices = @transform_4, window_bounds = array<i64: 32, 256>}]} {
    %c0 = arith.constant 0 : index
    %c0_0 = arith.constant 0 : index
    %0 = vector.load %arg2[%c0, %c0_0] : memref<1x256xf32, #tpu.memory_space<vmem>>, vector<1x256xf32>
    %c0_1 = arith.constant 0 : index
    %c0_2 = arith.constant 0 : index
    %1 = vector.load %arg3[%c0_1, %c0_2] : memref<32x1xf32, #tpu.memory_space<vmem>>, vector<32x1xf32>
    %2 = vector.broadcast %1 : vector<32x1xf32> to vector<32x256xf32>
    %3 = vector.broadcast %0 : vector<1x256xf32> to vector<32x256xf32>
    %4 = arith.mulf %2, %3 : vector<32x256xf32>
    %c0_3 = arith.constant 0 : index
    %c0_4 = arith.constant 0 : index
    %5 = vector.load %arg4[%c0_3, %c0_4] : memref<32x1xf32, #tpu.memory_space<vmem>>, vector<32x1xf32>
    %6 = vector.broadcast %5 : vector<32x1xf32> to vector<32x256xf32>
    %7 = arith.addf %4, %6 : vector<32x256xf32>
    %c0_5 = arith.constant 0 : index
    %c0_6 = arith.constant 0 : index
    %8 = vector.load %arg1[%c0_5, %c0_6] : memref<1x256xf32, #tpu.memory_space<vmem>>, vector<1x256xf32>
    %9 = vector.broadcast %8 : vector<1x256xf32> to vector<32x256xf32>
    %10 = arith.mulf %7, %9 : vector<32x256xf32>
    %c0_7 = arith.constant 0 : index
    %c0_8 = arith.constant 0 : index
    %11 = vector.load %arg5[%c0_7, %c0_8] : memref<32x256xf32, #tpu.memory_space<vmem>>, vector<32x256xf32>
    tpu.vector_store %arg5[%c0_7, %c0_8], %10 {strides = array<i32>} : memref<32x256xf32, #tpu.memory_space<vmem>>, vector<32x256xf32>,
    return
  }
  func.func @transform_0(%arg0: i32) -> (i32, i32) {
    %c0_i32 = arith.constant 0 : i32
    %c0_i32_0 = arith.constant 0 : i32
    %c0_i32_1 = arith.constant 0 : i32
    return %c0_i32, %c0_i32_0 : i32, i32
  }
  func.func @transform_1(%arg0: i32) -> (i32, i32) {
    %c0_i32 = arith.constant 0 : i32
    %c0_i32_0 = arith.constant 0 : i32
    %c0_i32_1 = arith.constant 0 : i32
    return %c0_i32, %c0_i32_0 : i32, i32
  }
  func.func @transform_2(%arg0: i32) -> (i32, i32) {
    %c0_i32 = arith.constant 0 : i32
    %c0_i32_0 = arith.constant 0 : i32
    %c0_i32_1 = arith.constant 0 : i32
    return %c0_i32, %c0_i32_0 : i32, i32
  }
  func.func @transform_3(%arg0: i32) -> (i32, i32) {
    %c0_i32 = arith.constant 0 : i32
    %c0_i32_0 = arith.constant 0 : i32
    %c0_i32_1 = arith.constant 0 : i32
    return %c0_i32, %c0_i32_0 : i32, i32
  }
  func.func @transform_4(%arg0: i32) -> (i32, i32) {
    %c0_i32 = arith.constant 0 : i32
    %c0_i32_0 = arith.constant 0 : i32
    %c0_i32_1 = arith.constant 0 : i32
    return %c0_i32, %c0_i32_0 : i32, i32
  }
}

module attributes {stable_mosaic.version = 11 : i64} {
  func.func @kernel(%arg0: i32, %arg1: memref<1x256xf32, #tpu.memory_space<vmem>>, %arg2: memref<32x256xf32, #tpu.memory_space<vmem>>, %arg3: memref<32x96xbf16, #tpu.memory_space<vmem>>, %arg4: memref<32x1xf32, #tpu.memory_space<vmem>>, %arg5: memref<32x96xbf16, #tpu.memory_space<vmem>>, %arg6: memref<32x1xf32, #tpu.memory_space<vmem>>, %arg7: memref<64x32xbf16, #tpu.memory_space<vmem>>, %arg8: memref<64x1xf32, #tpu.memory_space<vmem>>, %arg9: memref<64x256xf32, #tpu.memory_space<vmem>>) attributes {dimension_semantics = [#tpu.dimension_semantics<arbitrary>], iteration_bounds = array<i64: 1>, scalar_prefetch = 0 : i64, scratch_operands = 0 : i64, tpu.core_type = #tpu.core_type<tc>, window_params = [{pipeline_mode = #tpu.pipeline_mode<synchronous>, transform_indices = @transform_0, window_bounds = array<i64: 1, 256>}, {pipeline_mode = #tpu.pipeline_mode<synchronous>, transform_indices = @transform_1, window_bounds = array<i64: 32, 256>}, {pipeline_mode = #tpu.pipeline_mode<synchronous>, transform_indices = @transform_2, window_bounds = array<i64: 32, 96>}, {pipeline_mode = #tpu.pipeline_mode<synchronous>, transform_indices = @transform_3, window_bounds = array<i64: 32, 1>}, {pipeline_mode = #tpu.pipeline_mode<synchronous>, transform_indices = @transform_4, window_bounds = array<i64: 32, 96>}, {pipeline_mode = #tpu.pipeline_mode<synchronous>, transform_indices = @transform_5, window_bounds = array<i64: 32, 1>}, {pipeline_mode = #tpu.pipeline_mode<synchronous>, transform_indices = @transform_6, window_bounds = array<i64: 64, 32>}, {pipeline_mode = #tpu.pipeline_mode<synchronous>, transform_indices = @transform_7, window_bounds = array<i64: 64, 1>}, {pipeline_mode = #tpu.pipeline_mode<synchronous>, transform_indices = @transform_8, window_bounds = array<i64: 64, 256>}]} {
    %c0 = arith.constant 0 : index
    %c0_0 = arith.constant 0 : index
    %0 = vector.load %arg1[%c0, %c0_0] : memref<1x256xf32, #tpu.memory_space<vmem>>, vector<1x256xf32>
    %c0_1 = arith.constant 0 : index
    %c0_2 = arith.constant 0 : index
    %1 = vector.load %arg2[%c0_1, %c0_2] : memref<32x256xf32, #tpu.memory_space<vmem>>, vector<32x256xf32>
    %2 = math.tanh %1 : vector<32x256xf32>
    %3 = arith.truncf %2 : vector<32x256xf32> to vector<32x256xbf16>
    %cst = arith.constant 0.000000e+00 : bf16
    %4 = vector.broadcast %cst : bf16 to vector<32x1xbf16>
    %5 = vector.extract_strided_slice %3 {offsets = [0, 0], sizes = [32, 255], strides = [1, 1]} : vector<32x256xbf16> to vector<32x255xbf16>
    %6 = tpu.concatenate %4, %5 in 1 : vector<32x1xbf16>, vector<32x255xbf16> -> vector<32x256xbf16>
    %cst_3 = arith.constant 0.000000e+00 : bf16
    %7 = vector.broadcast %cst_3 : bf16 to vector<32x1xbf16>
    %8 = vector.extract_strided_slice %3 {offsets = [0, 1], sizes = [32, 255], strides = [1, 1]} : vector<32x256xbf16> to vector<32x255xbf16>
    %9 = tpu.concatenate %8, %7 in 1 : vector<32x255xbf16>, vector<32x1xbf16> -> vector<32x256xbf16>
    %10 = tpu.concatenate %6, %3, %9 in 0 : vector<32x256xbf16>, vector<32x256xbf16>, vector<32x256xbf16> -> vector<96x256xbf16>
    %c0_4 = arith.constant 0 : index
    %c0_5 = arith.constant 0 : index
    %11 = vector.load %arg3[%c0_4, %c0_5] : memref<32x96xbf16, #tpu.memory_space<vmem>>, vector<32x96xbf16>
    %cst_6 = arith.constant dense<0.000000e+00> : vector<32x256xf32>
    %12 = tpu.matmul %11, %10, %cst_6 {dimension_numbers = #tpu.dot_dimension_numbers<[1], [0], [0], [1], [0, 0, 1, 1], [], []>} : vector<32x96xbf16>, vector<96x256xbf16>, vector<32x256xf32> -> vector<32x256xf32>
    %c0_7 = arith.constant 0 : index
    %c0_8 = arith.constant 0 : index
    %13 = vector.load %arg4[%c0_7, %c0_8] : memref<32x1xf32, #tpu.memory_space<vmem>>, vector<32x1xf32>
    %14 = vector.broadcast %13 : vector<32x1xf32> to vector<32x256xf32>
    %15 = arith.addf %12, %14 : vector<32x256xf32>
    %16 = vector.broadcast %0 : vector<1x256xf32> to vector<32x256xf32>
    %17 = arith.mulf %15, %16 : vector<32x256xf32>
    %18 = math.tanh %17 : vector<32x256xf32>
    %19 = arith.truncf %18 : vector<32x256xf32> to vector<32x256xbf16>
    %cst_9 = arith.constant 0.000000e+00 : bf16
    %20 = vector.broadcast %cst_9 : bf16 to vector<32x2xbf16>
    %21 = vector.extract_strided_slice %19 {offsets = [0, 0], sizes = [32, 254], strides = [1, 1]} : vector<32x256xbf16> to vector<32x254xbf16>
    %22 = tpu.concatenate %20, %21 in 1 : vector<32x2xbf16>, vector<32x254xbf16> -> vector<32x256xbf16>
    %cst_10 = arith.constant 0.000000e+00 : bf16
    %23 = vector.broadcast %cst_10 : bf16 to vector<32x2xbf16>
    %24 = vector.extract_strided_slice %19 {offsets = [0, 2], sizes = [32, 254], strides = [1, 1]} : vector<32x256xbf16> to vector<32x254xbf16>
    %25 = tpu.concatenate %24, %23 in 1 : vector<32x254xbf16>, vector<32x2xbf16> -> vector<32x256xbf16>
    %26 = tpu.concatenate %22, %19, %25 in 0 : vector<32x256xbf16>, vector<32x256xbf16>, vector<32x256xbf16> -> vector<96x256xbf16>
    %c0_11 = arith.constant 0 : index
    %c0_12 = arith.constant 0 : index
    %27 = vector.load %arg5[%c0_11, %c0_12] : memref<32x96xbf16, #tpu.memory_space<vmem>>, vector<32x96xbf16>
    %cst_13 = arith.constant dense<0.000000e+00> : vector<32x256xf32>
    %28 = tpu.matmul %27, %26, %cst_13 {dimension_numbers = #tpu.dot_dimension_numbers<[1], [0], [0], [1], [0, 0, 1, 1], [], []>} : vector<32x96xbf16>, vector<96x256xbf16>, vector<32x256xf32> -> vector<32x256xf32>
    %c0_14 = arith.constant 0 : index
    %c0_15 = arith.constant 0 : index
    %29 = vector.load %arg6[%c0_14, %c0_15] : memref<32x1xf32, #tpu.memory_space<vmem>>, vector<32x1xf32>
    %30 = vector.broadcast %29 : vector<32x1xf32> to vector<32x256xf32>
    %31 = arith.addf %28, %30 : vector<32x256xf32>
    %32 = vector.broadcast %0 : vector<1x256xf32> to vector<32x256xf32>
    %33 = arith.mulf %31, %32 : vector<32x256xf32>
    %c0_16 = arith.constant 0 : index
    %c0_17 = arith.constant 0 : index
    %34 = vector.load %arg2[%c0_16, %c0_17] : memref<32x256xf32, #tpu.memory_space<vmem>>, vector<32x256xf32>
    %35 = arith.addf %33, %34 : vector<32x256xf32>
    %36 = math.tanh %35 : vector<32x256xf32>
    %37 = arith.truncf %36 : vector<32x256xf32> to vector<32x256xbf16>
    %c0_18 = arith.constant 0 : index
    %c0_19 = arith.constant 0 : index
    %38 = vector.load %arg7[%c0_18, %c0_19] : memref<64x32xbf16, #tpu.memory_space<vmem>>, vector<64x32xbf16>
    %cst_20 = arith.constant dense<0.000000e+00> : vector<64x256xf32>
    %39 = tpu.matmul %38, %37, %cst_20 {dimension_numbers = #tpu.dot_dimension_numbers<[1], [0], [0], [1], [0, 0, 1, 1], [], []>} : vector<64x32xbf16>, vector<32x256xbf16>, vector<64x256xf32> -> vector<64x256xf32>
    %c0_21 = arith.constant 0 : index
    %c0_22 = arith.constant 0 : index
    %40 = vector.load %arg8[%c0_21, %c0_22] : memref<64x1xf32, #tpu.memory_space<vmem>>, vector<64x1xf32>
    %41 = vector.broadcast %40 : vector<64x1xf32> to vector<64x256xf32>
    %42 = arith.addf %39, %41 : vector<64x256xf32>
    %c0_23 = arith.constant 0 : index
    %c0_24 = arith.constant 0 : index
    %43 = vector.load %arg9[%c0_23, %c0_24] : memref<64x256xf32, #tpu.memory_space<vmem>>, vector<64x256xf32>
    tpu.vector_store %arg9[%c0_23, %c0_24], %42 {strides = array<i32>} : memref<64x256xf32, #tpu.memory_space<vmem>>, vector<64x256xf32>,
    return
  }
  func.func @transform_0(%arg0: i32) -> (i32, i32) {
    %c0_i32 = arith.constant 0 : i32
    %c0_i32_0 = arith.constant 0 : i32
    %c0_i32_1 = arith.constant 0 : i32
    return %c0_i32, %c0_i32_0 : i32, i32
  }
  func.func @transform_1(%arg0: i32) -> (i32, i32) {
    %c0_i32 = arith.constant 0 : i32
    %c0_i32_0 = arith.constant 0 : i32
    %c0_i32_1 = arith.constant 0 : i32
    return %c0_i32, %c0_i32_0 : i32, i32
  }
  func.func @transform_2(%arg0: i32) -> (i32, i32) {
    %c0_i32 = arith.constant 0 : i32
    %c0_i32_0 = arith.constant 0 : i32
    %c0_i32_1 = arith.constant 0 : i32
    return %c0_i32, %c0_i32_0 : i32, i32
  }
  func.func @transform_3(%arg0: i32) -> (i32, i32) {
    %c0_i32 = arith.constant 0 : i32
    %c0_i32_0 = arith.constant 0 : i32
    %c0_i32_1 = arith.constant 0 : i32
    return %c0_i32, %c0_i32_0 : i32, i32
  }
  func.func @transform_4(%arg0: i32) -> (i32, i32) {
    %c0_i32 = arith.constant 0 : i32
    %c0_i32_0 = arith.constant 0 : i32
    %c0_i32_1 = arith.constant 0 : i32
    return %c0_i32, %c0_i32_0 : i32, i32
  }
  func.func @transform_5(%arg0: i32) -> (i32, i32) {
    %c0_i32 = arith.constant 0 : i32
    %c0_i32_0 = arith.constant 0 : i32
    %c0_i32_1 = arith.constant 0 : i32
    return %c0_i32, %c0_i32_0 : i32, i32
  }
  func.func @transform_6(%arg0: i32) -> (i32, i32) {
    %c0_i32 = arith.constant 0 : i32
    %c0_i32_0 = arith.constant 0 : i32
    %c0_i32_1 = arith.constant 0 : i32
    return %c0_i32, %c0_i32_0 : i32, i32
  }
  func.func @transform_7(%arg0: i32) -> (i32, i32) {
    %c0_i32 = arith.constant 0 : i32
    %c0_i32_0 = arith.constant 0 : i32
    %c0_i32_1 = arith.constant 0 : i32
    return %c0_i32, %c0_i32_0 : i32, i32
  }
  func.func @transform_8(%arg0: i32) -> (i32, i32) {
    %c0_i32 = arith.constant 0 : i32
    %c0_i32_0 = arith.constant 0 : i32
    %c0_i32_1 = arith.constant 0 : i32
    return %c0_i32, %c0_i32_0 : i32, i32
  }
}

module attributes {stable_mosaic.version = 11 : i64} {
  func.func @kernel(%arg0: i32, %arg1: memref<1x256xf32, #tpu.memory_space<vmem>>, %arg2: memref<32x256xf32, #tpu.memory_space<vmem>>, %arg3: memref<32x256xf32, #tpu.memory_space<vmem>>, %arg4: memref<32x192xbf16, #tpu.memory_space<vmem>>, %arg5: memref<32x1xf32, #tpu.memory_space<vmem>>, %arg6: memref<32x96xbf16, #tpu.memory_space<vmem>>, %arg7: memref<32x1xf32, #tpu.memory_space<vmem>>, %arg8: memref<64x32xbf16, #tpu.memory_space<vmem>>, %arg9: memref<64x1xf32, #tpu.memory_space<vmem>>, %arg10: memref<64x256xf32, #tpu.memory_space<vmem>>) attributes {dimension_semantics = [#tpu.dimension_semantics<arbitrary>], iteration_bounds = array<i64: 1>, scalar_prefetch = 0 : i64, scratch_operands = 0 : i64, tpu.core_type = #tpu.core_type<tc>, window_params = [{pipeline_mode = #tpu.pipeline_mode<synchronous>, transform_indices = @transform_0, window_bounds = array<i64: 1, 256>}, {pipeline_mode = #tpu.pipeline_mode<synchronous>, transform_indices = @transform_1, window_bounds = array<i64: 32, 256>}, {pipeline_mode = #tpu.pipeline_mode<synchronous>, transform_indices = @transform_2, window_bounds = array<i64: 32, 256>}, {pipeline_mode = #tpu.pipeline_mode<synchronous>, transform_indices = @transform_3, window_bounds = array<i64: 32, 192>}, {pipeline_mode = #tpu.pipeline_mode<synchronous>, transform_indices = @transform_4, window_bounds = array<i64: 32, 1>}, {pipeline_mode = #tpu.pipeline_mode<synchronous>, transform_indices = @transform_5, window_bounds = array<i64: 32, 96>}, {pipeline_mode = #tpu.pipeline_mode<synchronous>, transform_indices = @transform_6, window_bounds = array<i64: 32, 1>}, {pipeline_mode = #tpu.pipeline_mode<synchronous>, transform_indices = @transform_7, window_bounds = array<i64: 64, 32>}, {pipeline_mode = #tpu.pipeline_mode<synchronous>, transform_indices = @transform_8, window_bounds = array<i64: 64, 1>}, {pipeline_mode = #tpu.pipeline_mode<synchronous>, transform_indices = @transform_9, window_bounds = array<i64: 64, 256>}]} {
    %c0 = arith.constant 0 : index
    %c0_0 = arith.constant 0 : index
    %0 = vector.load %arg1[%c0, %c0_0] : memref<1x256xf32, #tpu.memory_space<vmem>>, vector<1x256xf32>
    %c0_1 = arith.constant 0 : index
    %c0_2 = arith.constant 0 : index
    %1 = vector.load %arg2[%c0_1, %c0_2] : memref<32x256xf32, #tpu.memory_space<vmem>>, vector<32x256xf32>
    %2 = math.tanh %1 : vector<32x256xf32>
    %3 = arith.truncf %2 : vector<32x256xf32> to vector<32x256xbf16>
    %c0_3 = arith.constant 0 : index
    %c0_4 = arith.constant 0 : index
    %4 = vector.load %arg3[%c0_3, %c0_4] : memref<32x256xf32, #tpu.memory_space<vmem>>, vector<32x256xf32>
    %5 = math.tanh %4 : vector<32x256xf32>
    %6 = arith.truncf %5 : vector<32x256xf32> to vector<32x256xbf16>
    %cst = arith.constant 0.000000e+00 : bf16
    %7 = vector.broadcast %cst : bf16 to vector<32x1xbf16>
    %8 = vector.extract_strided_slice %3 {offsets = [0, 0], sizes = [32, 255], strides = [1, 1]} : vector<32x256xbf16> to vector<32x255xbf16>
    %9 = tpu.concatenate %7, %8 in 1 : vector<32x1xbf16>, vector<32x255xbf16> -> vector<32x256xbf16>
    %cst_5 = arith.constant 0.000000e+00 : bf16
    %10 = vector.broadcast %cst_5 : bf16 to vector<32x1xbf16>
    %11 = vector.extract_strided_slice %6 {offsets = [0, 0], sizes = [32, 255], strides = [1, 1]} : vector<32x256xbf16> to vector<32x255xbf16>
    %12 = tpu.concatenate %10, %11 in 1 : vector<32x1xbf16>, vector<32x255xbf16> -> vector<32x256xbf16>
    %cst_6 = arith.constant 0.000000e+00 : bf16
    %13 = vector.broadcast %cst_6 : bf16 to vector<32x1xbf16>
    %14 = vector.extract_strided_slice %3 {offsets = [0, 1], sizes = [32, 255], strides = [1, 1]} : vector<32x256xbf16> to vector<32x255xbf16>
    %15 = tpu.concatenate %14, %13 in 1 : vector<32x255xbf16>, vector<32x1xbf16> -> vector<32x256xbf16>
    %cst_7 = arith.constant 0.000000e+00 : bf16
    %16 = vector.broadcast %cst_7 : bf16 to vector<32x1xbf16>
    %17 = vector.extract_strided_slice %6 {offsets = [0, 1], sizes = [32, 255], strides = [1, 1]} : vector<32x256xbf16> to vector<32x255xbf16>
    %18 = tpu.concatenate %17, %16 in 1 : vector<32x255xbf16>, vector<32x1xbf16> -> vector<32x256xbf16>
    %19 = tpu.concatenate %9, %12, %3, %6, %15, %18 in 0 : vector<32x256xbf16>, vector<32x256xbf16>, vector<32x256xbf16>, vector<32x256xbf16>, vector<32x256xbf16>, vector<32x256xbf16> -> vector<192x256xbf16>
    %c0_8 = arith.constant 0 : index
    %c0_9 = arith.constant 0 : index
    %20 = vector.load %arg4[%c0_8, %c0_9] : memref<32x192xbf16, #tpu.memory_space<vmem>>, vector<32x192xbf16>
    %cst_10 = arith.constant dense<0.000000e+00> : vector<32x256xf32>
    %21 = tpu.matmul %20, %19, %cst_10 {dimension_numbers = #tpu.dot_dimension_numbers<[1], [0], [0], [1], [0, 0, 1, 1], [], []>} : vector<32x192xbf16>, vector<192x256xbf16>, vector<32x256xf32> -> vector<32x256xf32>
    %c0_11 = arith.constant 0 : index
    %c0_12 = arith.constant 0 : index
    %22 = vector.load %arg5[%c0_11, %c0_12] : memref<32x1xf32, #tpu.memory_space<vmem>>, vector<32x1xf32>
    %23 = vector.broadcast %22 : vector<32x1xf32> to vector<32x256xf32>
    %24 = arith.addf %21, %23 : vector<32x256xf32>
    %25 = vector.broadcast %0 : vector<1x256xf32> to vector<32x256xf32>
    %26 = arith.mulf %24, %25 : vector<32x256xf32>
    %27 = math.tanh %26 : vector<32x256xf32>
    %28 = arith.truncf %27 : vector<32x256xf32> to vector<32x256xbf16>
    %cst_13 = arith.constant 0.000000e+00 : bf16
    %29 = vector.broadcast %cst_13 : bf16 to vector<32x2xbf16>
    %30 = vector.extract_strided_slice %28 {offsets = [0, 0], sizes = [32, 254], strides = [1, 1]} : vector<32x256xbf16> to vector<32x254xbf16>
    %31 = tpu.concatenate %29, %30 in 1 : vector<32x2xbf16>, vector<32x254xbf16> -> vector<32x256xbf16>
    %cst_14 = arith.constant 0.000000e+00 : bf16
    %32 = vector.broadcast %cst_14 : bf16 to vector<32x2xbf16>
    %33 = vector.extract_strided_slice %28 {offsets = [0, 2], sizes = [32, 254], strides = [1, 1]} : vector<32x256xbf16> to vector<32x254xbf16>
    %34 = tpu.concatenate %33, %32 in 1 : vector<32x254xbf16>, vector<32x2xbf16> -> vector<32x256xbf16>
    %35 = tpu.concatenate %31, %28, %34 in 0 : vector<32x256xbf16>, vector<32x256xbf16>, vector<32x256xbf16> -> vector<96x256xbf16>
    %c0_15 = arith.constant 0 : index
    %c0_16 = arith.constant 0 : index
    %36 = vector.load %arg6[%c0_15, %c0_16] : memref<32x96xbf16, #tpu.memory_space<vmem>>, vector<32x96xbf16>
    %cst_17 = arith.constant dense<0.000000e+00> : vector<32x256xf32>
    %37 = tpu.matmul %36, %35, %cst_17 {dimension_numbers = #tpu.dot_dimension_numbers<[1], [0], [0], [1], [0, 0, 1, 1], [], []>} : vector<32x96xbf16>, vector<96x256xbf16>, vector<32x256xf32> -> vector<32x256xf32>
    %c0_18 = arith.constant 0 : index
    %c0_19 = arith.constant 0 : index
    %38 = vector.load %arg7[%c0_18, %c0_19] : memref<32x1xf32, #tpu.memory_space<vmem>>, vector<32x1xf32>
    %39 = vector.broadcast %38 : vector<32x1xf32> to vector<32x256xf32>
    %40 = arith.addf %37, %39 : vector<32x256xf32>
    %41 = vector.broadcast %0 : vector<1x256xf32> to vector<32x256xf32>
    %42 = arith.mulf %40, %41 : vector<32x256xf32>
    %43 = math.tanh %42 : vector<32x256xf32>
    %44 = arith.truncf %43 : vector<32x256xf32> to vector<32x256xbf16>
    %c0_20 = arith.constant 0 : index
    %c0_21 = arith.constant 0 : index
    %45 = vector.load %arg8[%c0_20, %c0_21] : memref<64x32xbf16, #tpu.memory_space<vmem>>, vector<64x32xbf16>
    %cst_22 = arith.constant dense<0.000000e+00> : vector<64x256xf32>
    %46 = tpu.matmul %45, %44, %cst_22 {dimension_numbers = #tpu.dot_dimension_numbers<[1], [0], [0], [1], [0, 0, 1, 1], [], []>} : vector<64x32xbf16>, vector<32x256xbf16>, vector<64x256xf32> -> vector<64x256xf32>
    %c0_23 = arith.constant 0 : index
    %c0_24 = arith.constant 0 : index
    %47 = vector.load %arg9[%c0_23, %c0_24] : memref<64x1xf32, #tpu.memory_space<vmem>>, vector<64x1xf32>
    %48 = vector.broadcast %47 : vector<64x1xf32> to vector<64x256xf32>
    %49 = arith.addf %46, %48 : vector<64x256xf32>
    %c0_25 = arith.constant 0 : index
    %c0_26 = arith.constant 0 : index
    %50 = vector.load %arg10[%c0_25, %c0_26] : memref<64x256xf32, #tpu.memory_space<vmem>>, vector<64x256xf32>
    tpu.vector_store %arg10[%c0_25, %c0_26], %49 {strides = array<i32>} : memref<64x256xf32, #tpu.memory_space<vmem>>, vector<64x256xf32>,
    return
  }
  func.func @transform_0(%arg0: i32) -> (i32, i32) {
    %c0_i32 = arith.constant 0 : i32
    %c0_i32_0 = arith.constant 0 : i32
    %c0_i32_1 = arith.constant 0 : i32
    return %c0_i32, %c0_i32_0 : i32, i32
  }
  func.func @transform_1(%arg0: i32) -> (i32, i32) {
    %c0_i32 = arith.constant 0 : i32
    %c0_i32_0 = arith.constant 0 : i32
    %c0_i32_1 = arith.constant 0 : i32
    return %c0_i32, %c0_i32_0 : i32, i32
  }
  func.func @transform_2(%arg0: i32) -> (i32, i32) {
    %c0_i32 = arith.constant 0 : i32
    %c0_i32_0 = arith.constant 0 : i32
    %c0_i32_1 = arith.constant 0 : i32
    return %c0_i32, %c0_i32_0 : i32, i32
  }
  func.func @transform_3(%arg0: i32) -> (i32, i32) {
    %c0_i32 = arith.constant 0 : i32
    %c0_i32_0 = arith.constant 0 : i32
    %c0_i32_1 = arith.constant 0 : i32
    return %c0_i32, %c0_i32_0 : i32, i32
  }
  func.func @transform_4(%arg0: i32) -> (i32, i32) {
    %c0_i32 = arith.constant 0 : i32
    %c0_i32_0 = arith.constant 0 : i32
    %c0_i32_1 = arith.constant 0 : i32
    return %c0_i32, %c0_i32_0 : i32, i32
  }
  func.func @transform_5(%arg0: i32) -> (i32, i32) {
    %c0_i32 = arith.constant 0 : i32
    %c0_i32_0 = arith.constant 0 : i32
    %c0_i32_1 = arith.constant 0 : i32
    return %c0_i32, %c0_i32_0 : i32, i32
  }
  func.func @transform_6(%arg0: i32) -> (i32, i32) {
    %c0_i32 = arith.constant 0 : i32
    %c0_i32_0 = arith.constant 0 : i32
    %c0_i32_1 = arith.constant 0 : i32
    return %c0_i32, %c0_i32_0 : i32, i32
  }
  func.func @transform_7(%arg0: i32) -> (i32, i32) {
    %c0_i32 = arith.constant 0 : i32
    %c0_i32_0 = arith.constant 0 : i32
    %c0_i32_1 = arith.constant 0 : i32
    return %c0_i32, %c0_i32_0 : i32, i32
  }
  func.func @transform_8(%arg0: i32) -> (i32, i32) {
    %c0_i32 = arith.constant 0 : i32
    %c0_i32_0 = arith.constant 0 : i32
    %c0_i32_1 = arith.constant 0 : i32
    return %c0_i32, %c0_i32_0 : i32, i32
  }
  func.func @transform_9(%arg0: i32) -> (i32, i32) {
    %c0_i32 = arith.constant 0 : i32
    %c0_i32_0 = arith.constant 0 : i32
    %c0_i32_1 = arith.constant 0 : i32
    return %c0_i32, %c0_i32_0 : i32, i32
  }
}

module attributes {stable_mosaic.version = 11 : i64} {
  func.func @kernel(%arg0: i32, %arg1: memref<1x256xf32, #tpu.memory_space<vmem>>, %arg2: memref<32x256xf32, #tpu.memory_space<vmem>>, %arg3: memref<32x256xf32, #tpu.memory_space<vmem>>, %arg4: memref<32x192xbf16, #tpu.memory_space<vmem>>, %arg5: memref<32x1xf32, #tpu.memory_space<vmem>>, %arg6: memref<32x96xbf16, #tpu.memory_space<vmem>>, %arg7: memref<32x1xf32, #tpu.memory_space<vmem>>, %arg8: memref<1x32xbf16, #tpu.memory_space<vmem>>, %arg9: memref<1x1xf32, #tpu.memory_space<vmem>>, %arg10: memref<1x256xf32, #tpu.memory_space<vmem>>) attributes {dimension_semantics = [#tpu.dimension_semantics<arbitrary>], iteration_bounds = array<i64: 1>, scalar_prefetch = 0 : i64, scratch_operands = 0 : i64, tpu.core_type = #tpu.core_type<tc>, window_params = [{pipeline_mode = #tpu.pipeline_mode<synchronous>, transform_indices = @transform_0, window_bounds = array<i64: 1, 256>}, {pipeline_mode = #tpu.pipeline_mode<synchronous>, transform_indices = @transform_1, window_bounds = array<i64: 32, 256>}, {pipeline_mode = #tpu.pipeline_mode<synchronous>, transform_indices = @transform_2, window_bounds = array<i64: 32, 256>}, {pipeline_mode = #tpu.pipeline_mode<synchronous>, transform_indices = @transform_3, window_bounds = array<i64: 32, 192>}, {pipeline_mode = #tpu.pipeline_mode<synchronous>, transform_indices = @transform_4, window_bounds = array<i64: 32, 1>}, {pipeline_mode = #tpu.pipeline_mode<synchronous>, transform_indices = @transform_5, window_bounds = array<i64: 32, 96>}, {pipeline_mode = #tpu.pipeline_mode<synchronous>, transform_indices = @transform_6, window_bounds = array<i64: 32, 1>}, {pipeline_mode = #tpu.pipeline_mode<synchronous>, transform_indices = @transform_7, window_bounds = array<i64: 1, 32>}, {pipeline_mode = #tpu.pipeline_mode<synchronous>, transform_indices = @transform_8, window_bounds = array<i64: 1, 1>}, {pipeline_mode = #tpu.pipeline_mode<synchronous>, transform_indices = @transform_9, window_bounds = array<i64: 1, 256>}]} {
    %c0 = arith.constant 0 : index
    %c0_0 = arith.constant 0 : index
    %0 = vector.load %arg1[%c0, %c0_0] : memref<1x256xf32, #tpu.memory_space<vmem>>, vector<1x256xf32>
    %c0_1 = arith.constant 0 : index
    %c0_2 = arith.constant 0 : index
    %1 = vector.load %arg2[%c0_1, %c0_2] : memref<32x256xf32, #tpu.memory_space<vmem>>, vector<32x256xf32>
    %2 = math.tanh %1 : vector<32x256xf32>
    %3 = arith.truncf %2 : vector<32x256xf32> to vector<32x256xbf16>
    %c0_3 = arith.constant 0 : index
    %c0_4 = arith.constant 0 : index
    %4 = vector.load %arg3[%c0_3, %c0_4] : memref<32x256xf32, #tpu.memory_space<vmem>>, vector<32x256xf32>
    %5 = math.tanh %4 : vector<32x256xf32>
    %6 = arith.truncf %5 : vector<32x256xf32> to vector<32x256xbf16>
    %cst = arith.constant 0.000000e+00 : bf16
    %7 = vector.broadcast %cst : bf16 to vector<32x1xbf16>
    %8 = vector.extract_strided_slice %3 {offsets = [0, 0], sizes = [32, 255], strides = [1, 1]} : vector<32x256xbf16> to vector<32x255xbf16>
    %9 = tpu.concatenate %7, %8 in 1 : vector<32x1xbf16>, vector<32x255xbf16> -> vector<32x256xbf16>
    %cst_5 = arith.constant 0.000000e+00 : bf16
    %10 = vector.broadcast %cst_5 : bf16 to vector<32x1xbf16>
    %11 = vector.extract_strided_slice %6 {offsets = [0, 0], sizes = [32, 255], strides = [1, 1]} : vector<32x256xbf16> to vector<32x255xbf16>
    %12 = tpu.concatenate %10, %11 in 1 : vector<32x1xbf16>, vector<32x255xbf16> -> vector<32x256xbf16>
    %cst_6 = arith.constant 0.000000e+00 : bf16
    %13 = vector.broadcast %cst_6 : bf16 to vector<32x1xbf16>
    %14 = vector.extract_strided_slice %3 {offsets = [0, 1], sizes = [32, 255], strides = [1, 1]} : vector<32x256xbf16> to vector<32x255xbf16>
    %15 = tpu.concatenate %14, %13 in 1 : vector<32x255xbf16>, vector<32x1xbf16> -> vector<32x256xbf16>
    %cst_7 = arith.constant 0.000000e+00 : bf16
    %16 = vector.broadcast %cst_7 : bf16 to vector<32x1xbf16>
    %17 = vector.extract_strided_slice %6 {offsets = [0, 1], sizes = [32, 255], strides = [1, 1]} : vector<32x256xbf16> to vector<32x255xbf16>
    %18 = tpu.concatenate %17, %16 in 1 : vector<32x255xbf16>, vector<32x1xbf16> -> vector<32x256xbf16>
    %19 = tpu.concatenate %9, %12, %3, %6, %15, %18 in 0 : vector<32x256xbf16>, vector<32x256xbf16>, vector<32x256xbf16>, vector<32x256xbf16>, vector<32x256xbf16>, vector<32x256xbf16> -> vector<192x256xbf16>
    %c0_8 = arith.constant 0 : index
    %c0_9 = arith.constant 0 : index
    %20 = vector.load %arg4[%c0_8, %c0_9] : memref<32x192xbf16, #tpu.memory_space<vmem>>, vector<32x192xbf16>
    %cst_10 = arith.constant dense<0.000000e+00> : vector<32x256xf32>
    %21 = tpu.matmul %20, %19, %cst_10 {dimension_numbers = #tpu.dot_dimension_numbers<[1], [0], [0], [1], [0, 0, 1, 1], [], []>} : vector<32x192xbf16>, vector<192x256xbf16>, vector<32x256xf32> -> vector<32x256xf32>
    %c0_11 = arith.constant 0 : index
    %c0_12 = arith.constant 0 : index
    %22 = vector.load %arg5[%c0_11, %c0_12] : memref<32x1xf32, #tpu.memory_space<vmem>>, vector<32x1xf32>
    %23 = vector.broadcast %22 : vector<32x1xf32> to vector<32x256xf32>
    %24 = arith.addf %21, %23 : vector<32x256xf32>
    %25 = vector.broadcast %0 : vector<1x256xf32> to vector<32x256xf32>
    %26 = arith.mulf %24, %25 : vector<32x256xf32>
    %27 = math.tanh %26 : vector<32x256xf32>
    %28 = arith.truncf %27 : vector<32x256xf32> to vector<32x256xbf16>
    %cst_13 = arith.constant 0.000000e+00 : bf16
    %29 = vector.broadcast %cst_13 : bf16 to vector<32x2xbf16>
    %30 = vector.extract_strided_slice %28 {offsets = [0, 0], sizes = [32, 254], strides = [1, 1]} : vector<32x256xbf16> to vector<32x254xbf16>
    %31 = tpu.concatenate %29, %30 in 1 : vector<32x2xbf16>, vector<32x254xbf16> -> vector<32x256xbf16>
    %cst_14 = arith.constant 0.000000e+00 : bf16
    %32 = vector.broadcast %cst_14 : bf16 to vector<32x2xbf16>
    %33 = vector.extract_strided_slice %28 {offsets = [0, 2], sizes = [32, 254], strides = [1, 1]} : vector<32x256xbf16> to vector<32x254xbf16>
    %34 = tpu.concatenate %33, %32 in 1 : vector<32x254xbf16>, vector<32x2xbf16> -> vector<32x256xbf16>
    %35 = tpu.concatenate %31, %28, %34 in 0 : vector<32x256xbf16>, vector<32x256xbf16>, vector<32x256xbf16> -> vector<96x256xbf16>
    %c0_15 = arith.constant 0 : index
    %c0_16 = arith.constant 0 : index
    %36 = vector.load %arg6[%c0_15, %c0_16] : memref<32x96xbf16, #tpu.memory_space<vmem>>, vector<32x96xbf16>
    %cst_17 = arith.constant dense<0.000000e+00> : vector<32x256xf32>
    %37 = tpu.matmul %36, %35, %cst_17 {dimension_numbers = #tpu.dot_dimension_numbers<[1], [0], [0], [1], [0, 0, 1, 1], [], []>} : vector<32x96xbf16>, vector<96x256xbf16>, vector<32x256xf32> -> vector<32x256xf32>
    %c0_18 = arith.constant 0 : index
    %c0_19 = arith.constant 0 : index
    %38 = vector.load %arg7[%c0_18, %c0_19] : memref<32x1xf32, #tpu.memory_space<vmem>>, vector<32x1xf32>
    %39 = vector.broadcast %38 : vector<32x1xf32> to vector<32x256xf32>
    %40 = arith.addf %37, %39 : vector<32x256xf32>
    %41 = vector.broadcast %0 : vector<1x256xf32> to vector<32x256xf32>
    %42 = arith.mulf %40, %41 : vector<32x256xf32>
    %43 = math.tanh %42 : vector<32x256xf32>
    %44 = arith.truncf %43 : vector<32x256xf32> to vector<32x256xbf16>
    %c0_20 = arith.constant 0 : index
    %c0_21 = arith.constant 0 : index
    %45 = vector.load %arg8[%c0_20, %c0_21] : memref<1x32xbf16, #tpu.memory_space<vmem>>, vector<1x32xbf16>
    %cst_22 = arith.constant dense<0.000000e+00> : vector<1x256xf32>
    %46 = tpu.matmul %45, %44, %cst_22 {dimension_numbers = #tpu.dot_dimension_numbers<[1], [0], [0], [1], [0, 0, 1, 1], [], []>} : vector<1x32xbf16>, vector<32x256xbf16>, vector<1x256xf32> -> vector<1x256xf32>
    %c0_23 = arith.constant 0 : index
    %c0_24 = arith.constant 0 : index
    %47 = vector.load %arg9[%c0_23, %c0_24] : memref<1x1xf32, #tpu.memory_space<vmem>>, vector<1x1xf32>
    %48 = vector.broadcast %47 : vector<1x1xf32> to vector<1x256xf32>
    %49 = arith.addf %46, %48 : vector<1x256xf32>
    %50 = math.tanh %49 : vector<1x256xf32>
    %c0_25 = arith.constant 0 : index
    %c0_26 = arith.constant 0 : index
    %51 = vector.load %arg10[%c0_25, %c0_26] : memref<1x256xf32, #tpu.memory_space<vmem>>, vector<1x256xf32>
    tpu.vector_store %arg10[%c0_25, %c0_26], %50 {strides = array<i32>} : memref<1x256xf32, #tpu.memory_space<vmem>>, vector<1x256xf32>,
    return
  }
  func.func @transform_0(%arg0: i32) -> (i32, i32) {
    %c0_i32 = arith.constant 0 : i32
    %c0_i32_0 = arith.constant 0 : i32
    %c0_i32_1 = arith.constant 0 : i32
    return %c0_i32, %c0_i32_0 : i32, i32
  }
  func.func @transform_1(%arg0: i32) -> (i32, i32) {
    %c0_i32 = arith.constant 0 : i32
    %c0_i32_0 = arith.constant 0 : i32
    %c0_i32_1 = arith.constant 0 : i32
    return %c0_i32, %c0_i32_0 : i32, i32
  }
  func.func @transform_2(%arg0: i32) -> (i32, i32) {
    %c0_i32 = arith.constant 0 : i32
    %c0_i32_0 = arith.constant 0 : i32
    %c0_i32_1 = arith.constant 0 : i32
    return %c0_i32, %c0_i32_0 : i32, i32
  }
  func.func @transform_3(%arg0: i32) -> (i32, i32) {
    %c0_i32 = arith.constant 0 : i32
    %c0_i32_0 = arith.constant 0 : i32
    %c0_i32_1 = arith.constant 0 : i32
    return %c0_i32, %c0_i32_0 : i32, i32
  }
  func.func @transform_4(%arg0: i32) -> (i32, i32) {
    %c0_i32 = arith.constant 0 : i32
    %c0_i32_0 = arith.constant 0 : i32
    %c0_i32_1 = arith.constant 0 : i32
    return %c0_i32, %c0_i32_0 : i32, i32
  }
  func.func @transform_5(%arg0: i32) -> (i32, i32) {
    %c0_i32 = arith.constant 0 : i32
    %c0_i32_0 = arith.constant 0 : i32
    %c0_i32_1 = arith.constant 0 : i32
    return %c0_i32, %c0_i32_0 : i32, i32
  }
  func.func @transform_6(%arg0: i32) -> (i32, i32) {
    %c0_i32 = arith.constant 0 : i32
    %c0_i32_0 = arith.constant 0 : i32
    %c0_i32_1 = arith.constant 0 : i32
    return %c0_i32, %c0_i32_0 : i32, i32
  }
  func.func @transform_7(%arg0: i32) -> (i32, i32) {
    %c0_i32 = arith.constant 0 : i32
    %c0_i32_0 = arith.constant 0 : i32
    %c0_i32_1 = arith.constant 0 : i32
    return %c0_i32, %c0_i32_0 : i32, i32
  }
  func.func @transform_8(%arg0: i32) -> (i32, i32) {
    %c0_i32 = arith.constant 0 : i32
    %c0_i32_0 = arith.constant 0 : i32
    %c0_i32_1 = arith.constant 0 : i32
    return %c0_i32, %c0_i32_0 : i32, i32
  }
  func.func @transform_9(%arg0: i32) -> (i32, i32) {
    %c0_i32 = arith.constant 0 : i32
    %c0_i32_0 = arith.constant 0 : i32
    %c0_i32_1 = arith.constant 0 : i32
    return %c0_i32, %c0_i32_0 : i32, i32
  }
}

</mosaic_0001>

<bundles_post_ra>
// kernel: wave_unet_forward.6
= control target key start
LH: loop header
LB: loop body
LE: loop exit
PB: predicated region body
PF: predicated region fallthrough
CT: control target
= control target key end

     0   :  { %v128_v0 = vmov 0   ;;  %v43_v9 = vlaneseq  ;;  %s208_s2 = inlined_call_operand.vmem [shape: f32[32,1], index: 2, kind: input, shape index: {}]   ;;  %s209_s3 = inlined_call_operand.vmem [shape: f32[32,1], index: 3, kind: input, shape index: {}]   ;;  %s210_s1 = inlined_call_operand.vmem [shape: f32[1,256], index: 1, kind: input, shape index: {}]   ;;  %s211_s0 = inlined_call_operand.vmem [shape: f32[1,256], index: 0, kind: input, shape index: {}]   ;;  %s212_s4 = inlined_call_operand.vmem [shape: f32[32,256], index: 4, kind: output, shape index: {}]  }
   0x1   :  { %127 = vset.pattern.permute.xlu1 %v128_v0  ;;  %126 = vset.pattern.permute.xlu0 %v128_v0  ;;  %v20_v1 = vld [vmem:[%s208_s2 + $0x10] sm:$0xff]  ;;  %v18_v2 = vld [vmem:[%s208_s2] sm:$0xff]  ;;  %v21_v3 = vld [vmem:[%s208_s2 + $0x18] sm:$0xff] }
   0x2   :  { %34 = vperm.xlu1 %127, %v20_v1   ;;  %24 = vperm.xlu0 %126, %v18_v2   ;;  %v19_v4 = vld [vmem:[%s208_s2 + $0x8] sm:$0xff]  ;;  %v61_v6 = vld [vmem:[%s209_s3] sm:$0xff]  ;;  %v64_v7 = vld [vmem:[%s209_s3 + $0x18] sm:$0xff]  ;;  %v44_v10 = vshrl.u32 %v43_v9, 7 }
   0x3   :  { %v62_v5 = vld [vmem:[%s209_s3 + $0x8] sm:$0xff]  ;;  %v63_v8 = vld [vmem:[%s209_s3 + $0x10] sm:$0xff]  ;;  %v17_v14 = vld [vmem:[%s210_s1] sm:$0x3] }
   0x4   :  { %v45_v11 = vsub.s32 0, %v44_v10  ;;  %v49_v12 = vsub.s32 1, %v44_v10  ;;  %v93_v18 = vld [vmem:[%s211_s0] sm:$0x3] }
   0x6   :  { %39 = vperm.xlu1 %127, %v21_v3   ;;  %29 = vperm.xlu0 %126, %v19_v4   ;;  %v46_v16 = vrot.slane %v17_v14, %v45_v11  ;;  %v50_v17 = vrot.slane %v17_v14, %v49_v12  ;;  %v98_v21 = vrot.slane %v93_v18, %v45_v11 }
   0x7   :  { %v102_v22 = vrot.slane %v93_v18, %v49_v12 }
   0xa   :  { %72 = vperm.xlu1 %127, %v62_v5   ;;  %67 = vperm.xlu0 %126, %v61_v6  }
   0xe   :  { %82 = vperm.xlu1 %127, %v64_v7   ;;  %77 = vperm.xlu0 %126, %v63_v8  }
  0x7d   :  { %v35_v13 = vpop.permute.xlu1 %34  ;;  %v25_v15 = vpop.permute.xlu0 %24 }
  0x7e   :  { %v53_v23 = vmul.f32 %v46_v16, %v25_v15  ;;  %v54_v24 = vmul.f32 %v50_v17, %v25_v15  ;;  %v57_v33 = vmul.f32 %v46_v16, %v35_v13  ;;  %v58_v34 = vmul.f32 %v50_v17, %v35_v13 }
  0x81   :  { %v40_v19 = vpop.permute.xlu1 %39  ;;  %v30_v20 = vpop.permute.xlu0 %29 }
  0x82   :  { %v55_v25 = vmul.f32 %v46_v16, %v30_v20  ;;  %v56_v26 = vmul.f32 %v50_v17, %v30_v20  ;;  %v59_v35 = vmul.f32 %v46_v16, %v40_v19  ;;  %v60_v36 = vmul.f32 %v50_v17, %v40_v19 }
  0x85   :  { %v73_v27 = vpop.permute.xlu1 %72  ;;  %v68_v28 = vpop.permute.xlu0 %67 }
  0x86   :  { %v87_v29 = vadd.f32 %v73_v27, %v55_v25  ;;  %v88_v30 = vadd.f32 %v73_v27, %v56_v26  ;;  %v85_v31 = vadd.f32 %v68_v28, %v53_v23  ;;  %v86_v32 = vadd.f32 %v68_v28, %v54_v24 }
  0x88   :  { %v107_v37 = vmul.f32 %v98_v21, %v87_v29  ;;  %v108_v38 = vmul.f32 %v102_v22, %v88_v30  ;;  %v105_v39 = vmul.f32 %v98_v21, %v85_v31  ;;  %v106_v40 = vmul.f32 %v102_v22, %v86_v32 }
  0x89   :  { %v83_v41 = vpop.permute.xlu1 %82  ;;  %v78_v42 = vpop.permute.xlu0 %77 }
  0x8a   :  { %115 = vst [vmem:[%s212_s4 + $0x10] sm:$0xff] %v107_v37  ;;  %116 = vst [vmem:[%s212_s4 + $0x18] sm:$0xff] %v108_v38  ;;  %v91_v43 = vadd.f32 %v83_v41, %v59_v35  ;;  %v92_v44 = vadd.f32 %v83_v41, %v60_v36  ;;  %v89_v45 = vadd.f32 %v78_v42, %v57_v33 }
  0x8b   :  { %113 = vst [vmem:[%s212_s4] sm:$0xff] %v105_v39  ;;  %114 = vst [vmem:[%s212_s4 + $0x8] sm:$0xff] %v106_v40  ;;  %v90_v46 = vadd.f32 %v78_v42, %v58_v34 }
  0x8c   :  { %v111_v47 = vmul.f32 %v98_v21, %v91_v43  ;;  %v112_v48 = vmul.f32 %v102_v22, %v92_v44  ;;  %v109_v49 = vmul.f32 %v98_v21, %v89_v45 }
  0x8d   :  { %v110_v50 = vmul.f32 %v102_v22, %v90_v46 }
  0x8e   :  { %119 = vst [vmem:[%s212_s4 + $0x30] sm:$0xff] %v111_v47  ;;  %120 = vst [vmem:[%s212_s4 + $0x38] sm:$0xff] %v112_v48 }
  0x8f   :  { %117 = vst [vmem:[%s212_s4 + $0x20] sm:$0xff] %v109_v49  ;;  %118 = vst [vmem:[%s212_s4 + $0x28] sm:$0xff] %v110_v50 }

// kernel: wave_unet_forward.7
= control target key start
LH: loop header
LB: loop body
LE: loop exit
PB: predicated region body
PF: predicated region fallthrough
CT: control target
= control target key end

     0   :  { %s451_s13 = smov 127   ;;  %v453_v20 = vmov 0   ;;  %vm78_vm0 = vcmask 1039360   ;;  %vm57_vm1 = vcmask 7168   ;;  %vm128_vm3 = vcmask 785408   ;;  %s640_s1 = inlined_call_operand.vmem [shape: f32[32,256], index: 1, kind: input, shape index: {}]   ;;  %s641_s2 = inlined_call_operand.vmem [shape: bf16[32,96], index: 2, kind: input, shape index: {}]   ;;  %s642_s3 = inlined_call_operand.vmem [shape: f32[32,1], index: 3, kind: input, shape index: {}]   ;;  %s643_s0 = inlined_call_operand.vmem [shape: f32[1,256], index: 0, kind: input, shape index: {}]   ;;  %s644_s5 = inlined_call_operand.vmem [shape: f32[32,1], index: 5, kind: input, shape index: {}]   ;;  %s645_s4 = inlined_call_operand.vmem [shape: bf16[32,96], index: 4, kind: input, shape index: {}]   ;;  %s646_s6 = inlined_call_operand.vmem [shape: f32[32,256], index: 6, kind: output, shape index: {}]  }
   0x1   :  { %v494_v0 = vld [vmem:[%s640_s1 + $0x20] sm:$0xff]  ;;  %v499_v1 = vld [vmem:[%s640_s1 + $0x30] sm:$0xff]  ;;  %v516_v4 = vld [vmem:[%s640_s1 + $0x28] sm:$0xff]  ;;  %167 = vmatprep.mubr.bf16.mxu0 %v453_v20  ;;  %414 = vset.pattern.permute.xlu1 %v453_v20  ;;  %v189_v39 = vlaneseq  ;;  %vm251_vm4 = vcmask 1031168   ;;  %vm231_vm5 = vcmask 15360  }
   0x2   :  { %v504_v2 = vld [vmem:[%s640_s1] sm:$0xff]  ;;  %419 = vtanh.f32 %v494_v0  ;;  %v510_v3 = vld [vmem:[%s640_s1 + $0x10] sm:$0xff]  ;;  %v522_v5 = vld [vmem:[%s640_s1 + $0x38] sm:$0xff]  ;;  %413 = vset.pattern.permute.xlu0 %v453_v20  ;;  %339 = vmatprep.mubr.bf16.mxu1 %v453_v20 }
   0x3   :  { %421 = vtanh.f32 %v499_v1  ;;  %v528_v6 = vld [vmem:[%s640_s1 + $0x8] sm:$0xff]  ;;  %v534_v7 = vld [vmem:[%s640_s1 + $0x18] sm:$0xff]  ;;  %s452_s1 = smov 1   ;;  %v96_v22 = vld [vmem:[%s642_s3 + $0x10] sm:$0xff]  ;;  %v190_v42 = vshrl.u32 %v189_v39, 7 }
   0x4   :  { %423 = vtanh.f32 %v504_v2  ;;  %v97_v21 = vld [vmem:[%s642_s3 + $0x18] sm:$0xff]  ;;  %v94_v23 = vld [vmem:[%s642_s3] sm:$0xff]  ;;  %v95_v24 = vld [vmem:[%s642_s3 + $0x8] sm:$0xff] }
   0x5   :  { %425 = vtanh.f32 %v510_v3  ;;  %vm392_vm2 = vmneg %vm57_vm1  ;;  %v415_v37 = vld [vmem:[%s641_s2] sm:$0xff]   ;;  %v416_v38 = vld [vmem:[%s641_s2 + $0x8] sm:$0xff]   ;;  %v191_v47 = vsub.s32 0, %v190_v42  ;;  %v195_v51 = vsub.s32 1, %v190_v42  ;;  %s455_s2 = smov 2  }
   0x6   :  { %427 = vtanh.f32 %v516_v4  ;;  %v24_v48 = vld [vmem:[%s643_s0] sm:$0x3]  ;;  %s454_s0 = smov 126   ;;  %vm402_vm6 = vmneg %vm231_vm5 }
   0x7   :  { %429 = vtanh.f32 %v522_v5  ;;  %v567_v54 = vrot.slane %v24_v48, %v191_v47  ;;  %v570_v60 = vrot.slane %v24_v48, %v195_v51  ;;  %v417_v47 = vld [vmem:[%s645_s4] sm:$0xff]   ;;  %v418_v48 = vld [vmem:[%s645_s4 + $0x8] sm:$0xff]  }
   0x8   :  { %431 = vtanh.f32 %v528_v6 }
   0x9   :  { %433 = vtanh.f32 %v534_v7 }
   0xf   :  { %v420_v8 = vpop.eup %419 }
  0x10   :  { %v422_v9 = vpop.eup %421 }
  0x11   :  { %v424_v10 = vpop.eup %423  ;;  %v43_v11 = vpack.c.bf16 %v422_v9, %v420_v8 }
  0x12   :  { %v426_v12 = vpop.eup %425 }
  0x13   :  { %v428_v13 = vpop.eup %427  ;;  %74 = vrot.lane.b32.xlu0 %v43_v11, %s451_s13  ;;  %v41_v14 = vpack.c.bf16 %v426_v12, %v424_v10 }
  0x14   :  { %v430_v15 = vpop.eup %429 }
  0x15   :  { %v432_v16 = vpop.eup %431  ;;  %70 = vrot.lane.b32.xlu1 %v41_v14, %s451_s13  ;;  %v44_v17 = vpack.c.bf16 %v430_v15, %v428_v13 }
  0x16   :  { %v434_v18 = vpop.eup %433 }
  0x17   :  { %76 = vrot.lane.b32.xlu0 %v44_v17, %s451_s13  ;;  %v42_v19 = vpack.c.bf16 %v434_v18, %v432_v16 }
  0x19   :  { %72 = vrot.lane.b32.xlu1 %v42_v19, %s451_s13 }
  0x1b   :  { %53 = vrot.lane.b32.xlu0 %v43_v11, %s452_s1 }
  0x1d   :  { %55 = vrot.lane.b32.xlu1 %v44_v17, %s452_s1 }
  0x1f   :  { %49 = vrot.lane.b32.xlu0 %v41_v14, %s452_s1 }
  0x21   :  { %51 = vrot.lane.b32.xlu1 %v42_v19, %s452_s1 }
  0x23   :  { %110 = vperm.xlu0 %413, %v96_v22  }
  0x25   :  { %115 = vperm.xlu1 %414, %v97_v21  }
  0x27   :  { %105 = vperm.xlu0 %413, %v95_v24  }
  0x29   :  { %100 = vperm.xlu1 %414, %v94_v23  }
  0x85   :  { %v75_v25 = vpop.permute.xlu0 %74 }
  0x87   :  { %v71_v26 = vpop.permute.xlu1 %70 }
  0x89   :  { %v77_v27 = vpop.permute.xlu0 %76 }
  0x8a   :  { %390 = vmatprep.subr.msk.bf16.mxu0 %vm78_vm0, %v77_v27  ;;  %v80_v28 = vsel %vm78_vm0, %v75_v25, %v77_v27 }
  0x8b   :  { %v73_v29 = vpop.permute.xlu1 %72  ;;  %140 = vmatpush1.bf16.msra.mxu0 %v80_v28 }
  0x8c   :  { %391 = vmatprep.subr.msk.bf16.mxu0 %vm78_vm0, %v73_v29  ;;  %v79_v30 = vsel %vm78_vm0, %v71_v26, %v73_v29 }
  0x8d   :  { %v54_v31 = vpop.permute.xlu0 %53 }
  0x8f   :  { %142 = vmatpush1.bf16.msra.mxu0 %v79_v30  ;;  %v56_v32 = vpop.permute.xlu1 %55 }
  0x90   :  { %143 = vmatprep.subr.bf16.mxu0 %v44_v17  ;;  %v59_v33 = vsel %vm57_vm1, %v54_v31, %v56_v32  ;;  %v268_v32 = vld [vmem:[%s644_s5 + $0x8] sm:$0xff] }
  0x91   :  { %v50_v34 = vpop.permute.xlu0 %49 }
  0x93   :  { %144 = vmatpush1.bf16.msra.mxu0 %v43_v11  ;;  %v52_v35 = vpop.permute.xlu1 %51 }
  0x94   :  { %145 = vmatprep.subr.bf16.mxu0 %v42_v19  ;;  %v58_v36 = vsel %vm57_vm1, %v50_v34, %v52_v35 }
  0x97   :  { %146 = vmatpush1.bf16.msra.mxu0 %v41_v14 }
  0x98   :  { %147 = vmatprep.subr.bf16.mxu0 %v59_v33  ;;  %v269_v33 = vld [vmem:[%s644_s5 + $0x10] sm:$0xff] }
  0x9b   :  { %393 = vmatpush1.bf16.msk.msra.mxu0 %vm392_vm2, %v54_v31  ;;  %v267_v31 = vld [vmem:[%s644_s5] sm:$0xff] }
  0x9c   :  { %149 = vmatprep.subr.bf16.mxu0 %v58_v36 }
  0x9e   :  { %v111_v40 = vpop.permute.xlu0 %110 }
  0x9f   :  { %395 = vmatpush1.bf16.msk.msra.mxu0 %vm392_vm2, %v50_v34  ;;  %v270_v34 = vld [vmem:[%s644_s5 + $0x18] sm:$0xff] }
  0xa0   :  { %v116_v44 = vpop.permute.xlu1 %115 }
  0xa2   :  { %396 = vmatmul.mubr.msk.bf16.vlgmr.msra.gmra.mxu0 %vm128_vm3, %v415_v37  ;;  %v106_v45 = vpop.permute.xlu0 %105 }
  0xa3   :  { %177 = vmatprep.mubr.bf16.mxu0 %v453_v20 }
  0xa4   :  { %v101_v53 = vpop.permute.xlu1 %100 }
  0xaa   :  { %397 = vmatmul.mubr.msk.bf16.gmra.mxu0 %vm128_vm3, %v416_v38 }
 0x162   :  { %v169_v41 = vpop.f32.mrf.mxu0 }
 0x163   :  { %v170_v59 = vadd.f32 %v169_v41, %v101_v53 }
 0x164   :  { %v171_v43 = vpop.f32.mrf.mxu0 }
 0x165   :  { %v172_v11 = vadd.f32 %v171_v43, %v101_v53  ;;  %v199_v14 = vmul.f32 %v567_v54, %v170_v59 }
 0x166   :  { %v173_v46 = vpop.f32.mrf.mxu0 }
 0x167   :  { %v174_v50 = vadd.f32 %v173_v46, %v106_v45  ;;  %v200_v17 = vmul.f32 %v570_v60, %v172_v11 }
 0x168   :  { %v175_v49 = vpop.f32.mrf.mxu0 }
 0x169   :  { %v201_v57 = vmul.f32 %v567_v54, %v174_v50  ;;  %v176_v63 = vadd.f32 %v175_v49, %v106_v45 }
 0x16a   :  { %v179_v52 = vpop.f32.mrf.mxu0 }
 0x16b   :  { %v180_v55 = vadd.f32 %v179_v52, %v111_v40  ;;  %435 = vtanh.f32 %v201_v57  ;;  %v202_v15 = vmul.f32 %v570_v60, %v176_v63 }
 0x16c   :  { %v181_v56 = vpop.f32.mrf.mxu0 }
 0x16d   :  { %v182_v58 = vadd.f32 %v181_v56, %v111_v40  ;;  %v203_v61 = vmul.f32 %v567_v54, %v180_v55 }
 0x16e   :  { %v183_v62 = vpop.f32.mrf.mxu0 }
 0x16f   :  { %v184_v8 = vadd.f32 %v183_v62, %v116_v44  ;;  %v204_v9 = vmul.f32 %v570_v60, %v182_v58  ;;  %437 = vtanh.f32 %v203_v61 }
 0x170   :  { %v185_v10 = vpop.f32.mrf.mxu0 }
 0x171   :  { %v205_v12 = vmul.f32 %v567_v54, %v184_v8  ;;  %v186_v13 = vadd.f32 %v185_v10, %v116_v44 }
 0x173   :  { %439 = vtanh.f32 %v205_v12  ;;  %v206_v16 = vmul.f32 %v570_v60, %v186_v13 }
 0x174   :  { %441 = vtanh.f32 %v204_v9 }
 0x175   :  { %443 = vtanh.f32 %v206_v16 }
 0x176   :  { %445 = vtanh.f32 %v199_v14 }
 0x177   :  { %447 = vtanh.f32 %v202_v15 }
 0x178   :  { %449 = vtanh.f32 %v200_v17  ;;  %v436_v18 = vpop.eup %435 }
 0x17c   :  { %v438_v19 = vpop.eup %437 }
 0x180   :  { %v440_v21 = vpop.eup %439 }
 0x181   :  { %v442_v22 = vpop.eup %441  ;;  %v217_v23 = vpack.c.bf16 %v440_v21, %v438_v19 }
 0x182   :  { %v444_v24 = vpop.eup %443 }
 0x183   :  { %v446_v25 = vpop.eup %445  ;;  %247 = vrot.lane.b32.xlu1 %v217_v23, %s454_s0  ;;  %v218_v26 = vpack.c.bf16 %v444_v24, %v442_v22 }
 0x184   :  { %v448_v27 = vpop.eup %447  ;;  %v215_v28 = vpack.c.bf16 %v436_v18, %v446_v25 }
 0x185   :  { %249 = vrot.lane.b32.xlu0 %v218_v26, %s454_s0  ;;  %v450_v29 = vpop.eup %449 }
 0x186   :  { %v216_v30 = vpack.c.bf16 %v448_v27, %v450_v29 }
 0x187   :  { %243 = vrot.lane.b32.xlu1 %v215_v28, %s454_s0 }
 0x189   :  { %245 = vrot.lane.b32.xlu0 %v216_v30, %s454_s0 }
 0x18b   :  { %227 = vrot.lane.b32.xlu1 %v217_v23, %s455_s2 }
 0x18d   :  { %229 = vrot.lane.b32.xlu0 %v218_v26, %s455_s2 }
 0x18f   :  { %223 = vrot.lane.b32.xlu1 %v215_v28, %s455_s2 }
 0x191   :  { %225 = vrot.lane.b32.xlu0 %v216_v30, %s455_s2 }
 0x193   :  { %273 = vperm.xlu1 %414, %v267_v31  }
 0x195   :  { %278 = vperm.xlu0 %413, %v268_v32  }
 0x197   :  { %283 = vperm.xlu1 %414, %v269_v33  }
 0x199   :  { %288 = vperm.xlu0 %413, %v270_v34  }
 0x1f5   :  { %v248_v35 = vpop.permute.xlu1 %247 }
 0x1f7   :  { %v250_v36 = vpop.permute.xlu0 %249 }
 0x1f8   :  { %400 = vmatprep.subr.msk.bf16.mxu1 %vm251_vm4, %v250_v36  ;;  %v253_v37 = vsel %vm251_vm4, %v248_v35, %v250_v36 }
 0x1f9   :  { %312 = vmatpush1.bf16.msra.mxu1 %v253_v37  ;;  %v244_v38 = vpop.permute.xlu1 %243 }
 0x1fb   :  { %v246_v39 = vpop.permute.xlu0 %245 }
 0x1fc   :  { %401 = vmatprep.subr.msk.bf16.mxu1 %vm251_vm4, %v246_v39  ;;  %v252_v40 = vsel %vm251_vm4, %v244_v38, %v246_v39 }
 0x1fd   :  { %314 = vmatpush1.bf16.msra.mxu1 %v252_v40  ;;  %v228_v42 = vpop.permute.xlu1 %227 }
 0x1fe   :  { %315 = vmatprep.subr.bf16.mxu1 %v218_v26 }
 0x1ff   :  { %v230_v41 = vpop.permute.xlu0 %229 }
 0x200   :  { %v233_v43 = vsel %vm231_vm5, %v228_v42, %v230_v41 }
 0x201   :  { %316 = vmatpush1.bf16.msra.mxu1 %v217_v23  ;;  %v224_v45 = vpop.permute.xlu1 %223 }
 0x202   :  { %317 = vmatprep.subr.bf16.mxu1 %v216_v30 }
 0x203   :  { %v226_v44 = vpop.permute.xlu0 %225 }
 0x204   :  { %v232_v46 = vsel %vm231_vm5, %v224_v45, %v226_v44 }
 0x205   :  { %318 = vmatpush1.bf16.msra.mxu1 %v215_v28 }
 0x206   :  { %319 = vmatprep.subr.bf16.mxu1 %v233_v43 }
 0x209   :  { %403 = vmatpush1.bf16.msk.msra.mxu1 %vm402_vm6, %v228_v42 }
 0x20a   :  { %321 = vmatprep.subr.bf16.mxu1 %v232_v46 }
 0x20d   :  { %405 = vmatpush1.bf16.msk.msra.mxu1 %vm402_vm6, %v224_v45 }
 0x20e   :  { %v274_v49 = vpop.permute.xlu1 %273 }
 0x210   :  { %406 = vmatmul.mubr.msk.bf16.vlgmr.msra.gmra.mxu1 %vm128_vm3, %v417_v47  ;;  %v279_v56 = vpop.permute.xlu0 %278 }
 0x211   :  { %349 = vmatprep.mubr.bf16.mxu1 %v453_v20 }
 0x212   :  { %v284_v9 = vpop.permute.xlu1 %283 }
 0x214   :  { %v289_v16 = vpop.permute.xlu0 %288 }
 0x218   :  { %407 = vmatmul.mubr.msk.bf16.gmra.mxu1 %vm128_vm3, %v418_v48 }
 0x2d0   :  { %v341_v50 = vpop.f32.mrf.mxu1 }
 0x2d1   :  { %v342_v51 = vadd.f32 %v341_v50, %v274_v49 }
 0x2d2   :  { %v343_v52 = vpop.f32.mrf.mxu1 }
 0x2d3   :  { %v360_v53 = vmul.f32 %v342_v51, %v567_v54  ;;  %v344_v55 = vadd.f32 %v343_v52, %v274_v49 }
 0x2d4   :  { %v345_v57 = vpop.f32.mrf.mxu1 }
 0x2d5   :  { %v368_v58 = vadd.f32 %v360_v53, %v504_v2  ;;  %v361_v59 = vmul.f32 %v344_v55, %v570_v60  ;;  %v346_v20 = vadd.f32 %v345_v57, %v279_v56 }
 0x2d6   :  { %v347_v61 = vpop.f32.mrf.mxu1 }
 0x2d7   :  { %376 = vst [vmem:[%s646_s6] sm:$0xff] %v368_v58  ;;  %v369_v62 = vadd.f32 %v361_v59, %v528_v6  ;;  %v362_v63 = vmul.f32 %v346_v20, %v567_v54  ;;  %v348_v8 = vadd.f32 %v347_v61, %v279_v56 }
 0x2d8   :  { %v351_v10 = vpop.f32.mrf.mxu1 }
 0x2d9   :  { %377 = vst [vmem:[%s646_s6 + $0x8] sm:$0xff] %v369_v62  ;;  %v370_v2 = vadd.f32 %v362_v63, %v510_v3  ;;  %v363_v11 = vmul.f32 %v348_v8, %v570_v60  ;;  %v352_v12 = vadd.f32 %v351_v10, %v284_v9 }
 0x2da   :  { %v353_v13 = vpop.f32.mrf.mxu1 }
 0x2db   :  { %378 = vst [vmem:[%s646_s6 + $0x10] sm:$0xff] %v370_v2  ;;  %v371_v6 = vadd.f32 %v363_v11, %v534_v7  ;;  %v364_v14 = vmul.f32 %v352_v12, %v567_v54  ;;  %v354_v15 = vadd.f32 %v353_v13, %v284_v9 }
 0x2dc   :  { %v355_v17 = vpop.f32.mrf.mxu1 }
 0x2dd   :  { %379 = vst [vmem:[%s646_s6 + $0x18] sm:$0xff] %v371_v6  ;;  %v372_v3 = vadd.f32 %v364_v14, %v494_v0  ;;  %v365_v18 = vmul.f32 %v354_v15, %v570_v60  ;;  %v356_v19 = vadd.f32 %v355_v17, %v289_v16 }
 0x2de   :  { %v357_v21 = vpop.f32.mrf.mxu1 }
 0x2df   :  { %380 = vst [vmem:[%s646_s6 + $0x20] sm:$0xff] %v372_v3  ;;  %v373_v7 = vadd.f32 %v365_v18, %v516_v4  ;;  %v366_v22 = vmul.f32 %v356_v19, %v567_v54  ;;  %v358_v23 = vadd.f32 %v357_v21, %v289_v16 }
 0x2e1   :  { %381 = vst [vmem:[%s646_s6 + $0x28] sm:$0xff] %v373_v7  ;;  %v374_v24 = vadd.f32 %v366_v22, %v499_v1  ;;  %v367_v0 = vmul.f32 %v358_v23, %v570_v60 }
 0x2e3   :  { %382 = vst [vmem:[%s646_s6 + $0x30] sm:$0xff] %v374_v24  ;;  %v375_v25 = vadd.f32 %v367_v0, %v522_v5 }
 0x2e5   :  { %383 = vst [vmem:[%s646_s6 + $0x38] sm:$0xff] %v375_v25 }

// kernel: tile.13
= control target key start
LH: loop header
LB: loop body
LE: loop exit
PB: predicated region body
PF: predicated region fallthrough
CT: control target
= control target key end

     0   :  { %s22_s0 = inlined_call_operand.vmem [shape: f32[32], index: 0, kind: input, shape index: {}]   ;;  %s23_s1 = inlined_call_operand.vmem [shape: f32[2,32], index: 1, kind: output, shape index: {}]  }
   0x1   :  { %v4_v0 = vld [vmem:[%s22_s0] ss:$0 sm:$0xff] }
   0x2   :  { %5 = vst [vmem:[%s23_s1] sm:$0x3] %v4_v0 }

// kernel: tile.0
= control target key start
LH: loop header
LB: loop body
LE: loop exit
PB: predicated region body
PF: predicated region fallthrough
CT: control target
= control target key end

     0   :  { %s355_s8 = smov 125   ;;  %s356_s9 = smov 126   ;;  %vm8_vm0 = vcmask 7168   ;;  %s654_s0 = inlined_call_operand.vmem [shape: f32[2,32], index: 0, kind: input, shape index: {}]   ;;  %s655_s1 = inlined_call_operand.vmem [shape: f32[64,1], index: 1, kind: output, shape index: {}]  }
   0x1   :  { %v5_v0 = vld [vmem:[%s654_s0] sm:$0x3]  ;;  %s354_s0 = smov 127   ;;  %s357_s10 = smov 124  }
   0x2   :  { %6 = vst [vmem:[#allocation0] sm:$0x3] %v5_v0  ;;  %s358_s11 = smov 123   ;;  %s359_s12 = smov 122  }
   0x3   :  { %s360_s13 = smov 121   ;;  %s361_s14 = smov 120  }
   0x4   :  { %s362_s15 = smov 119   ;;  %s363_s16 = smov 118  }
   0x5   :  { %s364_s17 = smov 117   ;;  %s365_s18 = smov 116  }
   0x6   :  { %s366_s19 = smov 115   ;;  %s367_s20 = smov 114  }
   0x7   :  { %s368_s21 = smov 113   ;;  %s369_s22 = smov 112  }
   0x8   :  { %s370_s23 = smov 111   ;;  %s371_s24 = smov 110  }
   0x9   :  { %v12_v1 = vld [vmem:[#allocation0] sm:$0x3]   ;;  %s372_s25 = smov 109   ;;  %s373_s26 = smov 108  }
   0xa   :  { %v28_v2 = vld [vmem:[#allocation0] sm:$0x3]   ;;  %13 = vrot.lane.b32.xlu0 %v12_v1, %s354_s0  ;;  %s374_s27 = smov 107   ;;  %s375_s28 = smov 106  }
   0xb   :  { %29 = vrot.lane.b32.xlu1 %v28_v2, %s355_s8  ;;  %v20_v3 = vld [vmem:[#allocation0] sm:$0x3]   ;;  %s376_s29 = smov 105   ;;  %s377_s30 = smov 104  }
   0xc   :  { %v36_v4 = vld [vmem:[#allocation0] sm:$0x3]   ;;  %s378_s6 = smov 103   ;;  %s379_s7 = smov 102  }
   0xd   :  { %v44_v5 = vld [vmem:[#allocation0] sm:$0x3]   ;;  %s380_s0 = smov 101   ;;  %s381_s8 = smov 100  }
   0xe   :  { %21 = vrot.lane.b32.xlu0 %v20_v3, %s356_s9  ;;  %v52_v6 = vld [vmem:[#allocation0] sm:$0x3]   ;;  %s382_s9 = smov 99  }
   0xf   :  { %37 = vrot.lane.b32.xlu1 %v36_v4, %s357_s10  ;;  %v60_v7 = vld [vmem:[#allocation0] sm:$0x3]   ;;  %s383_s10 = smov 98  }
  0x10   :  { %v68_v8 = vld [vmem:[#allocation0] sm:$0x3]  }
  0x11   :  { %v76_v9 = vld [vmem:[#allocation0] sm:$0x3]  }
  0x12   :  { %45 = vrot.lane.b32.xlu0 %v44_v5, %s358_s11  ;;  %v84_v10 = vld [vmem:[#allocation0] sm:$0x3]   ;;  %s384_s11 = smov 97  }
  0x13   :  { %53 = vrot.lane.b32.xlu1 %v52_v6, %s359_s12  ;;  %v92_v11 = vld [vmem:[#allocation0] sm:$0x3]  }
  0x14   :  { %v100_v12 = vld [vmem:[#allocation0] sm:$0x3]  }
  0x15   :  { %v108_v13 = vld [vmem:[#allocation0] sm:$0x3]  }
  0x16   :  { %61 = vrot.lane.b32.xlu0 %v60_v7, %s360_s13  ;;  %v116_v14 = vld [vmem:[#allocation0] sm:$0x3]  }
  0x17   :  { %69 = vrot.lane.b32.xlu1 %v68_v8, %s361_s14  ;;  %v124_v15 = vld [vmem:[#allocation0] sm:$0x3]  }
  0x18   :  { %v132_v16 = vld [vmem:[#allocation0] sm:$0x3]  }
  0x19   :  { %v140_v17 = vld [vmem:[#allocation0] sm:$0x3]  }
  0x1a   :  { %77 = vrot.lane.b32.xlu0 %v76_v9, %s362_s15  ;;  %v148_v18 = vld [vmem:[#allocation0] sm:$0x3]  }
  0x1b   :  { %85 = vrot.lane.b32.xlu1 %v84_v10, %s363_s16  ;;  %v156_v19 = vld [vmem:[#allocation0] sm:$0x3]  }
  0x1c   :  { %v164_v20 = vld [vmem:[#allocation0] sm:$0x3]  }
  0x1d   :  { %v172_v21 = vld [vmem:[#allocation0] sm:$0x3]  }
  0x1e   :  { %93 = vrot.lane.b32.xlu0 %v92_v11, %s364_s17  ;;  %v180_v22 = vld [vmem:[#allocation0] sm:$0x3]  }
  0x1f   :  { %101 = vrot.lane.b32.xlu1 %v100_v12, %s365_s18  ;;  %v188_v23 = vld [vmem:[#allocation0] sm:$0x3]  }
  0x20   :  { %v196_v24 = vld [vmem:[#allocation0] sm:$0x3]  }
  0x21   :  { %v204_v25 = vld [vmem:[#allocation0] sm:$0x3]  }
  0x22   :  { %109 = vrot.lane.b32.xlu0 %v108_v13, %s366_s19  ;;  %v212_v26 = vld [vmem:[#allocation0] sm:$0x3]  }
  0x23   :  { %117 = vrot.lane.b32.xlu1 %v116_v14, %s367_s20  ;;  %v7_v27 = vld [vmem:[#allocation0] sm:$0x3]  }
  0x24   :  { %9 = vst.msk [vmem:[%s655_s1] sm:$0x1] %vm8_vm0, %v7_v27   ;;  %260 = vst.msk [vmem:[%s655_s1 + $0x1f] sm:$0x2] %vm8_vm0, %v7_v27   ;;  %v220_v28 = vld [vmem:[#allocation0] sm:$0x3]  }
  0x25   :  { %v228_v29 = vld [vmem:[#allocation0] sm:$0x3]  }
  0x26   :  { %125 = vrot.lane.b32.xlu0 %v124_v15, %s368_s21  ;;  %v236_v30 = vld [vmem:[#allocation0] sm:$0x3]  }
  0x27   :  { %133 = vrot.lane.b32.xlu1 %v132_v16, %s369_s22  ;;  %v244_v31 = vld [vmem:[#allocation0] sm:$0x3]  }
  0x28   :  { %v252_v32 = vld [vmem:[#allocation0] sm:$0x3]  }
  0x2a   :  { %141 = vrot.lane.b32.xlu0 %v140_v17, %s370_s23 }
  0x2b   :  { %149 = vrot.lane.b32.xlu1 %v148_v18, %s371_s24 }
  0x2e   :  { %157 = vrot.lane.b32.xlu0 %v156_v19, %s372_s25 }
  0x2f   :  { %165 = vrot.lane.b32.xlu1 %v164_v20, %s373_s26 }
  0x32   :  { %173 = vrot.lane.b32.xlu0 %v172_v21, %s374_s27 }
  0x33   :  { %181 = vrot.lane.b32.xlu1 %v180_v22, %s375_s28 }
  0x36   :  { %189 = vrot.lane.b32.xlu0 %v188_v23, %s376_s29 }
  0x37   :  { %197 = vrot.lane.b32.xlu1 %v196_v24, %s377_s30 }
  0x3a   :  { %205 = vrot.lane.b32.xlu0 %v204_v25, %s378_s6 }
  0x3b   :  { %213 = vrot.lane.b32.xlu1 %v212_v26, %s379_s7 }
  0x3e   :  { %221 = vrot.lane.b32.xlu0 %v220_v28, %s380_s0 }
  0x3f   :  { %229 = vrot.lane.b32.xlu1 %v228_v29, %s381_s8 }
  0x42   :  { %237 = vrot.lane.b32.xlu0 %v236_v30, %s382_s9 }
  0x43   :  { %245 = vrot.lane.b32.xlu1 %v244_v31, %s383_s10 }
  0x46   :  { %253 = vrot.lane.b32.xlu0 %v252_v32, %s384_s11 }
  0x7c   :  { %v14_v33 = vpop.permute.xlu0 %13  }
  0x7d   :  { %v30_v34 = vpop.permute.xlu1 %29   ;;  %261 = vst.msk [vmem:[%s655_s1 + $0x1] sm:$0x1] %vm8_vm0, %v14_v33   ;;  %262 = vst.msk [vmem:[%s655_s1 + $0x20] sm:$0x2] %vm8_vm0, %v14_v33  }
  0x7e   :  { %265 = vst.msk [vmem:[%s655_s1 + $0x3] sm:$0x1] %vm8_vm0, %v30_v34   ;;  %266 = vst.msk [vmem:[%s655_s1 + $0x22] sm:$0x2] %vm8_vm0, %v30_v34  }
  0x80   :  { %v22_v35 = vpop.permute.xlu0 %21  }
  0x81   :  { %v38_v36 = vpop.permute.xlu1 %37   ;;  %263 = vst.msk [vmem:[%s655_s1 + $0x2] sm:$0x1] %vm8_vm0, %v22_v35   ;;  %264 = vst.msk [vmem:[%s655_s1 + $0x21] sm:$0x2] %vm8_vm0, %v22_v35  }
  0x82   :  { %267 = vst.msk [vmem:[%s655_s1 + $0x4] sm:$0x1] %vm8_vm0, %v38_v36   ;;  %268 = vst.msk [vmem:[%s655_s1 + $0x23] sm:$0x2] %vm8_vm0, %v38_v36  }
  0x84   :  { %v46_v37 = vpop.permute.xlu0 %45  }
  0x85   :  { %v54_v38 = vpop.permute.xlu1 %53   ;;  %269 = vst.msk [vmem:[%s655_s1 + $0x5] sm:$0x1] %vm8_vm0, %v46_v37   ;;  %270 = vst.msk [vmem:[%s655_s1 + $0x24] sm:$0x2] %vm8_vm0, %v46_v37  }
  0x86   :  { %271 = vst.msk [vmem:[%s655_s1 + $0x6] sm:$0x1] %vm8_vm0, %v54_v38   ;;  %272 = vst.msk [vmem:[%s655_s1 + $0x25] sm:$0x2] %vm8_vm0, %v54_v38  }
  0x88   :  { %v62_v39 = vpop.permute.xlu0 %61  }
  0x89   :  { %v70_v40 = vpop.permute.xlu1 %69   ;;  %273 = vst.msk [vmem:[%s655_s1 + $0x7] sm:$0x1] %vm8_vm0, %v62_v39   ;;  %274 = vst.msk [vmem:[%s655_s1 + $0x26] sm:$0x2] %vm8_vm0, %v62_v39  }
  0x8a   :  { %275 = vst.msk [vmem:[%s655_s1 + $0x8] sm:$0x1] %vm8_vm0, %v70_v40   ;;  %276 = vst.msk [vmem:[%s655_s1 + $0x27] sm:$0x2] %vm8_vm0, %v70_v40  }
  0x8c   :  { %v78_v41 = vpop.permute.xlu0 %77  }
  0x8d   :  { %v86_v42 = vpop.permute.xlu1 %85   ;;  %277 = vst.msk [vmem:[%s655_s1 + $0x9] sm:$0x1] %vm8_vm0, %v78_v41   ;;  %278 = vst.msk [vmem:[%s655_s1 + $0x28] sm:$0x2] %vm8_vm0, %v78_v41  }
  0x8e   :  { %279 = vst.msk [vmem:[%s655_s1 + $0xa] sm:$0x1] %vm8_vm0, %v86_v42   ;;  %280 = vst.msk [vmem:[%s655_s1 + $0x29] sm:$0x2] %vm8_vm0, %v86_v42  }
  0x90   :  { %v94_v43 = vpop.permute.xlu0 %93  }
  0x91   :  { %v102_v44 = vpop.permute.xlu1 %101   ;;  %281 = vst.msk [vmem:[%s655_s1 + $0xb] sm:$0x1] %vm8_vm0, %v94_v43   ;;  %282 = vst.msk [vmem:[%s655_s1 + $0x2a] sm:$0x2] %vm8_vm0, %v94_v43  }
  0x92   :  { %283 = vst.msk [vmem:[%s655_s1 + $0xc] sm:$0x1] %vm8_vm0, %v102_v44   ;;  %284 = vst.msk [vmem:[%s655_s1 + $0x2b] sm:$0x2] %vm8_vm0, %v102_v44  }
  0x94   :  { %v110_v45 = vpop.permute.xlu0 %109  }
  0x95   :  { %v118_v46 = vpop.permute.xlu1 %117   ;;  %285 = vst.msk [vmem:[%s655_s1 + $0xd] sm:$0x1] %vm8_vm0, %v110_v45   ;;  %286 = vst.msk [vmem:[%s655_s1 + $0x2c] sm:$0x2] %vm8_vm0, %v110_v45  }
  0x96   :  { %287 = vst.msk [vmem:[%s655_s1 + $0xe] sm:$0x1] %vm8_vm0, %v118_v46   ;;  %288 = vst.msk [vmem:[%s655_s1 + $0x2d] sm:$0x2] %vm8_vm0, %v118_v46  }
  0x98   :  { %v126_v47 = vpop.permute.xlu0 %125  }
  0x99   :  { %v134_v48 = vpop.permute.xlu1 %133   ;;  %289 = vst.msk [vmem:[%s655_s1 + $0xf] sm:$0x1] %vm8_vm0, %v126_v47   ;;  %290 = vst.msk [vmem:[%s655_s1 + $0x2e] sm:$0x2] %vm8_vm0, %v126_v47  }
  0x9a   :  { %291 = vst.msk [vmem:[%s655_s1 + $0x10] sm:$0x1] %vm8_vm0, %v134_v48   ;;  %292 = vst.msk [vmem:[%s655_s1 + $0x2f] sm:$0x2] %vm8_vm0, %v134_v48  }
  0x9c   :  { %v142_v49 = vpop.permute.xlu0 %141  }
  0x9d   :  { %v150_v50 = vpop.permute.xlu1 %149   ;;  %293 = vst.msk [vmem:[%s655_s1 + $0x11] sm:$0x1] %vm8_vm0, %v142_v49   ;;  %294 = vst.msk [vmem:[%s655_s1 + $0x30] sm:$0x2] %vm8_vm0, %v142_v49  }
  0x9e   :  { %295 = vst.msk [vmem:[%s655_s1 + $0x12] sm:$0x1] %vm8_vm0, %v150_v50   ;;  %296 = vst.msk [vmem:[%s655_s1 + $0x31] sm:$0x2] %vm8_vm0, %v150_v50  }
  0xa0   :  { %v158_v51 = vpop.permute.xlu0 %157  }
  0xa1   :  { %v166_v52 = vpop.permute.xlu1 %165   ;;  %297 = vst.msk [vmem:[%s655_s1 + $0x13] sm:$0x1] %vm8_vm0, %v158_v51   ;;  %298 = vst.msk [vmem:[%s655_s1 + $0x32] sm:$0x2] %vm8_vm0, %v158_v51  }
  0xa2   :  { %299 = vst.msk [vmem:[%s655_s1 + $0x14] sm:$0x1] %vm8_vm0, %v166_v52   ;;  %300 = vst.msk [vmem:[%s655_s1 + $0x33] sm:$0x2] %vm8_vm0, %v166_v52  }
  0xa4   :  { %v174_v53 = vpop.permute.xlu0 %173  }
  0xa5   :  { %v182_v54 = vpop.permute.xlu1 %181   ;;  %301 = vst.msk [vmem:[%s655_s1 + $0x15] sm:$0x1] %vm8_vm0, %v174_v53   ;;  %302 = vst.msk [vmem:[%s655_s1 + $0x34] sm:$0x2] %vm8_vm0, %v174_v53  }
  0xa6   :  { %303 = vst.msk [vmem:[%s655_s1 + $0x16] sm:$0x1] %vm8_vm0, %v182_v54   ;;  %304 = vst.msk [vmem:[%s655_s1 + $0x35] sm:$0x2] %vm8_vm0, %v182_v54  }
  0xa8   :  { %v190_v55 = vpop.permute.xlu0 %189  }
  0xa9   :  { %v198_v56 = vpop.permute.xlu1 %197   ;;  %305 = vst.msk [vmem:[%s655_s1 + $0x17] sm:$0x1] %vm8_vm0, %v190_v55   ;;  %306 = vst.msk [vmem:[%s655_s1 + $0x36] sm:$0x2] %vm8_vm0, %v190_v55  }
  0xaa   :  { %307 = vst.msk [vmem:[%s655_s1 + $0x18] sm:$0x1] %vm8_vm0, %v198_v56   ;;  %308 = vst.msk [vmem:[%s655_s1 + $0x37] sm:$0x2] %vm8_vm0, %v198_v56  }
  0xac   :  { %v206_v57 = vpop.permute.xlu0 %205  }
  0xad   :  { %v214_v58 = vpop.permute.xlu1 %213   ;;  %309 = vst.msk [vmem:[%s655_s1 + $0x19] sm:$0x1] %vm8_vm0, %v206_v57   ;;  %310 = vst.msk [vmem:[%s655_s1 + $0x38] sm:$0x2] %vm8_vm0, %v206_v57  }
  0xae   :  { %311 = vst.msk [vmem:[%s655_s1 + $0x1a] sm:$0x1] %vm8_vm0, %v214_v58   ;;  %312 = vst.msk [vmem:[%s655_s1 + $0x39] sm:$0x2] %vm8_vm0, %v214_v58  }
  0xb0   :  { %v222_v59 = vpop.permute.xlu0 %221  }
  0xb1   :  { %v230_v60 = vpop.permute.xlu1 %229   ;;  %313 = vst.msk [vmem:[%s655_s1 + $0x1b] sm:$0x1] %vm8_vm0, %v222_v59   ;;  %314 = vst.msk [vmem:[%s655_s1 + $0x3a] sm:$0x2] %vm8_vm0, %v222_v59  }
  0xb2   :  { %315 = vst.msk [vmem:[%s655_s1 + $0x1c] sm:$0x1] %vm8_vm0, %v230_v60   ;;  %316 = vst.msk [vmem:[%s655_s1 + $0x3b] sm:$0x2] %vm8_vm0, %v230_v60  }
  0xb4   :  { %v238_v61 = vpop.permute.xlu0 %237  }
  0xb5   :  { %v246_v62 = vpop.permute.xlu1 %245   ;;  %317 = vst.msk [vmem:[%s655_s1 + $0x1d] sm:$0x1] %vm8_vm0, %v238_v61   ;;  %318 = vst.msk [vmem:[%s655_s1 + $0x3c] sm:$0x2] %vm8_vm0, %v238_v61  }
  0xb6   :  { %319 = vst.msk [vmem:[%s655_s1 + $0x1e] sm:$0x1] %vm8_vm0, %v246_v62   ;;  %320 = vst.msk [vmem:[%s655_s1 + $0x3d] sm:$0x2] %vm8_vm0, %v246_v62  }
  0xb8   :  { %v254_v63 = vpop.permute.xlu0 %253  }
  0xb9   :  { %321 = vst.msk [vmem:[%s655_s1 + $0x1f] sm:$0x1] %vm8_vm0, %v254_v63   ;;  %322 = vst.msk [vmem:[%s655_s1 + $0x3e] sm:$0x2] %vm8_vm0, %v254_v63  }

// kernel: wave_unet_forward.9
= control target key start
LH: loop header
LB: loop body
LE: loop exit
PB: predicated region body
PF: predicated region fallthrough
CT: control target
= control target key end

     0   :  { %s671_s21 = smov 127   ;;  %v673_v20 = vmov 0   ;;  %vm84_vm0 = vcmask 1039360   ;;  %vm63_vm1 = vcmask 7168   ;;  %vm134_vm3 = vcmask 785408   ;;  %s934_s1 = inlined_call_operand.vmem [shape: f32[32,256], index: 1, kind: input, shape index: {}]   ;;  %s935_s2 = inlined_call_operand.vmem [shape: bf16[32,96], index: 2, kind: input, shape index: {}]   ;;  %s936_s3 = inlined_call_operand.vmem [shape: f32[32,1], index: 3, kind: input, shape index: {}]   ;;  %s937_s0 = inlined_call_operand.vmem [shape: f32[1,256], index: 0, kind: input, shape index: {}]   ;;  %s938_s5 = inlined_call_operand.vmem [shape: f32[32,1], index: 5, kind: input, shape index: {}]   ;;  %s939_s4 = inlined_call_operand.vmem [shape: bf16[32,96], index: 4, kind: input, shape index: {}]   ;;  %s940_s7 = inlined_call_operand.vmem [shape: f32[64,1], index: 7, kind: input, shape index: {}]   ;;  %s941_s6 = inlined_call_operand.vmem [shape: bf16[64,32], index: 6, kind: input, shape index: {}]   ;;  %s942_s8 = inlined_call_operand.vmem [shape: f32[64,256], index: 8, kind: output, shape index: {}]  }
   0x1   :  { %v724_v0 = vld [vmem:[%s934_s1 + $0x20] sm:$0xff]  ;;  %v729_v1 = vld [vmem:[%s934_s1 + $0x30] sm:$0xff]  ;;  %v746_v4 = vld [vmem:[%s934_s1 + $0x28] sm:$0xff]  ;;  %173 = vmatprep.mubr.bf16.mxu0 %v673_v20  ;;  %614 = vset.pattern.permute.xlu1 %v673_v20  ;;  %v195_v39 = vlaneseq  ;;  %vm257_vm4 = vcmask 1031168   ;;  %vm237_vm5 = vcmask 15360   ;;  %vm470_vm7 = vcmask 261120  }
   0x2   :  { %v734_v2 = vld [vmem:[%s934_s1] sm:$0xff]  ;;  %623 = vtanh.f32 %v724_v0  ;;  %v740_v3 = vld [vmem:[%s934_s1 + $0x10] sm:$0xff]  ;;  %v752_v5 = vld [vmem:[%s934_s1 + $0x38] sm:$0xff]  ;;  %613 = vset.pattern.permute.xlu0 %v673_v20  ;;  %345 = vmatprep.mubr.bf16.mxu1 %v673_v20 }
   0x3   :  { %625 = vtanh.f32 %v729_v1  ;;  %v758_v6 = vld [vmem:[%s934_s1 + $0x8] sm:$0xff]  ;;  %v764_v7 = vld [vmem:[%s934_s1 + $0x18] sm:$0xff]  ;;  %s672_s1 = smov 1   ;;  %v102_v22 = vld [vmem:[%s936_s3 + $0x10] sm:$0xff]  ;;  %v196_v42 = vshrl.u32 %v195_v39, 7 }
   0x4   :  { %627 = vtanh.f32 %v734_v2  ;;  %v103_v21 = vld [vmem:[%s936_s3 + $0x18] sm:$0xff]  ;;  %v100_v23 = vld [vmem:[%s936_s3] sm:$0xff]  ;;  %v101_v24 = vld [vmem:[%s936_s3 + $0x8] sm:$0xff] }
   0x5   :  { %629 = vtanh.f32 %v740_v3  ;;  %vm580_vm2 = vmneg %vm63_vm1  ;;  %v615_v37 = vld [vmem:[%s935_s2] sm:$0xff]   ;;  %v616_v38 = vld [vmem:[%s935_s2 + $0x8] sm:$0xff]   ;;  %v197_v47 = vsub.s32 0, %v196_v42  ;;  %v201_v51 = vsub.s32 1, %v196_v42  ;;  %s675_s2 = smov 2  }
   0x6   :  { %631 = vtanh.f32 %v746_v4  ;;  %v30_v48 = vld [vmem:[%s937_s0] sm:$0x3]  ;;  %s674_s0 = smov 126   ;;  %v409_v42 = vld [vmem:[%s940_s7 + $0x38] sm:$0xff]  ;;  %vm590_vm6 = vmneg %vm237_vm5 }
   0x7   :  { %633 = vtanh.f32 %v752_v5  ;;  %v798_v54 = vrot.slane %v30_v48, %v197_v47  ;;  %v801_v60 = vrot.slane %v30_v48, %v201_v51  ;;  %v406_v39 = vld [vmem:[%s940_s7 + $0x20] sm:$0xff] }
   0x8   :  { %635 = vtanh.f32 %v758_v6 }
   0x9   :  { %637 = vtanh.f32 %v764_v7 }
   0xf   :  { %v624_v8 = vpop.eup %623 }
  0x10   :  { %v626_v9 = vpop.eup %625 }
  0x11   :  { %v628_v10 = vpop.eup %627  ;;  %v49_v11 = vpack.c.bf16 %v626_v9, %v624_v8 }
  0x12   :  { %v630_v12 = vpop.eup %629 }
  0x13   :  { %v632_v13 = vpop.eup %631  ;;  %80 = vrot.lane.b32.xlu0 %v49_v11, %s671_s21  ;;  %v47_v14 = vpack.c.bf16 %v630_v12, %v628_v10 }
  0x14   :  { %v634_v15 = vpop.eup %633 }
  0x15   :  { %v636_v16 = vpop.eup %635  ;;  %76 = vrot.lane.b32.xlu1 %v47_v14, %s671_s21  ;;  %v50_v17 = vpack.c.bf16 %v634_v15, %v632_v13 }
  0x16   :  { %v638_v18 = vpop.eup %637 }
  0x17   :  { %82 = vrot.lane.b32.xlu0 %v50_v17, %s671_s21  ;;  %v48_v19 = vpack.c.bf16 %v638_v18, %v636_v16 }
  0x19   :  { %78 = vrot.lane.b32.xlu1 %v48_v19, %s671_s21 }
  0x1b   :  { %59 = vrot.lane.b32.xlu0 %v49_v11, %s672_s1 }
  0x1d   :  { %61 = vrot.lane.b32.xlu1 %v50_v17, %s672_s1 }
  0x1f   :  { %55 = vrot.lane.b32.xlu0 %v47_v14, %s672_s1 }
  0x21   :  { %57 = vrot.lane.b32.xlu1 %v48_v19, %s672_s1 }
  0x23   :  { %116 = vperm.xlu0 %613, %v102_v22  }
  0x25   :  { %121 = vperm.xlu1 %614, %v103_v21  }
  0x27   :  { %111 = vperm.xlu0 %613, %v101_v24  }
  0x29   :  { %106 = vperm.xlu1 %614, %v100_v23  }
  0x85   :  { %v81_v25 = vpop.permute.xlu0 %80 }
  0x87   :  { %v77_v26 = vpop.permute.xlu1 %76 }
  0x89   :  { %v83_v27 = vpop.permute.xlu0 %82 }
  0x8a   :  { %578 = vmatprep.subr.msk.bf16.mxu0 %vm84_vm0, %v83_v27  ;;  %v86_v28 = vsel %vm84_vm0, %v81_v25, %v83_v27 }
  0x8b   :  { %v79_v29 = vpop.permute.xlu1 %78  ;;  %146 = vmatpush1.bf16.msra.mxu0 %v86_v28 }
  0x8c   :  { %579 = vmatprep.subr.msk.bf16.mxu0 %vm84_vm0, %v79_v29  ;;  %v85_v30 = vsel %vm84_vm0, %v77_v26, %v79_v29 }
  0x8d   :  { %v60_v31 = vpop.permute.xlu0 %59 }
  0x8f   :  { %148 = vmatpush1.bf16.msra.mxu0 %v85_v30  ;;  %v62_v32 = vpop.permute.xlu1 %61 }
  0x90   :  { %149 = vmatprep.subr.bf16.mxu0 %v50_v17  ;;  %v65_v33 = vsel %vm63_vm1, %v60_v31, %v62_v32  ;;  %v276_v32 = vld [vmem:[%s938_s5 + $0x18] sm:$0xff] }
  0x91   :  { %v56_v34 = vpop.permute.xlu0 %55 }
  0x93   :  { %150 = vmatpush1.bf16.msra.mxu0 %v49_v11  ;;  %v58_v35 = vpop.permute.xlu1 %57 }
  0x94   :  { %151 = vmatprep.subr.bf16.mxu0 %v48_v19  ;;  %v64_v36 = vsel %vm63_vm1, %v56_v34, %v58_v35  ;;  %v402_v35 = vld [vmem:[%s940_s7] sm:$0xff] }
  0x97   :  { %152 = vmatpush1.bf16.msra.mxu0 %v47_v14 }
  0x98   :  { %153 = vmatprep.subr.bf16.mxu0 %v65_v33  ;;  %v273_v33 = vld [vmem:[%s938_s5] sm:$0xff] }
  0x9b   :  { %581 = vmatpush1.bf16.msk.msra.mxu0 %vm580_vm2, %v60_v31  ;;  %v275_v31 = vld [vmem:[%s938_s5 + $0x10] sm:$0xff] }
  0x9c   :  { %155 = vmatprep.subr.bf16.mxu0 %v64_v36  ;;  %v403_v36 = vld [vmem:[%s940_s7 + $0x8] sm:$0xff] }
  0x9e   :  { %v117_v40 = vpop.permute.xlu0 %116 }
  0x9f   :  { %583 = vmatpush1.bf16.msk.msra.mxu0 %vm580_vm2, %v56_v34  ;;  %v274_v34 = vld [vmem:[%s938_s5 + $0x8] sm:$0xff] }
  0xa0   :  { %v122_v44 = vpop.permute.xlu1 %121 }
  0xa2   :  { %584 = vmatmul.mubr.msk.bf16.vlgmr.msra.gmra.mxu0 %vm134_vm3, %v615_v37  ;;  %v112_v45 = vpop.permute.xlu0 %111  ;;  %v404_v37 = vld [vmem:[%s940_s7 + $0x10] sm:$0xff] }
  0xa3   :  { %183 = vmatprep.mubr.bf16.mxu0 %v673_v20 }
  0xa4   :  { %v107_v53 = vpop.permute.xlu1 %106 }
  0xaa   :  { %585 = vmatmul.mubr.msk.bf16.gmra.mxu0 %vm134_vm3, %v616_v38  ;;  %v405_v38 = vld [vmem:[%s940_s7 + $0x18] sm:$0xff] }
  0xab   :  { %515 = vmatprep.mubr.bf16.mxu0 %v673_v20 }
 0x162   :  { %v175_v41 = vpop.f32.mrf.mxu0 }
 0x163   :  { %v176_v59 = vadd.f32 %v175_v41, %v107_v53  ;;  %v408_v41 = vld [vmem:[%s940_s7 + $0x30] sm:$0xff] }
 0x164   :  { %v177_v43 = vpop.f32.mrf.mxu0 }
 0x165   :  { %v178_v11 = vadd.f32 %v177_v43, %v107_v53  ;;  %v205_v14 = vmul.f32 %v798_v54, %v176_v59 }
 0x166   :  { %v179_v46 = vpop.f32.mrf.mxu0 }
 0x167   :  { %v180_v50 = vadd.f32 %v179_v46, %v112_v45  ;;  %v206_v17 = vmul.f32 %v801_v60, %v178_v11 }
 0x168   :  { %v181_v49 = vpop.f32.mrf.mxu0 }
 0x169   :  { %v207_v57 = vmul.f32 %v798_v54, %v180_v50  ;;  %v182_v63 = vadd.f32 %v181_v49, %v112_v45 }
 0x16a   :  { %v185_v52 = vpop.f32.mrf.mxu0 }
 0x16b   :  { %v186_v55 = vadd.f32 %v185_v52, %v117_v40  ;;  %639 = vtanh.f32 %v207_v57  ;;  %v208_v15 = vmul.f32 %v801_v60, %v182_v63  ;;  %v618_v57 = vld [vmem:[%s939_s4 + $0x8] sm:$0xff]  }
 0x16c   :  { %v187_v56 = vpop.f32.mrf.mxu0 }
 0x16d   :  { %v188_v58 = vadd.f32 %v187_v56, %v117_v40  ;;  %v209_v61 = vmul.f32 %v798_v54, %v186_v55  ;;  %v407_v40 = vld [vmem:[%s940_s7 + $0x28] sm:$0xff]  ;;  %v617_v56 = vld [vmem:[%s939_s4] sm:$0xff]  }
 0x16e   :  { %v189_v62 = vpop.f32.mrf.mxu0 }
 0x16f   :  { %v190_v8 = vadd.f32 %v189_v62, %v122_v44  ;;  %v210_v9 = vmul.f32 %v801_v60, %v188_v58  ;;  %641 = vtanh.f32 %v209_v61 }
 0x170   :  { %v191_v10 = vpop.f32.mrf.mxu0 }
 0x171   :  { %v211_v12 = vmul.f32 %v798_v54, %v190_v8  ;;  %v192_v13 = vadd.f32 %v191_v10, %v122_v44 }
 0x173   :  { %643 = vtanh.f32 %v211_v12  ;;  %v212_v16 = vmul.f32 %v801_v60, %v192_v13 }
 0x174   :  { %645 = vtanh.f32 %v210_v9 }
 0x175   :  { %647 = vtanh.f32 %v212_v16 }
 0x176   :  { %649 = vtanh.f32 %v205_v14 }
 0x177   :  { %651 = vtanh.f32 %v208_v15 }
 0x178   :  { %653 = vtanh.f32 %v206_v17  ;;  %v640_v18 = vpop.eup %639 }
 0x17c   :  { %v642_v19 = vpop.eup %641 }
 0x180   :  { %v644_v21 = vpop.eup %643 }
 0x181   :  { %v646_v22 = vpop.eup %645  ;;  %v223_v23 = vpack.c.bf16 %v644_v21, %v642_v19 }
 0x182   :  { %v648_v24 = vpop.eup %647 }
 0x183   :  { %v650_v25 = vpop.eup %649  ;;  %253 = vrot.lane.b32.xlu1 %v223_v23, %s674_s0  ;;  %v224_v26 = vpack.c.bf16 %v648_v24, %v646_v22 }
 0x184   :  { %v652_v27 = vpop.eup %651  ;;  %v221_v28 = vpack.c.bf16 %v640_v18, %v650_v25 }
 0x185   :  { %255 = vrot.lane.b32.xlu0 %v224_v26, %s674_s0  ;;  %v654_v29 = vpop.eup %653 }
 0x186   :  { %v222_v30 = vpack.c.bf16 %v652_v27, %v654_v29 }
 0x187   :  { %249 = vrot.lane.b32.xlu1 %v221_v28, %s674_s0 }
 0x189   :  { %251 = vrot.lane.b32.xlu0 %v222_v30, %s674_s0 }
 0x18b   :  { %233 = vrot.lane.b32.xlu1 %v223_v23, %s675_s2 }
 0x18d   :  { %235 = vrot.lane.b32.xlu0 %v224_v26, %s675_s2 }
 0x18f   :  { %229 = vrot.lane.b32.xlu1 %v221_v28, %s675_s2 }
 0x191   :  { %231 = vrot.lane.b32.xlu0 %v222_v30, %s675_s2 }
 0x193   :  { %289 = vperm.xlu1 %614, %v275_v31  }
 0x195   :  { %294 = vperm.xlu0 %613, %v276_v32  }
 0x197   :  { %279 = vperm.xlu1 %614, %v273_v33  }
 0x199   :  { %284 = vperm.xlu0 %613, %v274_v34  }
 0x19b   :  { %412 = vperm.xlu1 %614, %v402_v35  }
 0x19d   :  { %417 = vperm.xlu0 %613, %v403_v36  }
 0x19f   :  { %422 = vperm.xlu1 %614, %v404_v37  }
 0x1a1   :  { %427 = vperm.xlu0 %613, %v405_v38  }
 0x1a3   :  { %432 = vperm.xlu1 %614, %v406_v39  }
 0x1a5   :  { %437 = vperm.xlu0 %613, %v407_v40  }
 0x1a7   :  { %442 = vperm.xlu1 %614, %v408_v41  }
 0x1a9   :  { %447 = vperm.xlu0 %613, %v409_v42   ;;  %v619_v42 = vld [vmem:[%s941_s6] sm:$0xff]  }
 0x1f5   :  { %v254_v43 = vpop.permute.xlu1 %253 }
 0x1f7   :  { %v256_v44 = vpop.permute.xlu0 %255 }
 0x1f8   :  { %588 = vmatprep.subr.msk.bf16.mxu1 %vm257_vm4, %v256_v44  ;;  %v259_v45 = vsel %vm257_vm4, %v254_v43, %v256_v44  ;;  %v620_v43 = vld [vmem:[%s941_s6 + $0x10] sm:$0xff]   ;;  %v621_v44 = vld [vmem:[%s941_s6 + $0x8] sm:$0xff]  }
 0x1f9   :  { %318 = vmatpush1.bf16.msra.mxu1 %v259_v45  ;;  %v250_v46 = vpop.permute.xlu1 %249  ;;  %v622_v45 = vld [vmem:[%s941_s6 + $0x18] sm:$0xff]  }
 0x1fb   :  { %v252_v47 = vpop.permute.xlu0 %251 }
 0x1fc   :  { %589 = vmatprep.subr.msk.bf16.mxu1 %vm257_vm4, %v252_v47  ;;  %v258_v48 = vsel %vm257_vm4, %v250_v46, %v252_v47 }
 0x1fd   :  { %320 = vmatpush1.bf16.msra.mxu1 %v258_v48  ;;  %v234_v50 = vpop.permute.xlu1 %233 }
 0x1fe   :  { %321 = vmatprep.subr.bf16.mxu1 %v224_v26 }
 0x1ff   :  { %v236_v49 = vpop.permute.xlu0 %235 }
 0x200   :  { %v239_v51 = vsel %vm237_vm5, %v234_v50, %v236_v49 }
 0x201   :  { %322 = vmatpush1.bf16.msra.mxu1 %v223_v23  ;;  %v230_v53 = vpop.permute.xlu1 %229 }
 0x202   :  { %323 = vmatprep.subr.bf16.mxu1 %v222_v30 }
 0x203   :  { %v232_v52 = vpop.permute.xlu0 %231 }
 0x204   :  { %v238_v55 = vsel %vm237_vm5, %v230_v53, %v232_v52 }
 0x205   :  { %324 = vmatpush1.bf16.msra.mxu1 %v221_v28 }
 0x206   :  { %325 = vmatprep.subr.bf16.mxu1 %v239_v51 }
 0x209   :  { %591 = vmatpush1.bf16.msk.msra.mxu1 %vm590_vm6, %v234_v50 }
 0x20a   :  { %327 = vmatprep.subr.bf16.mxu1 %v238_v55 }
 0x20d   :  { %593 = vmatpush1.bf16.msk.msra.mxu1 %vm590_vm6, %v230_v53 }
 0x20e   :  { %v290_v62 = vpop.permute.xlu1 %289 }
 0x210   :  { %594 = vmatmul.mubr.msk.bf16.vlgmr.msra.gmra.mxu1 %vm134_vm3, %v617_v56  ;;  %v295_v58 = vpop.permute.xlu0 %294 }
 0x211   :  { %355 = vmatprep.mubr.bf16.mxu1 %v673_v20 }
 0x212   :  { %v280_v12 = vpop.permute.xlu1 %279 }
 0x214   :  { %v285_v8 = vpop.permute.xlu0 %284 }
 0x216   :  { %v413_v46 = vpop.permute.xlu1 %412 }
 0x218   :  { %595 = vmatmul.mubr.msk.bf16.gmra.mxu1 %vm134_vm3, %v618_v57  ;;  %v418_v47 = vpop.permute.xlu0 %417 }
 0x219   :  { %535 = vmatprep.mubr.bf16.mxu1 %v673_v20 }
 0x21a   :  { %v423_v48 = vpop.permute.xlu1 %422 }
 0x21c   :  { %v428_v49 = vpop.permute.xlu0 %427 }
 0x21e   :  { %v433_v50 = vpop.permute.xlu1 %432 }
 0x220   :  { %v438_v57 = vpop.permute.xlu0 %437 }
 0x2d0   :  { %v347_v59 = vpop.f32.mrf.mxu1 }
 0x2d1   :  { %v348_v23 = vadd.f32 %v347_v59, %v280_v12 }
 0x2d2   :  { %v349_v61 = vpop.f32.mrf.mxu1 }
 0x2d3   :  { %v350_v16 = vadd.f32 %v349_v61, %v280_v12  ;;  %v366_v34 = vmul.f32 %v348_v23, %v798_v54 }
 0x2d4   :  { %v351_v63 = vpop.f32.mrf.mxu1 }
 0x2d5   :  { %v352_v18 = vadd.f32 %v351_v63, %v285_v8  ;;  %v367_v27 = vmul.f32 %v350_v16, %v801_v60  ;;  %v374_v37 = vadd.f32 %v366_v34, %v734_v2 }
 0x2d6   :  { %v353_v9 = vpop.f32.mrf.mxu1 }
 0x2d7   :  { %v354_v10 = vadd.f32 %v353_v9, %v285_v8  ;;  %v368_v31 = vmul.f32 %v352_v18, %v798_v54  ;;  %v375_v35 = vadd.f32 %v367_v27, %v758_v6 }
 0x2d8   :  { %v357_v11 = vpop.f32.mrf.mxu1 }
 0x2d9   :  { %v369_v13 = vmul.f32 %v354_v10, %v801_v60  ;;  %v358_v14 = vadd.f32 %v357_v11, %v290_v62  ;;  %v443_v11 = vpop.permute.xlu1 %442 }
 0x2da   :  { %v359_v15 = vpop.f32.mrf.mxu1 }
 0x2db   :  { %v360_v17 = vadd.f32 %v359_v15, %v290_v62  ;;  %v377_v24 = vadd.f32 %v369_v13, %v764_v7  ;;  %v370_v25 = vmul.f32 %v358_v14, %v798_v54 }
 0x2dc   :  { %v361_v19 = vpop.f32.mrf.mxu1 }
 0x2dd   :  { %v371_v21 = vmul.f32 %v360_v17, %v801_v60  ;;  %v362_v22 = vadd.f32 %v361_v19, %v295_v58  ;;  %655 = vtanh.f32 %v377_v24  ;;  %v378_v7 = vadd.f32 %v370_v25, %v724_v0 }
 0x2de   :  { %v363_v26 = vpop.f32.mrf.mxu1 }
 0x2df   :  { %v379_v28 = vadd.f32 %v371_v21, %v746_v4  ;;  %v372_v29 = vmul.f32 %v362_v22, %v798_v54  ;;  %v364_v30 = vadd.f32 %v363_v26, %v295_v58  ;;  %v376_v4 = vadd.f32 %v368_v31, %v740_v3  ;;  %v448_v21 = vpop.permute.xlu0 %447 }
 0x2e1   :  { %v380_v32 = vadd.f32 %v372_v29, %v729_v1  ;;  %v373_v33 = vmul.f32 %v364_v30, %v801_v60  ;;  %657 = vtanh.f32 %v379_v28 }
 0x2e3   :  { %v381_v36 = vadd.f32 %v373_v33, %v752_v5  ;;  %659 = vtanh.f32 %v380_v32 }
 0x2e5   :  { %661 = vtanh.f32 %v381_v36 }
 0x2e6   :  { %663 = vtanh.f32 %v378_v7 }
 0x2e7   :  { %665 = vtanh.f32 %v375_v35 }
 0x2e8   :  { %667 = vtanh.f32 %v376_v4 }
 0x2e9   :  { %669 = vtanh.f32 %v374_v37 }
 0x2ea   :  { %v656_v1 = vpop.eup %655 }
 0x2ee   :  { %v658_v54 = vpop.eup %657 }
 0x2f0   :  { %v660_v60 = vpop.eup %659 }
 0x2f2   :  { %v662_v38 = vpop.eup %661 }
 0x2f3   :  { %v664_v0 = vpop.eup %663  ;;  %v393_v39 = vpack.c.bf16 %v662_v38, %v658_v54 }
 0x2f4   :  { %v666_v6 = vpop.eup %665  ;;  %v392_v40 = vpack.c.bf16 %v660_v60, %v664_v0 }
 0x2f5   :  { %v668_v41 = vpop.eup %667  ;;  %495 = vmatprep.subr.bf16.mxu0 %v393_v39  ;;  %604 = vmatprep.subr.bf16.mxu1 %v393_v39  ;;  %v391_v3 = vpack.c.bf16 %v656_v1, %v666_v6 }
 0x2f6   :  { %496 = vmatpush1.bf16.msra.mxu0 %v392_v40  ;;  %606 = vmatpush1.bf16.msra.mxu1 %v392_v40  ;;  %v670_v5 = vpop.eup %669 }
 0x2f7   :  { %497 = vmatprep.subr.bf16.mxu0 %v391_v3  ;;  %605 = vmatprep.subr.bf16.mxu1 %v391_v3  ;;  %v390_v2 = vpack.c.bf16 %v668_v41, %v670_v5 }
 0x2fa   :  { %498 = vmatpush1.bf16.msra.mxu0 %v390_v2  ;;  %607 = vmatpush1.bf16.msra.mxu1 %v390_v2 }
 0x2fd   :  { %600 = vmatmul.mubr.msk.bf16.vlgmr.msra.gmra.mxu0 %vm470_vm7, %v619_v42  ;;  %602 = vmatmul.mubr.msk.bf16.vlgmr.msra.gmra.mxu1 %vm470_vm7, %v620_v43 }
 0x2fe   :  { %525 = vmatprep.mubr.bf16.mxu0 %v673_v20  ;;  %545 = vmatprep.mubr.bf16.mxu1 %v673_v20 }
 0x305   :  { %601 = vmatmul.mubr.msk.bf16.gmra.mxu0 %vm470_vm7, %v621_v44  ;;  %603 = vmatmul.mubr.msk.bf16.gmra.mxu1 %vm470_vm7, %v622_v45 }
 0x3bd   :  { %v517_v51 = vpop.f32.mrf.mxu0  ;;  %v537_v52 = vpop.f32.mrf.mxu1 }
 0x3be   :  { %v518_v53 = vadd.f32 %v517_v51, %v413_v46  ;;  %v538_v55 = vadd.f32 %v537_v52, %v433_v50 }
 0x3bf   :  { %v519_v20 = vpop.f32.mrf.mxu0  ;;  %v539_v56 = vpop.f32.mrf.mxu1 }
 0x3c0   :  { %556 = vst [vmem:[%s942_s8] sm:$0xff] %v518_v53  ;;  %564 = vst [vmem:[%s942_s8 + $0x40] sm:$0xff] %v538_v55  ;;  %v520_v58 = vadd.f32 %v519_v20, %v413_v46  ;;  %v540_v59 = vadd.f32 %v539_v56, %v433_v50 }
 0x3c1   :  { %v521_v61 = vpop.f32.mrf.mxu0  ;;  %v541_v62 = vpop.f32.mrf.mxu1 }
 0x3c2   :  { %557 = vst [vmem:[%s942_s8 + $0x8] sm:$0xff] %v520_v58  ;;  %565 = vst [vmem:[%s942_s8 + $0x48] sm:$0xff] %v540_v59  ;;  %v522_v63 = vadd.f32 %v521_v61, %v418_v47  ;;  %v542_v8 = vadd.f32 %v541_v62, %v438_v57 }
 0x3c3   :  { %v523_v9 = vpop.f32.mrf.mxu0  ;;  %v543_v10 = vpop.f32.mrf.mxu1 }
 0x3c4   :  { %558 = vst [vmem:[%s942_s8 + $0x10] sm:$0xff] %v522_v63  ;;  %566 = vst [vmem:[%s942_s8 + $0x50] sm:$0xff] %v542_v8  ;;  %v524_v12 = vadd.f32 %v523_v9, %v418_v47  ;;  %v544_v13 = vadd.f32 %v543_v10, %v438_v57 }
 0x3c5   :  { %v527_v14 = vpop.f32.mrf.mxu0  ;;  %v547_v15 = vpop.f32.mrf.mxu1 }
 0x3c6   :  { %559 = vst [vmem:[%s942_s8 + $0x18] sm:$0xff] %v524_v12  ;;  %567 = vst [vmem:[%s942_s8 + $0x58] sm:$0xff] %v544_v13  ;;  %v528_v16 = vadd.f32 %v527_v14, %v423_v48  ;;  %v548_v17 = vadd.f32 %v547_v15, %v443_v11 }
 0x3c7   :  { %v529_v18 = vpop.f32.mrf.mxu0  ;;  %v549_v19 = vpop.f32.mrf.mxu1 }
 0x3c8   :  { %560 = vst [vmem:[%s942_s8 + $0x20] sm:$0xff] %v528_v16  ;;  %568 = vst [vmem:[%s942_s8 + $0x60] sm:$0xff] %v548_v17  ;;  %v530_v22 = vadd.f32 %v529_v18, %v423_v48  ;;  %v550_v23 = vadd.f32 %v549_v19, %v443_v11 }
 0x3c9   :  { %v531_v24 = vpop.f32.mrf.mxu0  ;;  %v551_v25 = vpop.f32.mrf.mxu1 }
 0x3ca   :  { %561 = vst [vmem:[%s942_s8 + $0x28] sm:$0xff] %v530_v22  ;;  %569 = vst [vmem:[%s942_s8 + $0x68] sm:$0xff] %v550_v23  ;;  %v532_v26 = vadd.f32 %v531_v24, %v428_v49  ;;  %v552_v27 = vadd.f32 %v551_v25, %v448_v21 }
 0x3cb   :  { %v533_v28 = vpop.f32.mrf.mxu0  ;;  %v553_v29 = vpop.f32.mrf.mxu1 }
 0x3cc   :  { %562 = vst [vmem:[%s942_s8 + $0x30] sm:$0xff] %v532_v26  ;;  %570 = vst [vmem:[%s942_s8 + $0x70] sm:$0xff] %v552_v27  ;;  %v534_v30 = vadd.f32 %v533_v28, %v428_v49  ;;  %v554_v31 = vadd.f32 %v553_v29, %v448_v21 }
 0x3ce   :  { %563 = vst [vmem:[%s942_s8 + $0x38] sm:$0xff] %v534_v30  ;;  %571 = vst [vmem:[%s942_s8 + $0x78] sm:$0xff] %v554_v31 }

// kernel: wave_unet_forward.10
= control target key start
LH: loop header
LB: loop body
LE: loop exit
PB: predicated region body
PF: predicated region fallthrough
CT: control target
= control target key end

     0   :  { %s759_s19 = smov 1   ;;  %vm205_vm0 = vcmask 523264   ;;  %v761_v41 = vmov 0   ;;  %vm86_vm1 = vcmask 7168   ;;  %vm129_vm3 = vcmask 1039360   ;;  %s1054_s2 = inlined_call_operand.vmem [shape: f32[32,256], index: 2, kind: input, shape index: {}]   ;;  %s1055_s1 = inlined_call_operand.vmem [shape: f32[32,256], index: 1, kind: input, shape index: {}]   ;;  %s1056_s3 = inlined_call_operand.vmem [shape: bf16[32,192], index: 3, kind: input, shape index: {}]   ;;  %s1057_s4 = inlined_call_operand.vmem [shape: f32[32,1], index: 4, kind: input, shape index: {}]   ;;  %s1058_s0 = inlined_call_operand.vmem [shape: f32[1,256], index: 0, kind: input, shape index: {}]   ;;  %s1059_s6 = inlined_call_operand.vmem [shape: f32[32,1], index: 6, kind: input, shape index: {}]   ;;  %s1060_s5 = inlined_call_operand.vmem [shape: bf16[32,96], index: 5, kind: input, shape index: {}]   ;;  %s1061_s8 = inlined_call_operand.vmem [shape: f32[64,1], index: 8, kind: input, shape index: {}]   ;;  %s1062_s7 = inlined_call_operand.vmem [shape: bf16[64,32], index: 7, kind: input, shape index: {}]   ;;  %s1063_s9 = inlined_call_operand.vmem [shape: f32[64,256], index: 9, kind: output, shape index: {}]  }
   0x1   :  { %v58_v0 = vld [vmem:[%s1054_s2 + $0x20] sm:$0xff]  ;;  %v60_v1 = vld [vmem:[%s1054_s2 + $0x30] sm:$0xff]  ;;  %v59_v4 = vld [vmem:[%s1054_s2 + $0x28] sm:$0xff]  ;;  %682 = vset.pattern.permute.xlu1 %v761_v41  ;;  %681 = vset.pattern.permute.xlu0 %v761_v41  ;;  %vm328_vm4 = vcmask 1031168   ;;  %vm308_vm5 = vcmask 15360   ;;  %vm378_vm7 = vcmask 785408  }
   0x2   :  { %v54_v2 = vld [vmem:[%s1054_s2] sm:$0xff]  ;;  %695 = vtanh.f32 %v58_v0  ;;  %v56_v3 = vld [vmem:[%s1054_s2 + $0x10] sm:$0xff]  ;;  %v61_v5 = vld [vmem:[%s1054_s2 + $0x38] sm:$0xff]  ;;  %417 = vmatprep.mubr.bf16.mxu1 %v761_v41  ;;  %vm534_vm8 = vcmask 261120  }
   0x3   :  { %697 = vtanh.f32 %v60_v1  ;;  %v55_v6 = vld [vmem:[%s1054_s2 + $0x8] sm:$0xff]  ;;  %v57_v7 = vld [vmem:[%s1054_s2 + $0x18] sm:$0xff]  ;;  %v38_v10 = vld [vmem:[%s1055_s1 + $0x20] sm:$0xff] }
   0x4   :  { %699 = vtanh.f32 %v54_v2  ;;  %v39_v8 = vld [vmem:[%s1055_s1 + $0x28] sm:$0xff]  ;;  %v41_v9 = vld [vmem:[%s1055_s1 + $0x38] sm:$0xff]  ;;  %v40_v11 = vld [vmem:[%s1055_s1 + $0x30] sm:$0xff] }
   0x5   :  { %701 = vtanh.f32 %v56_v3  ;;  %v35_v12 = vld [vmem:[%s1055_s1 + $0x8] sm:$0xff]  ;;  %v37_v13 = vld [vmem:[%s1055_s1 + $0x18] sm:$0xff]  ;;  %v34_v14 = vld [vmem:[%s1055_s1] sm:$0xff] }
   0x6   :  { %703 = vtanh.f32 %v59_v4  ;;  %v36_v15 = vld [vmem:[%s1055_s1 + $0x10] sm:$0xff]  ;;  %s760_s1 = smov 127   ;;  %v685_v40 = vld [vmem:[%s1056_s3 + $0x4] ss:$8 sps:$4 sm:$0xff]   ;;  %v166_v42 = vld [vmem:[%s1057_s4 + $0x18] sm:$0xff] }
   0x7   :  { %705 = vtanh.f32 %v61_v5  ;;  %656 = vmatprep.mubr.msk.bf16.mxu0 %vm205_vm0, %v685_v40  ;;  %v165_v43 = vld [vmem:[%s1057_s4 + $0x10] sm:$0xff]  ;;  %v163_v44 = vld [vmem:[%s1057_s4] sm:$0xff]  ;;  %v164_v45 = vld [vmem:[%s1057_s4 + $0x8] sm:$0xff] }
   0x8   :  { %707 = vtanh.f32 %v55_v6  ;;  %vm890_vm2 = vmneg %vm86_vm1 }
   0x9   :  { %709 = vtanh.f32 %v57_v7  ;;  %v683_v7 = vld [vmem:[%s1056_s3] ss:$8 sps:$4 sm:$0xff]   ;;  %vm662_vm6 = vmneg %vm308_vm5 }
   0xa   :  { %711 = vtanh.f32 %v39_v8  ;;  %v686_v8 = vld [vmem:[%s1056_s3 + $0x14] ss:$8 sps:$4 sm:$0xff]  }
   0xb   :  { %713 = vtanh.f32 %v41_v9  ;;  %v688_v9 = vld [vmem:[%s1056_s3 + $0x10] ss:$8 sps:$4 sm:$0xff]   ;;  %s763_s3 = smov 2  }
   0xc   :  { %715 = vtanh.f32 %v38_v10  ;;  %v266_v10 = vlaneseq }
   0xd   :  { %717 = vtanh.f32 %v40_v11 }
   0xe   :  { %719 = vtanh.f32 %v35_v12 }
   0xf   :  { %v696_v16 = vpop.eup %695  ;;  %721 = vtanh.f32 %v37_v13  ;;  %v267_v13 = vshrl.u32 %v266_v10, 7 }
  0x10   :  { %v698_v17 = vpop.eup %697  ;;  %723 = vtanh.f32 %v34_v14 }
  0x11   :  { %v700_v18 = vpop.eup %699  ;;  %v72_v19 = vpack.c.bf16 %v698_v17, %v696_v16  ;;  %725 = vtanh.f32 %v36_v15 }
  0x12   :  { %v702_v20 = vpop.eup %701 }
  0x13   :  { %v704_v21 = vpop.eup %703  ;;  %107 = vrot.lane.b32.xlu0 %v72_v19, %s759_s19  ;;  %v70_v22 = vpack.c.bf16 %v702_v20, %v700_v18  ;;  %v268_v18 = vsub.s32 0, %v267_v13 }
  0x14   :  { %v706_v23 = vpop.eup %705 }
  0x15   :  { %v708_v24 = vpop.eup %707  ;;  %103 = vrot.lane.b32.xlu1 %v70_v22, %s759_s19  ;;  %v73_v25 = vpack.c.bf16 %v706_v23, %v704_v21 }
  0x16   :  { %v710_v26 = vpop.eup %709 }
  0x17   :  { %v712_v27 = vpop.eup %711  ;;  %109 = vrot.lane.b32.xlu0 %v73_v25, %s759_s19  ;;  %v71_v28 = vpack.c.bf16 %v710_v26, %v708_v24  ;;  %212 = vmatprep.subr.bf16.mxu0 %v73_v25 }
  0x18   :  { %v714_v29 = vpop.eup %713  ;;  %213 = vmatpush1.bf16.msra.mxu0 %v72_v19 }
  0x19   :  { %v716_v30 = vpop.eup %715  ;;  %105 = vrot.lane.b32.xlu1 %v71_v28, %s759_s19  ;;  %v53_v31 = vpack.c.bf16 %v714_v29, %v712_v27  ;;  %214 = vmatprep.subr.bf16.mxu0 %v71_v28 }
  0x1a   :  { %v718_v32 = vpop.eup %717 }
  0x1b   :  { %v720_v33 = vpop.eup %719  ;;  %v52_v34 = vpack.c.bf16 %v718_v32, %v716_v30 }
  0x1c   :  { %v722_v35 = vpop.eup %721  ;;  %215 = vmatpush1.bf16.msra.mxu0 %v70_v22 }
  0x1d   :  { %v724_v36 = vpop.eup %723  ;;  %84 = vrot.lane.b32.xlu1 %v53_v31, %s759_s19  ;;  %82 = vrot.lane.b32.xlu0 %v52_v34, %s759_s19  ;;  %v51_v37 = vpack.c.bf16 %v722_v35, %v720_v33 }
  0x1e   :  { %v726_v38 = vpop.eup %725  ;;  %216 = vmatprep.subr.bf16.mxu0 %v53_v31 }
  0x1f   :  { %v50_v39 = vpack.c.bf16 %v726_v38, %v724_v36 }
  0x20   :  { %217 = vmatpush1.bf16.msra.mxu0 %v52_v34 }
  0x21   :  { %80 = vrot.lane.b32.xlu1 %v51_v37, %s759_s19  ;;  %78 = vrot.lane.b32.xlu0 %v50_v39, %s759_s19 }
  0x22   :  { %218 = vmatprep.subr.bf16.mxu0 %v51_v37 }
  0x24   :  { %219 = vmatpush1.bf16.msra.mxu0 %v50_v39 }
  0x25   :  { %147 = vrot.lane.b32.xlu1 %v73_v25, %s760_s1  ;;  %145 = vrot.lane.b32.xlu0 %v72_v19, %s760_s1  ;;  %v33_v19 = vld [vmem:[%s1058_s0] sm:$0x3]  ;;  %s762_s0 = smov 126  }
  0x26   :  { %v927_v25 = vrot.slane %v33_v19, %v268_v18  ;;  %v689_v18 = vld [vmem:[%s1060_s5] sm:$0xff]  }
  0x29   :  { %143 = vrot.lane.b32.xlu1 %v71_v28, %s760_s1  ;;  %141 = vrot.lane.b32.xlu0 %v70_v22, %s760_s1  ;;  %v272_v22 = vsub.s32 1, %v267_v13 }
  0x2d   :  { %127 = vrot.lane.b32.xlu1 %v53_v31, %s760_s1  ;;  %125 = vrot.lane.b32.xlu0 %v52_v34, %s760_s1  ;;  %v930_v31 = vrot.slane %v33_v19, %v272_v22  ;;  %v690_v19 = vld [vmem:[%s1060_s5 + $0x8] sm:$0xff]  }
  0x31   :  { %123 = vrot.lane.b32.xlu1 %v51_v37, %s760_s1  ;;  %121 = vrot.lane.b32.xlu0 %v50_v39, %s760_s1 }
  0x35   :  { %184 = vperm.xlu1 %682, %v166_v42   ;;  %179 = vperm.xlu0 %681, %v165_v43  }
  0x39   :  { %169 = vperm.xlu1 %682, %v163_v44   ;;  %174 = vperm.xlu0 %681, %v164_v45  }
  0x85   :  { %v108_v46 = vpop.permute.xlu0 %107 }
  0x87   :  { %v104_v47 = vpop.permute.xlu1 %103 }
  0x89   :  { %v110_v48 = vpop.permute.xlu0 %109 }
  0x8a   :  { %v112_v50 = vsel %vm86_vm1, %v108_v46, %v110_v48 }
  0x8b   :  { %v106_v51 = vpop.permute.xlu1 %105  ;;  %220 = vmatprep.subr.bf16.mxu0 %v112_v50 }
  0x8c   :  { %645 = vmatpush1.bf16.msk.msra.mxu0 %vm890_vm2, %v108_v46  ;;  %v111_v52 = vsel %vm86_vm1, %v104_v47, %v106_v51 }
  0x8d   :  { %222 = vmatprep.subr.bf16.mxu0 %v111_v52 }
  0x8f   :  { %v85_v53 = vpop.permute.xlu1 %84  ;;  %v83_v54 = vpop.permute.xlu0 %82 }
  0x90   :  { %647 = vmatpush1.bf16.msk.msra.mxu0 %vm890_vm2, %v104_v47  ;;  %v88_v55 = vsel %vm86_vm1, %v83_v54, %v85_v53 }
  0x91   :  { %224 = vmatprep.subr.bf16.mxu0 %v88_v55 }
  0x93   :  { %v81_v56 = vpop.permute.xlu1 %80  ;;  %v79_v57 = vpop.permute.xlu0 %78 }
  0x94   :  { %649 = vmatpush1.bf16.msk.msra.mxu0 %vm890_vm2, %v83_v54  ;;  %v87_v58 = vsel %vm86_vm1, %v79_v57, %v81_v56 }
  0x95   :  { %226 = vmatprep.subr.bf16.mxu0 %v87_v58  ;;  %v346_v58 = vld [vmem:[%s1059_s6 + $0x10] sm:$0xff] }
  0x97   :  { %v148_v59 = vpop.permute.xlu1 %147  ;;  %v146_v60 = vpop.permute.xlu0 %145 }
  0x98   :  { %651 = vmatpush1.bf16.msk.msra.mxu0 %vm890_vm2, %v79_v57  ;;  %v150_v61 = vsel %vm129_vm3, %v146_v60, %v148_v59  ;;  %v344_v60 = vld [vmem:[%s1059_s6] sm:$0xff] }
  0x99   :  { %652 = vmatprep.subr.msk.bf16.mxu0 %vm129_vm3, %v148_v59  ;;  %v347_v59 = vld [vmem:[%s1059_s6 + $0x18] sm:$0xff] }
  0x9b   :  { %v144_v62 = vpop.permute.xlu1 %143  ;;  %v142_v63 = vpop.permute.xlu0 %141 }
  0x9c   :  { %237 = vmatpush2.bf16.msra.mxu0 %v150_v61  ;;  %v149_v0 = vsel %vm129_vm3, %v142_v63, %v144_v62  ;;  %v345_v61 = vld [vmem:[%s1059_s6 + $0x8] sm:$0xff] }
  0x9d   :  { %653 = vmatprep.subr.msk.bf16.mxu0 %vm129_vm3, %v144_v62  ;;  %v466_v62 = vld [vmem:[%s1061_s8] sm:$0xff]  ;;  %v467_v63 = vld [vmem:[%s1061_s8 + $0x8] sm:$0xff] }
  0x9f   :  { %v128_v1 = vpop.permute.xlu1 %127  ;;  %v126_v2 = vpop.permute.xlu0 %125 }
  0xa0   :  { %239 = vmatpush2.bf16.msra.mxu0 %v149_v0  ;;  %v131_v3 = vsel %vm129_vm3, %v126_v2, %v128_v1  ;;  %v468_v0 = vld [vmem:[%s1061_s8 + $0x10] sm:$0xff]  ;;  %v470_v2 = vld [vmem:[%s1061_s8 + $0x20] sm:$0xff] }
  0xa1   :  { %654 = vmatprep.subr.msk.bf16.mxu0 %vm129_vm3, %v128_v1  ;;  %v469_v1 = vld [vmem:[%s1061_s8 + $0x18] sm:$0xff] }
  0xa3   :  { %v124_v4 = vpop.permute.xlu1 %123  ;;  %v122_v5 = vpop.permute.xlu0 %121 }
  0xa4   :  { %241 = vmatpush2.bf16.msra.mxu0 %v131_v3  ;;  %v130_v6 = vsel %vm129_vm3, %v122_v5, %v124_v4  ;;  %v471_v3 = vld [vmem:[%s1061_s8 + $0x28] sm:$0xff]  ;;  %v473_v5 = vld [vmem:[%s1061_s8 + $0x38] sm:$0xff] }
  0xa5   :  { %655 = vmatprep.subr.msk.bf16.mxu0 %vm129_vm3, %v124_v4  ;;  %v472_v4 = vld [vmem:[%s1061_s8 + $0x30] sm:$0xff] }
  0xa8   :  { %243 = vmatpush2.bf16.msra.mxu0 %v130_v6 }
  0xab   :  { %245 = vmatmul.mubr.bf16.vlgmr.msra.gmra.mxu0 %v683_v7 }
  0xac   :  { %657 = vmatprep.mubr.msk.bf16.mxu0 %vm205_vm0, %v686_v8 }
  0xb0   :  { %v180_v11 = vpop.permute.xlu0 %179  ;;  %v185_v15 = vpop.permute.xlu1 %184 }
  0xb3   :  { %255 = vmatmul.mubr.bf16.gmra.mxu0 %v688_v9 }
  0xb4   :  { %v175_v16 = vpop.permute.xlu0 %174  ;;  %v170_v24 = vpop.permute.xlu1 %169 }
 0x16b   :  { %v246_v12 = vpop.f32.mrf.mxu0 }
 0x16c   :  { %v247_v30 = vadd.f32 %v246_v12, %v170_v24 }
 0x16d   :  { %v248_v14 = vpop.f32.mrf.mxu0 }
 0x16e   :  { %v249_v38 = vadd.f32 %v248_v14, %v170_v24  ;;  %v276_v42 = vmul.f32 %v927_v25, %v247_v30 }
 0x16f   :  { %v250_v17 = vpop.f32.mrf.mxu0 }
 0x170   :  { %v251_v21 = vadd.f32 %v250_v17, %v175_v16  ;;  %v277_v45 = vmul.f32 %v930_v31, %v249_v38 }
 0x171   :  { %v252_v20 = vpop.f32.mrf.mxu0 }
 0x172   :  { %v278_v28 = vmul.f32 %v927_v25, %v251_v21  ;;  %v253_v34 = vadd.f32 %v252_v20, %v175_v16 }
 0x173   :  { %v256_v23 = vpop.f32.mrf.mxu0 }
 0x174   :  { %v257_v26 = vadd.f32 %v256_v23, %v180_v11  ;;  %727 = vtanh.f32 %v278_v28  ;;  %v279_v43 = vmul.f32 %v930_v31, %v253_v34 }
 0x175   :  { %v258_v27 = vpop.f32.mrf.mxu0 }
 0x176   :  { %v259_v29 = vadd.f32 %v258_v27, %v180_v11  ;;  %v280_v32 = vmul.f32 %v927_v25, %v257_v26 }
 0x177   :  { %v260_v33 = vpop.f32.mrf.mxu0 }
 0x178   :  { %v261_v35 = vadd.f32 %v260_v33, %v185_v15  ;;  %v281_v36 = vmul.f32 %v930_v31, %v259_v29  ;;  %729 = vtanh.f32 %v280_v32 }
 0x179   :  { %v262_v37 = vpop.f32.mrf.mxu0 }
 0x17a   :  { %v282_v39 = vmul.f32 %v927_v25, %v261_v35  ;;  %v263_v40 = vadd.f32 %v262_v37, %v185_v15 }
 0x17c   :  { %731 = vtanh.f32 %v282_v39  ;;  %v283_v44 = vmul.f32 %v930_v31, %v263_v40 }
 0x17d   :  { %733 = vtanh.f32 %v281_v36 }
 0x17e   :  { %735 = vtanh.f32 %v283_v44 }
 0x17f   :  { %737 = vtanh.f32 %v276_v42 }
 0x180   :  { %739 = vtanh.f32 %v279_v43 }
 0x181   :  { %741 = vtanh.f32 %v277_v45  ;;  %v728_v46 = vpop.eup %727 }
 0x185   :  { %v730_v47 = vpop.eup %729 }
 0x189   :  { %v732_v48 = vpop.eup %731 }
 0x18a   :  { %v734_v49 = vpop.eup %733  ;;  %v294_v50 = vpack.c.bf16 %v732_v48, %v730_v47 }
 0x18b   :  { %v736_v51 = vpop.eup %735 }
 0x18c   :  { %v738_v52 = vpop.eup %737  ;;  %324 = vrot.lane.b32.xlu1 %v294_v50, %s762_s0  ;;  %v295_v53 = vpack.c.bf16 %v736_v51, %v734_v49 }
 0x18d   :  { %v740_v54 = vpop.eup %739  ;;  %v292_v55 = vpack.c.bf16 %v728_v46, %v738_v52 }
 0x18e   :  { %326 = vrot.lane.b32.xlu0 %v295_v53, %s762_s0  ;;  %v742_v56 = vpop.eup %741 }
 0x18f   :  { %v293_v57 = vpack.c.bf16 %v740_v54, %v742_v56 }
 0x190   :  { %320 = vrot.lane.b32.xlu1 %v292_v55, %s762_s0 }
 0x192   :  { %322 = vrot.lane.b32.xlu0 %v293_v57, %s762_s0 }
 0x194   :  { %304 = vrot.lane.b32.xlu1 %v294_v50, %s763_s3 }
 0x196   :  { %306 = vrot.lane.b32.xlu0 %v295_v53, %s763_s3 }
 0x198   :  { %300 = vrot.lane.b32.xlu1 %v292_v55, %s763_s3 }
 0x19a   :  { %302 = vrot.lane.b32.xlu0 %v293_v57, %s763_s3 }
 0x19c   :  { %360 = vperm.xlu1 %682, %v346_v58  }
 0x19e   :  { %365 = vperm.xlu0 %681, %v347_v59  }
 0x1a0   :  { %350 = vperm.xlu1 %682, %v344_v60  }
 0x1a2   :  { %355 = vperm.xlu0 %681, %v345_v61  }
 0x1a4   :  { %476 = vperm.xlu1 %682, %v466_v62   ;;  %v692_v62 = vld [vmem:[%s1062_s7 + $0x8] sm:$0xff]  }
 0x1a6   :  { %481 = vperm.xlu0 %681, %v467_v63   ;;  %v693_v63 = vld [vmem:[%s1062_s7 + $0x10] sm:$0xff]  }
 0x1a8   :  { %486 = vperm.xlu1 %682, %v468_v0   ;;  %v694_v0 = vld [vmem:[%s1062_s7 + $0x18] sm:$0xff]  }
 0x1aa   :  { %491 = vperm.xlu0 %681, %v469_v1  }
 0x1ac   :  { %496 = vperm.xlu1 %682, %v470_v2  }
 0x1ae   :  { %501 = vperm.xlu0 %681, %v471_v3  }
 0x1b0   :  { %506 = vperm.xlu1 %682, %v472_v4  }
 0x1b2   :  { %511 = vperm.xlu0 %681, %v473_v5  }
 0x1fe   :  { %v325_v6 = vpop.permute.xlu1 %324 }
 0x200   :  { %v327_v7 = vpop.permute.xlu0 %326 }
 0x201   :  { %660 = vmatprep.subr.msk.bf16.mxu1 %vm328_vm4, %v327_v7  ;;  %v330_v8 = vsel %vm328_vm4, %v325_v6, %v327_v7 }
 0x202   :  { %390 = vmatpush1.bf16.msra.mxu1 %v330_v8  ;;  %v321_v9 = vpop.permute.xlu1 %320 }
 0x204   :  { %v323_v10 = vpop.permute.xlu0 %322 }
 0x205   :  { %661 = vmatprep.subr.msk.bf16.mxu1 %vm328_vm4, %v323_v10  ;;  %v329_v11 = vsel %vm328_vm4, %v321_v9, %v323_v10 }
 0x206   :  { %392 = vmatpush1.bf16.msra.mxu1 %v329_v11  ;;  %v305_v13 = vpop.permute.xlu1 %304 }
 0x207   :  { %393 = vmatprep.subr.bf16.mxu1 %v295_v53 }
 0x208   :  { %v307_v12 = vpop.permute.xlu0 %306 }
 0x209   :  { %v310_v14 = vsel %vm308_vm5, %v305_v13, %v307_v12 }
 0x20a   :  { %394 = vmatpush1.bf16.msra.mxu1 %v294_v50  ;;  %v301_v16 = vpop.permute.xlu1 %300 }
 0x20b   :  { %395 = vmatprep.subr.bf16.mxu1 %v293_v57 }
 0x20c   :  { %v303_v15 = vpop.permute.xlu0 %302 }
 0x20d   :  { %v309_v17 = vsel %vm308_vm5, %v301_v16, %v303_v15 }
 0x20e   :  { %396 = vmatpush1.bf16.msra.mxu1 %v292_v55 }
 0x20f   :  { %397 = vmatprep.subr.bf16.mxu1 %v310_v14 }
 0x212   :  { %663 = vmatpush1.bf16.msk.msra.mxu1 %vm662_vm6, %v305_v13 }
 0x213   :  { %399 = vmatprep.subr.bf16.mxu1 %v309_v17 }
 0x216   :  { %665 = vmatpush1.bf16.msk.msra.mxu1 %vm662_vm6, %v301_v16 }
 0x217   :  { %v361_v24 = vpop.permute.xlu1 %360 }
 0x219   :  { %666 = vmatmul.mubr.msk.bf16.vlgmr.msra.gmra.mxu1 %vm378_vm7, %v689_v18  ;;  %v366_v21 = vpop.permute.xlu0 %365 }
 0x21a   :  { %427 = vmatprep.mubr.bf16.mxu1 %v761_v41 }
 0x21b   :  { %v351_v33 = vpop.permute.xlu1 %350 }
 0x21d   :  { %v356_v27 = vpop.permute.xlu0 %355 }
 0x21f   :  { %v477_v1 = vpop.permute.xlu1 %476 }
 0x221   :  { %667 = vmatmul.mubr.msk.bf16.gmra.mxu1 %vm378_vm7, %v690_v19  ;;  %v482_v6 = vpop.permute.xlu0 %481 }
 0x222   :  { %579 = vmatprep.mubr.bf16.mxu1 %v761_v41 }
 0x223   :  { %v487_v10 = vpop.permute.xlu1 %486 }
 0x225   :  { %v492_v15 = vpop.permute.xlu0 %491 }
 0x2d9   :  { %v419_v20 = vpop.f32.mrf.mxu1 }
 0x2da   :  { %v420_v45 = vadd.f32 %v419_v20, %v351_v33  ;;  %v497_v20 = vpop.permute.xlu1 %496 }
 0x2db   :  { %v421_v22 = vpop.f32.mrf.mxu1 }
 0x2dc   :  { %v422_v37 = vadd.f32 %v421_v22, %v351_v33  ;;  %v438_v50 = vmul.f32 %v420_v45, %v927_v25 }
 0x2dd   :  { %v423_v23 = vpop.f32.mrf.mxu1 }
 0x2de   :  { %v424_v40 = vadd.f32 %v423_v23, %v356_v27  ;;  %v439_v47 = vmul.f32 %v422_v37, %v930_v31 }
 0x2df   :  { %v425_v26 = vpop.f32.mrf.mxu1 }
 0x2e0   :  { %v426_v28 = vadd.f32 %v425_v26, %v356_v27  ;;  %v440_v49 = vmul.f32 %v424_v40, %v927_v25  ;;  %v502_v26 = vpop.permute.xlu0 %501 }
 0x2e1   :  { %v429_v29 = vpop.f32.mrf.mxu1 }
 0x2e2   :  { %v441_v34 = vmul.f32 %v426_v28, %v930_v31  ;;  %v430_v35 = vadd.f32 %v429_v29, %v361_v24 }
 0x2e3   :  { %v431_v30 = vpop.f32.mrf.mxu1 }
 0x2e4   :  { %v432_v32 = vadd.f32 %v431_v30, %v361_v24  ;;  %743 = vtanh.f32 %v441_v34  ;;  %v442_v46 = vmul.f32 %v430_v35, %v927_v25  ;;  %v512_v37 = vpop.permute.xlu0 %511 }
 0x2e5   :  { %v433_v36 = vpop.f32.mrf.mxu1 }
 0x2e6   :  { %v443_v38 = vmul.f32 %v432_v32, %v930_v31  ;;  %v434_v39 = vadd.f32 %v433_v36, %v366_v21  ;;  %v507_v32 = vpop.permute.xlu1 %506 }
 0x2e7   :  { %v435_v42 = vpop.f32.mrf.mxu1 }
 0x2e8   :  { %v444_v43 = vmul.f32 %v434_v39, %v927_v25  ;;  %v436_v44 = vadd.f32 %v435_v42, %v366_v21  ;;  %745 = vtanh.f32 %v443_v38  ;;  %v691_v25 = vld [vmem:[%s1062_s7] sm:$0xff]  }
 0x2ea   :  { %v445_v48 = vmul.f32 %v436_v44, %v930_v31  ;;  %747 = vtanh.f32 %v444_v43 }
 0x2ec   :  { %749 = vtanh.f32 %v445_v48 }
 0x2ed   :  { %751 = vtanh.f32 %v442_v46 }
 0x2ee   :  { %753 = vtanh.f32 %v439_v47 }
 0x2ef   :  { %755 = vtanh.f32 %v440_v49 }
 0x2f0   :  { %757 = vtanh.f32 %v438_v50 }
 0x2f1   :  { %v744_v51 = vpop.eup %743 }
 0x2f5   :  { %v746_v52 = vpop.eup %745 }
 0x2f7   :  { %v748_v53 = vpop.eup %747 }
 0x2f9   :  { %v750_v54 = vpop.eup %749 }
 0x2fa   :  { %v752_v55 = vpop.eup %751  ;;  %v457_v56 = vpack.c.bf16 %v750_v54, %v746_v52 }
 0x2fb   :  { %v754_v57 = vpop.eup %753  ;;  %v456_v58 = vpack.c.bf16 %v748_v53, %v752_v55 }
 0x2fc   :  { %v756_v59 = vpop.eup %755  ;;  %559 = vmatprep.subr.bf16.mxu1 %v457_v56  ;;  %v455_v31 = vpack.c.bf16 %v744_v51, %v754_v57 }
 0x2fd   :  { %560 = vmatpush1.bf16.msra.mxu1 %v456_v58  ;;  %v758_v60 = vpop.eup %757 }
 0x2fe   :  { %561 = vmatprep.subr.bf16.mxu1 %v455_v31  ;;  %v454_v61 = vpack.c.bf16 %v756_v59, %v758_v60 }
 0x301   :  { %562 = vmatpush1.bf16.msra.mxu1 %v454_v61 }
 0x304   :  { %672 = vmatmul.mubr.msk.bf16.vlgmr.msra.gmra.mxu1 %vm534_vm8, %v691_v25 }
 0x305   :  { %589 = vmatprep.mubr.bf16.mxu1 %v761_v41 }
 0x30c   :  { %673 = vmatmul.mubr.msk.bf16.gmra.mxu1 %vm534_vm8, %v692_v62 }
 0x30d   :  { %599 = vmatprep.mubr.bf16.mxu1 %v761_v41 }
 0x314   :  { %674 = vmatmul.mubr.msk.bf16.gmra.mxu1 %vm534_vm8, %v693_v63 }
 0x315   :  { %609 = vmatprep.mubr.bf16.mxu1 %v761_v41 }
 0x31c   :  { %675 = vmatmul.mubr.msk.bf16.gmra.mxu1 %vm534_vm8, %v694_v0 }
 0x3c4   :  { %v581_v2 = vpop.f32.mrf.mxu1 }
 0x3c5   :  { %v582_v3 = vadd.f32 %v581_v2, %v477_v1 }
 0x3c6   :  { %v583_v4 = vpop.f32.mrf.mxu1 }
 0x3c7   :  { %620 = vst [vmem:[%s1063_s9] sm:$0xff] %v582_v3  ;;  %v584_v5 = vadd.f32 %v583_v4, %v477_v1 }
 0x3c8   :  { %v585_v7 = vpop.f32.mrf.mxu1 }
 0x3c9   :  { %621 = vst [vmem:[%s1063_s9 + $0x8] sm:$0xff] %v584_v5  ;;  %v586_v41 = vadd.f32 %v585_v7, %v482_v6 }
 0x3ca   :  { %v587_v8 = vpop.f32.mrf.mxu1 }
 0x3cb   :  { %622 = vst [vmem:[%s1063_s9 + $0x10] sm:$0xff] %v586_v41  ;;  %v588_v9 = vadd.f32 %v587_v8, %v482_v6 }
 0x3cc   :  { %v591_v11 = vpop.f32.mrf.mxu1 }
 0x3cd   :  { %623 = vst [vmem:[%s1063_s9 + $0x18] sm:$0xff] %v588_v9  ;;  %v592_v12 = vadd.f32 %v591_v11, %v487_v10 }
 0x3ce   :  { %v593_v13 = vpop.f32.mrf.mxu1 }
 0x3cf   :  { %624 = vst [vmem:[%s1063_s9 + $0x20] sm:$0xff] %v592_v12  ;;  %v594_v14 = vadd.f32 %v593_v13, %v487_v10 }
 0x3d0   :  { %v595_v16 = vpop.f32.mrf.mxu1 }
 0x3d1   :  { %625 = vst [vmem:[%s1063_s9 + $0x28] sm:$0xff] %v594_v14  ;;  %v596_v17 = vadd.f32 %v595_v16, %v492_v15 }
 0x3d2   :  { %v597_v18 = vpop.f32.mrf.mxu1 }
 0x3d3   :  { %626 = vst [vmem:[%s1063_s9 + $0x30] sm:$0xff] %v596_v17  ;;  %v598_v19 = vadd.f32 %v597_v18, %v492_v15 }
 0x3d4   :  { %v601_v21 = vpop.f32.mrf.mxu1 }
 0x3d5   :  { %627 = vst [vmem:[%s1063_s9 + $0x38] sm:$0xff] %v598_v19  ;;  %v602_v22 = vadd.f32 %v601_v21, %v497_v20 }
 0x3d6   :  { %v603_v23 = vpop.f32.mrf.mxu1 }
 0x3d7   :  { %628 = vst [vmem:[%s1063_s9 + $0x40] sm:$0xff] %v602_v22  ;;  %v604_v24 = vadd.f32 %v603_v23, %v497_v20 }
 0x3d8   :  { %v605_v27 = vpop.f32.mrf.mxu1 }
 0x3d9   :  { %629 = vst [vmem:[%s1063_s9 + $0x48] sm:$0xff] %v604_v24  ;;  %v606_v28 = vadd.f32 %v605_v27, %v502_v26 }
 0x3da   :  { %v607_v29 = vpop.f32.mrf.mxu1 }
 0x3db   :  { %630 = vst [vmem:[%s1063_s9 + $0x50] sm:$0xff] %v606_v28  ;;  %v608_v30 = vadd.f32 %v607_v29, %v502_v26 }
 0x3dc   :  { %v611_v33 = vpop.f32.mrf.mxu1 }
 0x3dd   :  { %631 = vst [vmem:[%s1063_s9 + $0x58] sm:$0xff] %v608_v30  ;;  %v612_v34 = vadd.f32 %v611_v33, %v507_v32 }
 0x3de   :  { %v613_v35 = vpop.f32.mrf.mxu1 }
 0x3df   :  { %632 = vst [vmem:[%s1063_s9 + $0x60] sm:$0xff] %v612_v34  ;;  %v614_v36 = vadd.f32 %v613_v35, %v507_v32 }
 0x3e0   :  { %v615_v38 = vpop.f32.mrf.mxu1 }
 0x3e1   :  { %633 = vst [vmem:[%s1063_s9 + $0x68] sm:$0xff] %v614_v36  ;;  %v616_v39 = vadd.f32 %v615_v38, %v512_v37 }
 0x3e2   :  { %v617_v40 = vpop.f32.mrf.mxu1 }
 0x3e3   :  { %634 = vst [vmem:[%s1063_s9 + $0x70] sm:$0xff] %v616_v39  ;;  %v618_v42 = vadd.f32 %v617_v40, %v512_v37 }
 0x3e5   :  { %635 = vst [vmem:[%s1063_s9 + $0x78] sm:$0xff] %v618_v42 }

// kernel: wave_unet_forward.11
= control target key start
LH: loop header
LB: loop body
LE: loop exit
PB: predicated region body
PF: predicated region fallthrough
CT: control target
= control target key end

     0   :  { %s658_s19 = smov 1   ;;  %vm207_vm0 = vcmask 523264   ;;  %v660_v41 = vmov 0   ;;  %vm88_vm1 = vcmask 7168   ;;  %vm131_vm3 = vcmask 1039360   ;;  %s887_s2 = inlined_call_operand.vmem [shape: f32[32,256], index: 2, kind: input, shape index: {}]   ;;  %s888_s1 = inlined_call_operand.vmem [shape: f32[32,256], index: 1, kind: input, shape index: {}]   ;;  %s889_s3 = inlined_call_operand.vmem [shape: bf16[32,192], index: 3, kind: input, shape index: {}]   ;;  %s890_s4 = inlined_call_operand.vmem [shape: f32[32,1], index: 4, kind: input, shape index: {}]   ;;  %s891_s8 = inlined_call_operand.<no memory space> [shape: f32[1,1], index: 8, kind: input, shape index: {}]   ;;  %s892_s0 = inlined_call_operand.vmem [shape: f32[1,256], index: 0, kind: input, shape index: {}]   ;;  %s893_s6 = inlined_call_operand.vmem [shape: f32[32,1], index: 6, kind: input, shape index: {}]   ;;  %s894_s5 = inlined_call_operand.vmem [shape: bf16[32,96], index: 5, kind: input, shape index: {}]   ;;  %s895_s7 = inlined_call_operand.vmem [shape: bf16[1,32], index: 7, kind: input, shape index: {}]   ;;  %s896_s9 = inlined_call_operand.vmem [shape: f32[1,256], index: 9, kind: output, shape index: {}]  }
   0x1   :  { %v60_v0 = vld [vmem:[%s887_s2 + $0x20] sm:$0xff]  ;;  %v62_v1 = vld [vmem:[%s887_s2 + $0x30] sm:$0xff]  ;;  %v61_v4 = vld [vmem:[%s887_s2 + $0x28] sm:$0xff]  ;;  %581 = vset.pattern.permute.xlu1 %v660_v41  ;;  %580 = vset.pattern.permute.xlu0 %v660_v41  ;;  %vm330_vm4 = vcmask 1031168   ;;  %vm310_vm5 = vcmask 15360   ;;  %vm380_vm7 = vcmask 785408  }
   0x2   :  { %v56_v2 = vld [vmem:[%s887_s2] sm:$0xff]  ;;  %590 = vtanh.f32 %v60_v0  ;;  %v58_v3 = vld [vmem:[%s887_s2 + $0x10] sm:$0xff]  ;;  %v63_v5 = vld [vmem:[%s887_s2 + $0x38] sm:$0xff]  ;;  %419 = vmatprep.mubr.bf16.mxu1 %v660_v41  ;;  %vm471_vm8 = vcmask 261120  }
   0x3   :  { %592 = vtanh.f32 %v62_v1  ;;  %v57_v6 = vld [vmem:[%s887_s2 + $0x8] sm:$0xff]  ;;  %v59_v7 = vld [vmem:[%s887_s2 + $0x18] sm:$0xff]  ;;  %v40_v10 = vld [vmem:[%s888_s1 + $0x20] sm:$0xff] }
   0x4   :  { %594 = vtanh.f32 %v56_v2  ;;  %v41_v8 = vld [vmem:[%s888_s1 + $0x28] sm:$0xff]  ;;  %v43_v9 = vld [vmem:[%s888_s1 + $0x38] sm:$0xff]  ;;  %v42_v11 = vld [vmem:[%s888_s1 + $0x30] sm:$0xff] }
   0x5   :  { %596 = vtanh.f32 %v58_v3  ;;  %v37_v12 = vld [vmem:[%s888_s1 + $0x8] sm:$0xff]  ;;  %v39_v13 = vld [vmem:[%s888_s1 + $0x18] sm:$0xff]  ;;  %v36_v14 = vld [vmem:[%s888_s1] sm:$0xff] }
   0x6   :  { %598 = vtanh.f32 %v61_v4  ;;  %v38_v15 = vld [vmem:[%s888_s1 + $0x10] sm:$0xff]  ;;  %s659_s1 = smov 127   ;;  %v584_v40 = vld [vmem:[%s889_s3 + $0x4] ss:$8 sps:$4 sm:$0xff]   ;;  %v168_v42 = vld [vmem:[%s890_s4 + $0x18] sm:$0xff] }
   0x7   :  { %600 = vtanh.f32 %v63_v5  ;;  %561 = vmatprep.mubr.msk.bf16.mxu0 %vm207_vm0, %v584_v40  ;;  %v167_v43 = vld [vmem:[%s890_s4 + $0x10] sm:$0xff]  ;;  %v165_v44 = vld [vmem:[%s890_s4] sm:$0xff]  ;;  %v166_v45 = vld [vmem:[%s890_s4 + $0x8] sm:$0xff] }
   0x8   :  { %602 = vtanh.f32 %v57_v6  ;;  %vm790_vm2 = vmneg %vm88_vm1 }
   0x9   :  { %604 = vtanh.f32 %v59_v7  ;;  %v582_v7 = vld [vmem:[%s889_s3] ss:$8 sps:$4 sm:$0xff]   ;;  %vm567_vm6 = vmneg %vm310_vm5 }
   0xa   :  { %606 = vtanh.f32 %v41_v8  ;;  %v585_v8 = vld [vmem:[%s889_s3 + $0x14] ss:$8 sps:$4 sm:$0xff]  }
   0xb   :  { %608 = vtanh.f32 %v43_v9  ;;  %v587_v9 = vld [vmem:[%s889_s3 + $0x10] ss:$8 sps:$4 sm:$0xff]  }
   0xc   :  { %610 = vtanh.f32 %v40_v10  ;;  %v14_v10 = vstv %s891_s8  ;;  %s662_s8 = smov 2  }
   0xd   :  { %612 = vtanh.f32 %v42_v11  ;;  %15 = vst [vmem:[#allocation2] sm:$0x1] %v14_v10  ;;  %v268_v11 = vlaneseq }
   0xe   :  { %614 = vtanh.f32 %v37_v12 }
   0xf   :  { %v591_v16 = vpop.eup %590  ;;  %616 = vtanh.f32 %v39_v13  ;;  %vm538_vm9 = vcmp.lt.s32.totalorder %v268_v11, 256 }
  0x10   :  { %v593_v17 = vpop.eup %592  ;;  %618 = vtanh.f32 %v36_v14  ;;  %v828_v14 = vshrl.u32 %v268_v11, 7 }
  0x11   :  { %v595_v18 = vpop.eup %594  ;;  %v74_v19 = vpack.c.bf16 %v593_v17, %v591_v16  ;;  %620 = vtanh.f32 %v38_v15 }
  0x12   :  { %v597_v20 = vpop.eup %596 }
  0x13   :  { %v599_v21 = vpop.eup %598  ;;  %109 = vrot.lane.b32.xlu0 %v74_v19, %s658_s19  ;;  %v72_v22 = vpack.c.bf16 %v597_v20, %v595_v18  ;;  %v35_v20 = vld [vmem:[%s892_s0] sm:$0x3]  ;;  %s661_s0 = smov 126  }
  0x14   :  { %v601_v23 = vpop.eup %600 }
  0x15   :  { %v603_v24 = vpop.eup %602  ;;  %105 = vrot.lane.b32.xlu1 %v72_v22, %s658_s19  ;;  %v75_v25 = vpack.c.bf16 %v601_v23, %v599_v21  ;;  %v274_v23 = vsub.s32 1, %v828_v14 }
  0x16   :  { %v605_v26 = vpop.eup %604 }
  0x17   :  { %v607_v27 = vpop.eup %606  ;;  %111 = vrot.lane.b32.xlu0 %v75_v25, %s658_s19  ;;  %v73_v28 = vpack.c.bf16 %v605_v26, %v603_v24  ;;  %214 = vmatprep.subr.bf16.mxu0 %v75_v25 }
  0x18   :  { %v609_v29 = vpop.eup %608  ;;  %215 = vmatpush1.bf16.msra.mxu0 %v74_v19 }
  0x19   :  { %v611_v30 = vpop.eup %610  ;;  %107 = vrot.lane.b32.xlu1 %v73_v28, %s658_s19  ;;  %v55_v31 = vpack.c.bf16 %v609_v29, %v607_v27  ;;  %216 = vmatprep.subr.bf16.mxu0 %v73_v28 }
  0x1a   :  { %v613_v32 = vpop.eup %612 }
  0x1b   :  { %v615_v33 = vpop.eup %614  ;;  %v54_v34 = vpack.c.bf16 %v613_v32, %v611_v30  ;;  %v840_v32 = vrot.slane %v35_v20, %v274_v23 }
  0x1c   :  { %v617_v35 = vpop.eup %616  ;;  %217 = vmatpush1.bf16.msra.mxu0 %v72_v22 }
  0x1d   :  { %v619_v36 = vpop.eup %618  ;;  %86 = vrot.lane.b32.xlu1 %v55_v31, %s658_s19  ;;  %84 = vrot.lane.b32.xlu0 %v54_v34, %s658_s19  ;;  %v53_v37 = vpack.c.bf16 %v617_v35, %v615_v33 }
  0x1e   :  { %v621_v38 = vpop.eup %620  ;;  %218 = vmatprep.subr.bf16.mxu0 %v55_v31 }
  0x1f   :  { %v52_v39 = vpack.c.bf16 %v621_v38, %v619_v36 }
  0x20   :  { %219 = vmatpush1.bf16.msra.mxu0 %v54_v34 }
  0x21   :  { %82 = vrot.lane.b32.xlu1 %v53_v37, %s658_s19  ;;  %80 = vrot.lane.b32.xlu0 %v52_v39, %s658_s19 }
  0x22   :  { %220 = vmatprep.subr.bf16.mxu0 %v53_v37 }
  0x24   :  { %221 = vmatpush1.bf16.msra.mxu0 %v52_v39 }
  0x25   :  { %149 = vrot.lane.b32.xlu1 %v75_v25, %s659_s1  ;;  %147 = vrot.lane.b32.xlu0 %v74_v19, %s659_s1  ;;  %v270_v19 = vsub.s32 0, %v828_v14 }
  0x27   :  { %v837_v26 = vrot.slane %v35_v20, %v270_v19 }
  0x29   :  { %145 = vrot.lane.b32.xlu1 %v73_v28, %s659_s1  ;;  %143 = vrot.lane.b32.xlu0 %v72_v22, %s659_s1 }
  0x2d   :  { %129 = vrot.lane.b32.xlu1 %v55_v31, %s659_s1  ;;  %127 = vrot.lane.b32.xlu0 %v54_v34, %s659_s1 }
  0x31   :  { %125 = vrot.lane.b32.xlu1 %v53_v37, %s659_s1  ;;  %123 = vrot.lane.b32.xlu0 %v52_v39, %s659_s1 }
  0x35   :  { %186 = vperm.xlu1 %581, %v168_v42   ;;  %181 = vperm.xlu0 %580, %v167_v43  }
  0x39   :  { %171 = vperm.xlu1 %581, %v165_v44   ;;  %176 = vperm.xlu0 %580, %v166_v45  }
  0x85   :  { %v110_v46 = vpop.permute.xlu0 %109 }
  0x87   :  { %v106_v47 = vpop.permute.xlu1 %105 }
  0x89   :  { %v112_v48 = vpop.permute.xlu0 %111 }
  0x8a   :  { %v114_v50 = vsel %vm88_vm1, %v110_v46, %v112_v48 }
  0x8b   :  { %v108_v51 = vpop.permute.xlu1 %107  ;;  %222 = vmatprep.subr.bf16.mxu0 %v114_v50 }
  0x8c   :  { %550 = vmatpush1.bf16.msk.msra.mxu0 %vm790_vm2, %v110_v46  ;;  %v113_v52 = vsel %vm88_vm1, %v106_v47, %v108_v51 }
  0x8d   :  { %224 = vmatprep.subr.bf16.mxu0 %v113_v52 }
  0x8f   :  { %v87_v53 = vpop.permute.xlu1 %86  ;;  %v85_v54 = vpop.permute.xlu0 %84 }
  0x90   :  { %552 = vmatpush1.bf16.msk.msra.mxu0 %vm790_vm2, %v106_v47  ;;  %v90_v55 = vsel %vm88_vm1, %v85_v54, %v87_v53 }
  0x91   :  { %226 = vmatprep.subr.bf16.mxu0 %v90_v55 }
  0x93   :  { %v83_v56 = vpop.permute.xlu1 %82  ;;  %v81_v57 = vpop.permute.xlu0 %80 }
  0x94   :  { %554 = vmatpush1.bf16.msk.msra.mxu0 %vm790_vm2, %v85_v54  ;;  %v89_v58 = vsel %vm88_vm1, %v81_v57, %v83_v56 }
  0x95   :  { %228 = vmatprep.subr.bf16.mxu0 %v89_v58 }
  0x97   :  { %v150_v59 = vpop.permute.xlu1 %149  ;;  %v148_v60 = vpop.permute.xlu0 %147 }
  0x98   :  { %556 = vmatpush1.bf16.msk.msra.mxu0 %vm790_vm2, %v81_v57  ;;  %v152_v61 = vsel %vm131_vm3, %v148_v60, %v150_v59  ;;  %v349_v60 = vld [vmem:[%s893_s6 + $0x18] sm:$0xff] }
  0x99   :  { %557 = vmatprep.subr.msk.bf16.mxu0 %vm131_vm3, %v150_v59  ;;  %v348_v59 = vld [vmem:[%s893_s6 + $0x10] sm:$0xff] }
  0x9b   :  { %v146_v62 = vpop.permute.xlu1 %145  ;;  %v144_v63 = vpop.permute.xlu0 %143 }
  0x9c   :  { %239 = vmatpush2.bf16.msra.mxu0 %v152_v61  ;;  %v151_v0 = vsel %vm131_vm3, %v144_v63, %v146_v62  ;;  %v346_v61 = vld [vmem:[%s893_s6] sm:$0xff] }
  0x9d   :  { %558 = vmatprep.subr.msk.bf16.mxu0 %vm131_vm3, %v146_v62  ;;  %v347_v62 = vld [vmem:[%s893_s6 + $0x8] sm:$0xff]  ;;  %v461_v63 = vld [vmem:[#allocation2] sm:$0x1] }
  0x9f   :  { %v130_v1 = vpop.permute.xlu1 %129  ;;  %v128_v2 = vpop.permute.xlu0 %127 }
  0xa0   :  { %241 = vmatpush2.bf16.msra.mxu0 %v151_v0  ;;  %v133_v3 = vsel %vm131_vm3, %v128_v2, %v130_v1 }
  0xa1   :  { %559 = vmatprep.subr.msk.bf16.mxu0 %vm131_vm3, %v130_v1 }
  0xa3   :  { %v126_v4 = vpop.permute.xlu1 %125  ;;  %v124_v5 = vpop.permute.xlu0 %123 }
  0xa4   :  { %243 = vmatpush2.bf16.msra.mxu0 %v133_v3  ;;  %v132_v6 = vsel %vm131_vm3, %v124_v5, %v126_v4 }
  0xa5   :  { %560 = vmatprep.subr.msk.bf16.mxu0 %vm131_vm3, %v126_v4 }
  0xa8   :  { %245 = vmatpush2.bf16.msra.mxu0 %v132_v6 }
  0xab   :  { %247 = vmatmul.mubr.bf16.vlgmr.msra.gmra.mxu0 %v582_v7 }
  0xac   :  { %562 = vmatprep.mubr.msk.bf16.mxu0 %vm207_vm0, %v585_v8 }
  0xb0   :  { %v182_v12 = vpop.permute.xlu0 %181  ;;  %v187_v16 = vpop.permute.xlu1 %186 }
  0xb3   :  { %257 = vmatmul.mubr.bf16.gmra.mxu0 %v587_v9 }
  0xb4   :  { %v177_v17 = vpop.permute.xlu0 %176  ;;  %v172_v25 = vpop.permute.xlu1 %171 }
 0x16b   :  { %v248_v13 = vpop.f32.mrf.mxu0 }
 0x16c   :  { %v249_v31 = vadd.f32 %v248_v13, %v172_v25  ;;  %v588_v13 = vld [vmem:[%s894_s5] sm:$0xff]  }
 0x16d   :  { %v250_v15 = vpop.f32.mrf.mxu0 }
 0x16e   :  { %v251_v39 = vadd.f32 %v250_v15, %v172_v25  ;;  %v278_v43 = vmul.f32 %v837_v26, %v249_v31  ;;  %v589_v15 = vld [vmem:[%s894_s5 + $0x8] sm:$0xff]  }
 0x16f   :  { %v252_v18 = vpop.f32.mrf.mxu0 }
 0x170   :  { %v253_v22 = vadd.f32 %v252_v18, %v177_v17  ;;  %v279_v46 = vmul.f32 %v840_v32, %v251_v39 }
 0x171   :  { %v254_v21 = vpop.f32.mrf.mxu0 }
 0x172   :  { %v280_v29 = vmul.f32 %v837_v26, %v253_v22  ;;  %v255_v35 = vadd.f32 %v254_v21, %v177_v17 }
 0x173   :  { %v258_v24 = vpop.f32.mrf.mxu0 }
 0x174   :  { %v259_v27 = vadd.f32 %v258_v24, %v182_v12  ;;  %622 = vtanh.f32 %v280_v29  ;;  %v281_v44 = vmul.f32 %v840_v32, %v255_v35 }
 0x175   :  { %v260_v28 = vpop.f32.mrf.mxu0 }
 0x176   :  { %v261_v30 = vadd.f32 %v260_v28, %v182_v12  ;;  %v282_v33 = vmul.f32 %v837_v26, %v259_v27 }
 0x177   :  { %v262_v34 = vpop.f32.mrf.mxu0 }
 0x178   :  { %v263_v36 = vadd.f32 %v262_v34, %v187_v16  ;;  %v283_v37 = vmul.f32 %v840_v32, %v261_v30  ;;  %624 = vtanh.f32 %v282_v33 }
 0x179   :  { %v264_v38 = vpop.f32.mrf.mxu0 }
 0x17a   :  { %v284_v40 = vmul.f32 %v837_v26, %v263_v36  ;;  %v265_v42 = vadd.f32 %v264_v38, %v187_v16 }
 0x17c   :  { %626 = vtanh.f32 %v284_v40  ;;  %v285_v45 = vmul.f32 %v840_v32, %v265_v42 }
 0x17d   :  { %628 = vtanh.f32 %v283_v37 }
 0x17e   :  { %630 = vtanh.f32 %v285_v45 }
 0x17f   :  { %632 = vtanh.f32 %v278_v43 }
 0x180   :  { %634 = vtanh.f32 %v281_v44 }
 0x181   :  { %636 = vtanh.f32 %v279_v46  ;;  %v623_v47 = vpop.eup %622 }
 0x185   :  { %v625_v48 = vpop.eup %624 }
 0x189   :  { %v627_v49 = vpop.eup %626 }
 0x18a   :  { %v629_v50 = vpop.eup %628  ;;  %v296_v51 = vpack.c.bf16 %v627_v49, %v625_v48 }
 0x18b   :  { %v631_v52 = vpop.eup %630 }
 0x18c   :  { %v633_v53 = vpop.eup %632  ;;  %326 = vrot.lane.b32.xlu1 %v296_v51, %s661_s0  ;;  %v297_v54 = vpack.c.bf16 %v631_v52, %v629_v50 }
 0x18d   :  { %v635_v55 = vpop.eup %634  ;;  %v294_v56 = vpack.c.bf16 %v623_v47, %v633_v53 }
 0x18e   :  { %328 = vrot.lane.b32.xlu0 %v297_v54, %s661_s0  ;;  %v637_v57 = vpop.eup %636 }
 0x18f   :  { %v295_v58 = vpack.c.bf16 %v635_v55, %v637_v57 }
 0x190   :  { %322 = vrot.lane.b32.xlu1 %v294_v56, %s661_s0 }
 0x192   :  { %324 = vrot.lane.b32.xlu0 %v295_v58, %s661_s0 }
 0x194   :  { %306 = vrot.lane.b32.xlu1 %v296_v51, %s662_s8 }
 0x196   :  { %308 = vrot.lane.b32.xlu0 %v297_v54, %s662_s8 }
 0x198   :  { %302 = vrot.lane.b32.xlu1 %v294_v56, %s662_s8 }
 0x19a   :  { %304 = vrot.lane.b32.xlu0 %v295_v58, %s662_s8 }
 0x19c   :  { %362 = vperm.xlu1 %581, %v348_v59  }
 0x19e   :  { %367 = vperm.xlu0 %580, %v349_v60  }
 0x1a0   :  { %352 = vperm.xlu1 %581, %v346_v61  }
 0x1a2   :  { %357 = vperm.xlu0 %580, %v347_v62  }
 0x1a4   :  { %464 = vperm.xlu1 %581, %v461_v63  }
 0x1fe   :  { %v327_v0 = vpop.permute.xlu1 %326 }
 0x200   :  { %v329_v1 = vpop.permute.xlu0 %328 }
 0x201   :  { %565 = vmatprep.subr.msk.bf16.mxu1 %vm330_vm4, %v329_v1  ;;  %v332_v2 = vsel %vm330_vm4, %v327_v0, %v329_v1 }
 0x202   :  { %392 = vmatpush1.bf16.msra.mxu1 %v332_v2  ;;  %v323_v3 = vpop.permute.xlu1 %322  ;;  %v663_v2 = vmov 1966171168  }
 0x204   :  { %v325_v4 = vpop.permute.xlu0 %324 }
 0x205   :  { %566 = vmatprep.subr.msk.bf16.mxu1 %vm330_vm4, %v325_v4  ;;  %v331_v5 = vsel %vm330_vm4, %v323_v3, %v325_v4  ;;  %v522_v3 = vunpack.c.l.s4 %v663_v2 }
 0x206   :  { %394 = vmatpush1.bf16.msra.mxu1 %v331_v5  ;;  %v307_v7 = vpop.permute.xlu1 %306 }
 0x207   :  { %395 = vmatprep.subr.bf16.mxu1 %v297_v54  ;;  %v523_v4 = vunpack.c.0.s8 %v522_v3 }
 0x208   :  { %v309_v6 = vpop.permute.xlu0 %308 }
 0x209   :  { %v312_v8 = vsel %vm310_vm5, %v307_v7, %v309_v6  ;;  %v526_v6 = vsub.s32 %v523_v4, %v828_v14 }
 0x20a   :  { %396 = vmatpush1.bf16.msra.mxu1 %v296_v51  ;;  %v303_v10 = vpop.permute.xlu1 %302 }
 0x20b   :  { %397 = vmatprep.subr.bf16.mxu1 %v295_v58 }
 0x20c   :  { %v305_v9 = vpop.permute.xlu0 %304 }
 0x20d   :  { %v311_v12 = vsel %vm310_vm5, %v303_v10, %v305_v9 }
 0x20e   :  { %398 = vmatpush1.bf16.msra.mxu1 %v294_v56 }
 0x20f   :  { %399 = vmatprep.subr.bf16.mxu1 %v312_v8 }
 0x212   :  { %568 = vmatpush1.bf16.msk.msra.mxu1 %vm567_vm6, %v307_v7 }
 0x213   :  { %401 = vmatprep.subr.bf16.mxu1 %v311_v12 }
 0x216   :  { %570 = vmatpush1.bf16.msk.msra.mxu1 %vm567_vm6, %v303_v10 }
 0x217   :  { %v363_v21 = vpop.permute.xlu1 %362 }
 0x219   :  { %571 = vmatmul.mubr.msk.bf16.vlgmr.msra.gmra.mxu1 %vm380_vm7, %v588_v13  ;;  %v368_v17 = vpop.permute.xlu0 %367 }
 0x21a   :  { %429 = vmatprep.mubr.bf16.mxu1 %v660_v41 }
 0x21b   :  { %v353_v29 = vpop.permute.xlu1 %352 }
 0x21d   :  { %v358_v23 = vpop.permute.xlu0 %357 }
 0x21f   :  { %v465_v58 = vpop.permute.xlu1 %464 }
 0x220   :  { %v470_v59 = vrot.slane %v465_v58, %v270_v19 }
 0x221   :  { %572 = vmatmul.mubr.msk.bf16.gmra.mxu1 %vm380_vm7, %v589_v15 }
 0x222   :  { %507 = vmatprep.mubr.bf16.mxu1 %v660_v41 }
 0x2d9   :  { %v421_v16 = vpop.f32.mrf.mxu1 }
 0x2da   :  { %v422_v40 = vadd.f32 %v421_v16, %v353_v29 }
 0x2db   :  { %v423_v18 = vpop.f32.mrf.mxu1 }
 0x2dc   :  { %v424_v34 = vadd.f32 %v423_v18, %v353_v29  ;;  %v440_v46 = vmul.f32 %v422_v40, %v837_v26 }
 0x2dd   :  { %v425_v20 = vpop.f32.mrf.mxu1 }
 0x2de   :  { %v426_v36 = vadd.f32 %v425_v20, %v358_v23  ;;  %v441_v43 = vmul.f32 %v424_v34, %v840_v32 }
 0x2df   :  { %v427_v22 = vpop.f32.mrf.mxu1 }
 0x2e0   :  { %v428_v24 = vadd.f32 %v427_v22, %v358_v23  ;;  %v442_v45 = vmul.f32 %v426_v36, %v837_v26 }
 0x2e1   :  { %v431_v25 = vpop.f32.mrf.mxu1 }
 0x2e2   :  { %v443_v30 = vmul.f32 %v428_v24, %v840_v32  ;;  %v432_v31 = vadd.f32 %v431_v25, %v363_v21 }
 0x2e3   :  { %v433_v27 = vpop.f32.mrf.mxu1 }
 0x2e4   :  { %v434_v28 = vadd.f32 %v433_v27, %v363_v21  ;;  %638 = vtanh.f32 %v443_v30  ;;  %v444_v42 = vmul.f32 %v432_v31, %v837_v26 }
 0x2e5   :  { %v435_v33 = vpop.f32.mrf.mxu1 }
 0x2e6   :  { %v445_v35 = vmul.f32 %v434_v28, %v840_v32  ;;  %v436_v41 = vadd.f32 %v435_v33, %v368_v17 }
 0x2e7   :  { %v437_v37 = vpop.f32.mrf.mxu1 }
 0x2e8   :  { %v446_v38 = vmul.f32 %v436_v41, %v837_v26  ;;  %v438_v39 = vadd.f32 %v437_v37, %v368_v17  ;;  %640 = vtanh.f32 %v445_v35  ;;  %v460_v26 = vld [vmem:[%s895_s7] sm:$0x1] }
 0x2ea   :  { %v447_v44 = vmul.f32 %v438_v39, %v840_v32  ;;  %642 = vtanh.f32 %v446_v38 }
 0x2ec   :  { %644 = vtanh.f32 %v447_v44 }
 0x2ed   :  { %646 = vtanh.f32 %v444_v42 }
 0x2ee   :  { %648 = vtanh.f32 %v441_v43 }
 0x2ef   :  { %650 = vtanh.f32 %v442_v45 }
 0x2f0   :  { %652 = vtanh.f32 %v440_v46 }
 0x2f1   :  { %v639_v47 = vpop.eup %638 }
 0x2f5   :  { %v641_v48 = vpop.eup %640 }
 0x2f7   :  { %v643_v49 = vpop.eup %642 }
 0x2f9   :  { %v645_v50 = vpop.eup %644 }
 0x2fa   :  { %v647_v51 = vpop.eup %646  ;;  %v459_v52 = vpack.c.bf16 %v645_v50, %v641_v48 }
 0x2fb   :  { %v649_v53 = vpop.eup %648  ;;  %v458_v54 = vpack.c.bf16 %v643_v49, %v647_v51 }
 0x2fc   :  { %v651_v55 = vpop.eup %650  ;;  %487 = vmatprep.subr.bf16.mxu1 %v459_v52  ;;  %v457_v32 = vpack.c.bf16 %v639_v47, %v649_v53 }
 0x2fd   :  { %488 = vmatpush1.bf16.msra.mxu1 %v458_v54  ;;  %v653_v56 = vpop.eup %652 }
 0x2fe   :  { %489 = vmatprep.subr.bf16.mxu1 %v457_v32  ;;  %v456_v57 = vpack.c.bf16 %v651_v55, %v653_v56 }
 0x301   :  { %490 = vmatpush1.bf16.msra.mxu1 %v456_v57 }
 0x304   :  { %573 = vmatmul.mubr.msk.bf16.vlgmr.msra.gmra.mxu1 %vm471_vm8, %v460_v26 }
 0x3c4   :  { %v509_v60 = vpop.f32.mrf.mxu1 }
 0x3c5   :  { %v510_v61 = vadd.f32 %v509_v60, %v470_v59 }
 0x3c6   :  { %v511_v62 = vpop.f32.mrf.mxu1 }
 0x3c7   :  { %v512_v63 = vadd.f32 %v511_v62, %v470_v59  ;;  %654 = vtanh.f32 %v510_v61 }
 0x3c8   :  { %v513_v0 = vpop.f32.mrf.mxu1 }
 0x3c9   :  { %656 = vtanh.f32 %v512_v63 }
 0x3ca   :  { %v514_v1 = vpop.f32.mrf.mxu1 }
 0x3d4   :  { %v655_v5 = vpop.eup %654 }
 0x3d6   :  { %v657_v7 = vpop.eup %656 }
 0x3d7   :  { %v520_v8 = vcombine.low %v655_v5, %v657_v7 }
 0x3d9   :  { %v527_v9 = vrot.slane %v520_v8, %v526_v6 }
 0x3db   :  { %v534_v19 = vrot.slane %v527_v9, %v526_v6 }
 0x3dd   :  { %540 = vst.msk [vmem:[%s896_s9] sm:$0x3] %vm538_vm9, %v534_v19 }

</bundles_post_ra>
